<compile_context>
chip_gen: v7x
topology: tpu7x:2x2x1
jax: 0.10.0
libtpu: 0.0.40
codegen_flags: <defaults>
</compile_context>

<pallas_src>
import functools

import jax
import jax.numpy as jnp
from jax.experimental import pallas as pl
from jax.experimental.pallas import tpu as pltpu


# Explicit scoped-VMEM limit: v5e's default is only 16 MiB; 32 MiB is safe on
# v5e / v6e / v7x and covers the enlarged tiles below.
_VMEM_LIMIT_BYTES = 32 * 1024 * 1024


# ----------------------------- tiling helper --------------------------------

def _pick_tile(n, target, align):
    """Largest divisor of n that is a multiple of `align` and <= target."""
    best = None
    t = align
    while t <= min(target, n):
        if n % t == 0:
            best = t
        t += align
    return best if best is not None else n


# ------------------ kernel 1: feature matmul + Siamese head -----------------

def _feat_head_kernel(x_ref, w_ref, wfc_ref, plogit_ref, acc_ref, *, batch):
    """One fout-slab (grid axis 0, 'parallel'), K-tiled (axis 1, 'arbitrary').

    x_ref:      (2B, tk)    bf16  K-slice of BOTH flattened volumes
    w_ref:      (tk, slab)  bf16  (K, N)-block of the feature weight
    wfc_ref:    (1, slab)   f32   head-weight slab
    plogit_ref: (1, B, 1)   f32   per-slab partial head logit
    acc_ref:    (2B, slab)  f32   VMEM accumulator, persists across K steps
    """
    k = pl.program_id(1)

    @pl.when(k == 0)
    def _():
        acc_ref[...] = jnp.zeros_like(acc_ref)

    # Single MXU dot covers both volumes (rows [0,B) = vol1, [B,2B) = vol2).
    acc_ref[...] += jnp.dot(x_ref[...], w_ref[...],
                            preferred_element_type=jnp.float32)

    @pl.when(k == pl.num_programs(1) - 1)
    def _():
        feat = jnp.maximum(acc_ref[...], 0.0)               # ReLU, (2B, slab)
        diff = jnp.abs(feat[:batch] - feat[batch:])         # (B, slab)
        plogit_ref[0] = jnp.sum(diff * wfc_ref[...], axis=-1, keepdims=True)


def feature_head_forward(x_both, w_feat, w_fc):
    """x_both: (2B, Fin) bf16; w_feat: (Fin, 512) bf16 -> (n_slab, B, 1) partial logits."""
    rows2b, fin = x_both.shape
    batch = rows2b // 2
    fout = w_feat.shape[1]

    n_slab = 2 if (fout % 256 == 0 and fout >= 512) else 1
    slab = fout // n_slab
    tk = _pick_tile(fin, 4096, 128)      # big K-tile: amortize per-step overhead
    nk = fin // tk

    return pl.pallas_call(
        functools.partial(_feat_head_kernel, batch=batch),
        grid=(n_slab, nk),
        in_specs=[
            pl.BlockSpec((rows2b, tk), lambda j, k: (0, k)),
            pl.BlockSpec((tk, slab), lambda j, k: (k, j)),
            pl.BlockSpec((1, slab), lambda j, k: (0, j)),
        ],
        out_specs=pl.BlockSpec((1, batch, 1), lambda j, k: (j, 0, 0)),
        out_shape=jax.ShapeDtypeStruct((n_slab, batch, 1), jnp.float32),
        scratch_shapes=[pltpu.VMEM((rows2b, slab), jnp.float32)],
        compiler_params=pltpu.CompilerParams(
            dimension_semantics=("parallel", "arbitrary"),
            vmem_limit_bytes=_VMEM_LIMIT_BYTES),
    )(x_both, w_feat, w_fc)


# ----------------------- kernel 2: streaming dice ----------------------------

def _dice_kernel(x1_ref, s1_ref, x2_ref, s2_ref, out_ref,
                 i1_acc, s1_acc, p1_acc, i2_acc, s2_acc, p2_acc):
    """Per-lane dice partial sums for BOTH volumes in every grid step.

    Inputs: (tr, 128) f32 lane-dense tiles read straight from the flattened
    volumes (no stacked HBM copies).
    out_ref: (1, 6, 128) rows = [inter1, seg1, pred1, inter2, seg2, pred2].
    """
    k = pl.program_id(1)

    @pl.when(k == 0)
    def _():
        for a in (i1_acc, s1_acc, p1_acc, i2_acc, s2_acc, p2_acc):
            a[...] = jnp.zeros_like(a)

    # TODO(synk): SCNN seg decoder unavailable; deterministic pointwise stand-in.
    p1 = jax.nn.sigmoid(0.5 * x1_ref[...] - 0.1)
    p2 = jax.nn.sigmoid(0.5 * x2_ref[...] - 0.1)
    s1 = s1_ref[...]
    s2 = s2_ref[...]

    i1_acc[...] += jnp.sum(s1 * p1, axis=0, keepdims=True)     # (1, 128)
    s1_acc[...] += jnp.sum(s1, axis=0, keepdims=True)
    p1_acc[...] += jnp.sum(p1, axis=0, keepdims=True)
    i2_acc[...] += jnp.sum(s2 * p2, axis=0, keepdims=True)
    s2_acc[...] += jnp.sum(s2, axis=0, keepdims=True)
    p2_acc[...] += jnp.sum(p2, axis=0, keepdims=True)

    @pl.when(k == pl.num_programs(1) - 1)
    def _():
        out_ref[0, 0:1] = i1_acc[...]
        out_ref[0, 1:2] = s1_acc[...]
        out_ref[0, 2:3] = p1_acc[...]
        out_ref[0, 3:4] = i2_acc[...]
        out_ref[0, 4:5] = s2_acc[...]
        out_ref[0, 5:6] = p2_acc[...]


def seg_dice_partials(x1f, s1f, x2f, s2f):
    """Four (rows, 128) f32 inputs -> (n_par, 6, 128) per-lane partial sums."""
    rows, lanes = x1f.shape
    tr = _pick_tile(rows, 2048, 8)       # large row tile: approach HBM roofline
    nk = rows // tr
    n_par = 2 if (nk % 2 == 0 and nk >= 2) else 1   # 2-way split for v7x megacore
    nk_half = nk // n_par

    def row_map(i, k):
        return (i * nk_half + k, 0)

    return pl.pallas_call(
        _dice_kernel,
        grid=(n_par, nk_half),
        in_specs=[pl.BlockSpec((tr, lanes), row_map) for _ in range(4)],
        out_specs=pl.BlockSpec((1, 6, lanes), lambda i, k: (i, 0, 0)),
        out_shape=jax.ShapeDtypeStruct((n_par, 6, lanes), jnp.float32),
        scratch_shapes=[pltpu.VMEM((1, lanes), jnp.float32) for _ in range(6)],
        compiler_params=pltpu.CompilerParams(
            dimension_semantics=("parallel", "arbitrary"),
            vmem_limit_bytes=_VMEM_LIMIT_BYTES),
    )(x1f, s1f, x2f, s2f)


# ------------------------------- forward -------------------------------------

def init_params(key, fin, feat_dim=512):
    k1, k2 = jax.random.split(key)
    return {
        # bf16 weight: halves HBM traffic of the weight-streaming-bound matmul.
        "w_feat": (0.01 * jax.random.normal(k1, (fin, feat_dim), jnp.float32)
                   ).astype(jnp.bfloat16),
        "w_fc": 0.05 * jax.random.normal(k2, (1, feat_dim), jnp.float32),
        "b_fc": jnp.zeros((1, 1), jnp.float32),
    }


def siamese_forward(params, x1, x1_seg, y1, x2, x2_seg, y2):
    B = x1.shape[0]

    # --- feature extraction + Siamese head: one fused K-tiled pallas_call ---
    x_both = jnp.concatenate(
        [x1.reshape(B, -1), x2.reshape(B, -1)], axis=0).astype(jnp.bfloat16)
    plogits = feature_head_forward(x_both, params["w_feat"], params["w_fc"])
    logits = jnp.sum(plogits, axis=0) + params["b_fc"]         # (B, 1)
    score = jax.nn.sigmoid(logits)
    y = (y1 == y2).astype(jnp.float32).reshape(B, 1)
    # Numerically stable BCE from logits: max(z,0) - z*y + softplus(-|z|).
    l_bce = jnp.mean(jnp.maximum(logits, 0.0) - logits * y
                     + jax.nn.softplus(-jnp.abs(logits)))

    # --- dice losses: de-stacked, lane-dense streaming reduction ------------
    n = x1.size
    assert n % 128 == 0, "flattened volume size must be a multiple of 128"
    rows = n // 128
    parts = seg_dice_partials(
        x1.reshape(rows, 128), x1_seg.reshape(rows, 128),
        x2.reshape(rows, 128), x2_seg.reshape(rows, 128))      # (n_par, 6, 128)
    s = jnp.sum(parts, axis=(0, 2))                            # (6,) scalars
    smooth = 1.0
    d1 = 1.0 - (2.0 * s[0] + smooth) / (s[1] + s[2] + smooth)
    d2 = 1.0 - (2.0 * s[3] + smooth) / (s[4] + s[5] + smooth)
    l_dice = d1 + d2

    return score, l_bce, l_dice


# --------------------------------- main --------------------------------------

if __name__ == "__main__":
    B, C, D = 2, 1, 16          # small tomogram: (B, C, D, D, D)
    fin = C * D * D * D         # 4096

    key = jax.random.PRNGKey(0)
    kx1, kx2, ks1, ks2, kp = jax.random.split(key, 5)

    x1 = jax.random.normal(kx1, (B, C, D, D, D), jnp.float32)
    x2 = jax.random.normal(kx2, (B, C, D, D, D), jnp.float32)
    x1_seg = jax.random.uniform(ks1, (B, C, D, D, D), jnp.float32)
    x2_seg = jax.random.uniform(ks2, (B, C, D, D, D), jnp.float32)
    y1 = jnp.array([0, 1], jnp.int32)
    y2 = jnp.array([0, 0], jnp.int32)

    params = init_params(kp, fin)

    fwd = jax.jit(siamese_forward)
    score, l_bce, l_dice = fwd(params, x1, x1_seg, y1, x2, x2_seg, y2)
    jax.block_until_ready((score, l_bce, l_dice))
    print("KERNEL_OK")
</pallas_src>

<mosaic_0001>
module attributes {stable_mosaic.version = 11 : i64} {
  func.func @_feat_head_kernel(%arg0: i32, %arg1: i32, %arg2: memref<4x4096xbf16, #tpu.memory_space<vmem>>, %arg3: memref<4096x256xbf16, #tpu.memory_space<vmem>>, %arg4: memref<1x256xf32, #tpu.memory_space<vmem>>, %arg5: memref<1x2x1xf32, #tpu.memory_space<vmem>>, %arg6: memref<4x256xf32, #tpu.memory_space<vmem>>) attributes {dimension_semantics = [#tpu.dimension_semantics<parallel>, #tpu.dimension_semantics<arbitrary>], iteration_bounds = array<i64: 2, 1>, scalar_prefetch = 0 : i64, scratch_operands = 1 : i64, tpu.core_type = #tpu.core_type<tc>, window_params = [{transform_indices = @transform_0, window_bounds = array<i64: 4, 4096>}, {transform_indices = @transform_1, window_bounds = array<i64: 4096, 256>}, {transform_indices = @transform_2, window_bounds = array<i64: 1, 256>}, {transform_indices = @transform_3, window_bounds = array<i64: 1, 2, 1>}]} {
    %c0_i32 = arith.constant 0 : i32
    %0 = arith.cmpi eq, %arg1, %c0_i32 : i32
    %1 = arith.extui %0 : i1 to i32
    %c0_i32_0 = arith.constant 0 : i32
    %2 = arith.cmpi ne, %1, %c0_i32_0 : i32
    scf.if %2 {
      %cst_10 = arith.constant 0.000000e+00 : f32
      %12 = vector.broadcast %cst_10 : f32 to vector<4x256xf32>
      %c0_11 = arith.constant 0 : index
      %c0_12 = arith.constant 0 : index
      %13 = vector.load %arg6[%c0_11, %c0_12] : memref<4x256xf32, #tpu.memory_space<vmem>>, vector<4x256xf32>
      tpu.vector_store %arg6[%c0_11, %c0_12], %12 {strides = array<i32>} : memref<4x256xf32, #tpu.memory_space<vmem>>, vector<4x256xf32>,
    } else {
    }
    %c0 = arith.constant 0 : index
    %c0_1 = arith.constant 0 : index
    %3 = vector.load %arg6[%c0, %c0_1] : memref<4x256xf32, #tpu.memory_space<vmem>>, vector<4x256xf32>
    %c0_2 = arith.constant 0 : index
    %c0_3 = arith.constant 0 : index
    %4 = vector.load %arg2[%c0_2, %c0_3] : memref<4x4096xbf16, #tpu.memory_space<vmem>>, vector<4x4096xbf16>
    %c0_4 = arith.constant 0 : index
    %c0_5 = arith.constant 0 : index
    %5 = vector.load %arg3[%c0_4, %c0_5] : memref<4096x256xbf16, #tpu.memory_space<vmem>>, vector<4096x256xbf16>
    %cst = arith.constant dense<0.000000e+00> : vector<4x256xf32>
    %6 = tpu.matmul %4, %5, %cst {dimension_numbers = #tpu.dot_dimension_numbers<[1], [0], [0], [1], [0, 0, 1, 1], [], []>} : vector<4x4096xbf16>, vector<4096x256xbf16>, vector<4x256xf32> -> vector<4x256xf32>
    %7 = arith.addf %3, %6 : vector<4x256xf32>
    %c0_6 = arith.constant 0 : index
    %c0_7 = arith.constant 0 : index
    %8 = vector.load %arg6[%c0_6, %c0_7] : memref<4x256xf32, #tpu.memory_space<vmem>>, vector<4x256xf32>
    tpu.vector_store %arg6[%c0_6, %c0_7], %7 {strides = array<i32>} : memref<4x256xf32, #tpu.memory_space<vmem>>, vector<4x256xf32>,
    %c0_i32_8 = arith.constant 0 : i32
    %9 = arith.cmpi eq, %arg1, %c0_i32_8 : i32
    %10 = arith.extui %9 : i1 to i32
    %c0_i32_9 = arith.constant 0 : i32
    %11 = arith.cmpi ne, %10, %c0_i32_9 : i32
    scf.if %11 {
      %c0_10 = arith.constant 0 : index
      %c0_11 = arith.constant 0 : index
      %12 = vector.load %arg6[%c0_10, %c0_11] : memref<4x256xf32, #tpu.memory_space<vmem>>, vector<4x256xf32>
      %cst_12 = arith.constant 0.000000e+00 : f32
      %13 = vector.broadcast %cst_12 : f32 to vector<4x256xf32>
      %14 = arith.maximumf %12, %13 : vector<4x256xf32>
      %15 = vector.extract_strided_slice %14 {offsets = [0, 0], sizes = [2, 256], strides = [1, 1]} : vector<4x256xf32> to vector<2x256xf32>
      %16 = vector.extract_strided_slice %14 {offsets = [2, 0], sizes = [2, 256], strides = [1, 1]} : vector<4x256xf32> to vector<2x256xf32>
      %17 = arith.subf %15, %16 : vector<2x256xf32>
      %18 = math.absf %17 : vector<2x256xf32>
      %c0_13 = arith.constant 0 : index
      %c0_14 = arith.constant 0 : index
      %19 = vector.load %arg4[%c0_13, %c0_14] : memref<1x256xf32, #tpu.memory_space<vmem>>, vector<1x256xf32>
      %20 = vector.broadcast %19 : vector<1x256xf32> to vector<2x256xf32>
      %21 = arith.mulf %18, %20 : vector<2x256xf32>
      %cst_15 = arith.constant dense<0.000000e+00> : vector<2xf32>
      %22 = vector.multi_reduction <add>, %21, %cst_15 [1] : vector<2x256xf32> to vector<2xf32>
      %23 = vector.shape_cast %22 : vector<2xf32> to vector<2x1xf32>
      %c0_16 = arith.constant 0 : index
      %c0_17 = arith.constant 0 : index
      %c0_18 = arith.constant 0 : index
      %24 = vector.load %arg5[%c0_16, %c0_17, %c0_18] : memref<1x2x1xf32, #tpu.memory_space<vmem>>, vector<1x2x1xf32>
      %25 = vector.shape_cast %24 : vector<1x2x1xf32> to vector<2x1xf32>
      %26 = vector.shape_cast %23 : vector<2x1xf32> to vector<1x2x1xf32>
      tpu.vector_store %arg5[%c0_16, %c0_17, %c0_18], %26 {strides = array<i32>} : memref<1x2x1xf32, #tpu.memory_space<vmem>>, vector<1x2x1xf32>,
    } else {
    }
    return
  }
  func.func @transform_0(%arg0: i32, %arg1: i32) -> (i32, i32) {
    %c0_i32 = arith.constant 0 : i32
    %c0_i32_0 = arith.constant 0 : i32
    return %c0_i32, %arg1 : i32, i32
  }
  func.func @transform_1(%arg0: i32, %arg1: i32) -> (i32, i32) {
    %c0_i32 = arith.constant 0 : i32
    return %arg1, %arg0 : i32, i32
  }
  func.func @transform_2(%arg0: i32, %arg1: i32) -> (i32, i32) {
    %c0_i32 = arith.constant 0 : i32
    %c0_i32_0 = arith.constant 0 : i32
    return %c0_i32, %arg0 : i32, i32
  }
  func.func @transform_3(%arg0: i32, %arg1: i32) -> (i32, i32, i32) {
    %c0_i32 = arith.constant 0 : i32
    %c0_i32_0 = arith.constant 0 : i32
    %c0_i32_1 = arith.constant 0 : i32
    return %arg0, %c0_i32, %c0_i32_0 : i32, i32, i32
  }
}

module attributes {stable_mosaic.version = 11 : i64} {
  func.func @_dice_kernel(%arg0: i32, %arg1: i32, %arg2: memref<64x128xf32, #tpu.memory_space<vmem>>, %arg3: memref<64x128xf32, #tpu.memory_space<vmem>>, %arg4: memref<64x128xf32, #tpu.memory_space<vmem>>, %arg5: memref<64x128xf32, #tpu.memory_space<vmem>>, %arg6: memref<1x6x128xf32, #tpu.memory_space<vmem>>, %arg7: memref<1x128xf32, #tpu.memory_space<vmem>>, %arg8: memref<1x128xf32, #tpu.memory_space<vmem>>, %arg9: memref<1x128xf32, #tpu.memory_space<vmem>>, %arg10: memref<1x128xf32, #tpu.memory_space<vmem>>, %arg11: memref<1x128xf32, #tpu.memory_space<vmem>>, %arg12: memref<1x128xf32, #tpu.memory_space<vmem>>) attributes {dimension_semantics = [#tpu.dimension_semantics<parallel>, #tpu.dimension_semantics<arbitrary>], iteration_bounds = array<i64: 1, 1>, scalar_prefetch = 0 : i64, scratch_operands = 6 : i64, tpu.core_type = #tpu.core_type<tc>, window_params = [{transform_indices = @transform_0, window_bounds = array<i64: 64, 128>}, {transform_indices = @transform_1, window_bounds = array<i64: 64, 128>}, {transform_indices = @transform_2, window_bounds = array<i64: 64, 128>}, {transform_indices = @transform_3, window_bounds = array<i64: 64, 128>}, {transform_indices = @transform_4, window_bounds = array<i64: 1, 6, 128>}]} {
    %c0_i32 = arith.constant 0 : i32
    %0 = arith.cmpi eq, %arg1, %c0_i32 : i32
    %1 = arith.extui %0 : i1 to i32
    %c0_i32_0 = arith.constant 0 : i32
    %2 = arith.cmpi ne, %1, %c0_i32_0 : i32
    scf.if %2 {
      %cst_45 = arith.constant 0.000000e+00 : f32
      %60 = vector.broadcast %cst_45 : f32 to vector<1x128xf32>
      %c0_46 = arith.constant 0 : index
      %c0_47 = arith.constant 0 : index
      %61 = vector.load %arg7[%c0_46, %c0_47] : memref<1x128xf32, #tpu.memory_space<vmem>>, vector<1x128xf32>
      tpu.vector_store %arg7[%c0_46, %c0_47], %60 {strides = array<i32>} : memref<1x128xf32, #tpu.memory_space<vmem>>, vector<1x128xf32>,
      %cst_48 = arith.constant 0.000000e+00 : f32
      %62 = vector.broadcast %cst_48 : f32 to vector<1x128xf32>
      %c0_49 = arith.constant 0 : index
      %c0_50 = arith.constant 0 : index
      %63 = vector.load %arg8[%c0_49, %c0_50] : memref<1x128xf32, #tpu.memory_space<vmem>>, vector<1x128xf32>
      tpu.vector_store %arg8[%c0_49, %c0_50], %62 {strides = array<i32>} : memref<1x128xf32, #tpu.memory_space<vmem>>, vector<1x128xf32>,
      %cst_51 = arith.constant 0.000000e+00 : f32
      %64 = vector.broadcast %cst_51 : f32 to vector<1x128xf32>
      %c0_52 = arith.constant 0 : index
      %c0_53 = arith.constant 0 : index
      %65 = vector.load %arg9[%c0_52, %c0_53] : memref<1x128xf32, #tpu.memory_space<vmem>>, vector<1x128xf32>
      tpu.vector_store %arg9[%c0_52, %c0_53], %64 {strides = array<i32>} : memref<1x128xf32, #tpu.memory_space<vmem>>, vector<1x128xf32>,
      %cst_54 = arith.constant 0.000000e+00 : f32
      %66 = vector.broadcast %cst_54 : f32 to vector<1x128xf32>
      %c0_55 = arith.constant 0 : index
      %c0_56 = arith.constant 0 : index
      %67 = vector.load %arg10[%c0_55, %c0_56] : memref<1x128xf32, #tpu.memory_space<vmem>>, vector<1x128xf32>
      tpu.vector_store %arg10[%c0_55, %c0_56], %66 {strides = array<i32>} : memref<1x128xf32, #tpu.memory_space<vmem>>, vector<1x128xf32>,
      %cst_57 = arith.constant 0.000000e+00 : f32
      %68 = vector.broadcast %cst_57 : f32 to vector<1x128xf32>
      %c0_58 = arith.constant 0 : index
      %c0_59 = arith.constant 0 : index
      %69 = vector.load %arg11[%c0_58, %c0_59] : memref<1x128xf32, #tpu.memory_space<vmem>>, vector<1x128xf32>
      tpu.vector_store %arg11[%c0_58, %c0_59], %68 {strides = array<i32>} : memref<1x128xf32, #tpu.memory_space<vmem>>, vector<1x128xf32>,
      %cst_60 = arith.constant 0.000000e+00 : f32
      %70 = vector.broadcast %cst_60 : f32 to vector<1x128xf32>
      %c0_61 = arith.constant 0 : index
      %c0_62 = arith.constant 0 : index
      %71 = vector.load %arg12[%c0_61, %c0_62] : memref<1x128xf32, #tpu.memory_space<vmem>>, vector<1x128xf32>
      tpu.vector_store %arg12[%c0_61, %c0_62], %70 {strides = array<i32>} : memref<1x128xf32, #tpu.memory_space<vmem>>, vector<1x128xf32>,
    } else {
    }
    %c0 = arith.constant 0 : index
    %c0_1 = arith.constant 0 : index
    %3 = vector.load %arg2[%c0, %c0_1] : memref<64x128xf32, #tpu.memory_space<vmem>>, vector<64x128xf32>
    %cst = arith.constant 5.000000e-01 : f32
    %4 = vector.broadcast %cst : f32 to vector<64x128xf32>
    %5 = arith.mulf %4, %3 : vector<64x128xf32>
    %cst_2 = arith.constant 1.000000e-01 : f32
    %6 = vector.broadcast %cst_2 : f32 to vector<64x128xf32>
    %7 = arith.subf %5, %6 : vector<64x128xf32>
    %8 = arith.negf %7 : vector<64x128xf32>
    %9 = math.exp %8 : vector<64x128xf32>
    %cst_3 = arith.constant 1.000000e+00 : f32
    %10 = vector.broadcast %cst_3 : f32 to vector<64x128xf32>
    %11 = arith.addf %10, %9 : vector<64x128xf32>
    %12 = arith.divf %10, %11 : vector<64x128xf32>
    %c0_4 = arith.constant 0 : index
    %c0_5 = arith.constant 0 : index
    %13 = vector.load %arg4[%c0_4, %c0_5] : memref<64x128xf32, #tpu.memory_space<vmem>>, vector<64x128xf32>
    %cst_6 = arith.constant 5.000000e-01 : f32
    %14 = vector.broadcast %cst_6 : f32 to vector<64x128xf32>
    %15 = arith.mulf %14, %13 : vector<64x128xf32>
    %cst_7 = arith.constant 1.000000e-01 : f32
    %16 = vector.broadcast %cst_7 : f32 to vector<64x128xf32>
    %17 = arith.subf %15, %16 : vector<64x128xf32>
    %18 = arith.negf %17 : vector<64x128xf32>
    %19 = math.exp %18 : vector<64x128xf32>
    %cst_8 = arith.constant 1.000000e+00 : f32
    %20 = vector.broadcast %cst_8 : f32 to vector<64x128xf32>
    %21 = arith.addf %20, %19 : vector<64x128xf32>
    %22 = arith.divf %20, %21 : vector<64x128xf32>
    %c0_9 = arith.constant 0 : index
    %c0_10 = arith.constant 0 : index
    %23 = vector.load %arg3[%c0_9, %c0_10] : memref<64x128xf32, #tpu.memory_space<vmem>>, vector<64x128xf32>
    %c0_11 = arith.constant 0 : index
    %c0_12 = arith.constant 0 : index
    %24 = vector.load %arg5[%c0_11, %c0_12] : memref<64x128xf32, #tpu.memory_space<vmem>>, vector<64x128xf32>
    %c0_13 = arith.constant 0 : index
    %c0_14 = arith.constant 0 : index
    %25 = vector.load %arg7[%c0_13, %c0_14] : memref<1x128xf32, #tpu.memory_space<vmem>>, vector<1x128xf32>
    %26 = arith.mulf %23, %12 : vector<64x128xf32>
    %cst_15 = arith.constant dense<0.000000e+00> : vector<128xf32>
    %27 = vector.multi_reduction <add>, %26, %cst_15 [0] : vector<64x128xf32> to vector<128xf32>
    %28 = vector.shape_cast %27 : vector<128xf32> to vector<1x128xf32>
    %29 = arith.addf %25, %28 : vector<1x128xf32>
    %c0_16 = arith.constant 0 : index
    %c0_17 = arith.constant 0 : index
    %30 = vector.load %arg7[%c0_16, %c0_17] : memref<1x128xf32, #tpu.memory_space<vmem>>, vector<1x128xf32>
    tpu.vector_store %arg7[%c0_16, %c0_17], %29 {strides = array<i32>} : memref<1x128xf32, #tpu.memory_space<vmem>>, vector<1x128xf32>,
    %c0_18 = arith.constant 0 : index
    %c0_19 = arith.constant 0 : index
    %31 = vector.load %arg8[%c0_18, %c0_19] : memref<1x128xf32, #tpu.memory_space<vmem>>, vector<1x128xf32>
    %cst_20 = arith.constant dense<0.000000e+00> : vector<128xf32>
    %32 = vector.multi_reduction <add>, %23, %cst_20 [0] : vector<64x128xf32> to vector<128xf32>
    %33 = vector.shape_cast %32 : vector<128xf32> to vector<1x128xf32>
    %34 = arith.addf %31, %33 : vector<1x128xf32>
    %c0_21 = arith.constant 0 : index
    %c0_22 = arith.constant 0 : index
    %35 = vector.load %arg8[%c0_21, %c0_22] : memref<1x128xf32, #tpu.memory_space<vmem>>, vector<1x128xf32>
    tpu.vector_store %arg8[%c0_21, %c0_22], %34 {strides = array<i32>} : memref<1x128xf32, #tpu.memory_space<vmem>>, vector<1x128xf32>,
    %c0_23 = arith.constant 0 : index
    %c0_24 = arith.constant 0 : index
    %36 = vector.load %arg9[%c0_23, %c0_24] : memref<1x128xf32, #tpu.memory_space<vmem>>, vector<1x128xf32>
    %cst_25 = arith.constant dense<0.000000e+00> : vector<128xf32>
    %37 = vector.multi_reduction <add>, %12, %cst_25 [0] : vector<64x128xf32> to vector<128xf32>
    %38 = vector.shape_cast %37 : vector<128xf32> to vector<1x128xf32>
    %39 = arith.addf %36, %38 : vector<1x128xf32>
    %c0_26 = arith.constant 0 : index
    %c0_27 = arith.constant 0 : index
    %40 = vector.load %arg9[%c0_26, %c0_27] : memref<1x128xf32, #tpu.memory_space<vmem>>, vector<1x128xf32>
    tpu.vector_store %arg9[%c0_26, %c0_27], %39 {strides = array<i32>} : memref<1x128xf32, #tpu.memory_space<vmem>>, vector<1x128xf32>,
    %c0_28 = arith.constant 0 : index
    %c0_29 = arith.constant 0 : index
    %41 = vector.load %arg10[%c0_28, %c0_29] : memref<1x128xf32, #tpu.memory_space<vmem>>, vector<1x128xf32>
    %42 = arith.mulf %24, %22 : vector<64x128xf32>
    %cst_30 = arith.constant dense<0.000000e+00> : vector<128xf32>
    %43 = vector.multi_reduction <add>, %42, %cst_30 [0] : vector<64x128xf32> to vector<128xf32>
    %44 = vector.shape_cast %43 : vector<128xf32> to vector<1x128xf32>
    %45 = arith.addf %41, %44 : vector<1x128xf32>
    %c0_31 = arith.constant 0 : index
    %c0_32 = arith.constant 0 : index
    %46 = vector.load %arg10[%c0_31, %c0_32] : memref<1x128xf32, #tpu.memory_space<vmem>>, vector<1x128xf32>
    tpu.vector_store %arg10[%c0_31, %c0_32], %45 {strides = array<i32>} : memref<1x128xf32, #tpu.memory_space<vmem>>, vector<1x128xf32>,
    %c0_33 = arith.constant 0 : index
    %c0_34 = arith.constant 0 : index
    %47 = vector.load %arg11[%c0_33, %c0_34] : memref<1x128xf32, #tpu.memory_space<vmem>>, vector<1x128xf32>
    %cst_35 = arith.constant dense<0.000000e+00> : vector<128xf32>
    %48 = vector.multi_reduction <add>, %24, %cst_35 [0] : vector<64x128xf32> to vector<128xf32>
    %49 = vector.shape_cast %48 : vector<128xf32> to vector<1x128xf32>
    %50 = arith.addf %47, %49 : vector<1x128xf32>
    %c0_36 = arith.constant 0 : index
    %c0_37 = arith.constant 0 : index
    %51 = vector.load %arg11[%c0_36, %c0_37] : memref<1x128xf32, #tpu.memory_space<vmem>>, vector<1x128xf32>
    tpu.vector_store %arg11[%c0_36, %c0_37], %50 {strides = array<i32>} : memref<1x128xf32, #tpu.memory_space<vmem>>, vector<1x128xf32>,
    %c0_38 = arith.constant 0 : index
    %c0_39 = arith.constant 0 : index
    %52 = vector.load %arg12[%c0_38, %c0_39] : memref<1x128xf32, #tpu.memory_space<vmem>>, vector<1x128xf32>
    %cst_40 = arith.constant dense<0.000000e+00> : vector<128xf32>
    %53 = vector.multi_reduction <add>, %22, %cst_40 [0] : vector<64x128xf32> to vector<128xf32>
    %54 = vector.shape_cast %53 : vector<128xf32> to vector<1x128xf32>
    %55 = arith.addf %52, %54 : vector<1x128xf32>
    %c0_41 = arith.constant 0 : index
    %c0_42 = arith.constant 0 : index
    %56 = vector.load %arg12[%c0_41, %c0_42] : memref<1x128xf32, #tpu.memory_space<vmem>>, vector<1x128xf32>
    tpu.vector_store %arg12[%c0_41, %c0_42], %55 {strides = array<i32>} : memref<1x128xf32, #tpu.memory_space<vmem>>, vector<1x128xf32>,
    %c0_i32_43 = arith.constant 0 : i32
    %57 = arith.cmpi eq, %arg1, %c0_i32_43 : i32
    %58 = arith.extui %57 : i1 to i32
    %c0_i32_44 = arith.constant 0 : i32
    %59 = arith.cmpi ne, %58, %c0_i32_44 : i32
    scf.if %59 {
      %c0_45 = arith.constant 0 : index
      %c0_46 = arith.constant 0 : index
      %60 = vector.load %arg7[%c0_45, %c0_46] : memref<1x128xf32, #tpu.memory_space<vmem>>, vector<1x128xf32>
      %c0_47 = arith.constant 0 : index
      %c0_48 = arith.constant 0 : index
      %c0_49 = arith.constant 0 : index
      %61 = vector.load %arg6[%c0_47, %c0_48, %c0_49] : memref<1x6x128xf32, #tpu.memory_space<vmem>>, vector<1x1x128xf32>
      %62 = vector.shape_cast %61 : vector<1x1x128xf32> to vector<1x128xf32>
      %63 = vector.shape_cast %60 : vector<1x128xf32> to vector<1x1x128xf32>
      tpu.vector_store %arg6[%c0_47, %c0_48, %c0_49], %63 {strides = array<i32>} : memref<1x6x128xf32, #tpu.memory_space<vmem>>, vector<1x1x128xf32>,
      %c0_50 = arith.constant 0 : index
      %c0_51 = arith.constant 0 : index
      %64 = vector.load %arg8[%c0_50, %c0_51] : memref<1x128xf32, #tpu.memory_space<vmem>>, vector<1x128xf32>
      %c0_52 = arith.constant 0 : index
      %c1 = arith.constant 1 : index
      %c0_53 = arith.constant 0 : index
      %65 = vector.load %arg6[%c0_52, %c1, %c0_53] : memref<1x6x128xf32, #tpu.memory_space<vmem>>, vector<1x1x128xf32>
      %66 = vector.shape_cast %65 : vector<1x1x128xf32> to vector<1x128xf32>
      %67 = vector.shape_cast %64 : vector<1x128xf32> to vector<1x1x128xf32>
      tpu.vector_store %arg6[%c0_52, %c1, %c0_53], %67 {strides = array<i32>} : memref<1x6x128xf32, #tpu.memory_space<vmem>>, vector<1x1x128xf32>,
      %c0_54 = arith.constant 0 : index
      %c0_55 = arith.constant 0 : index
      %68 = vector.load %arg9[%c0_54, %c0_55] : memref<1x128xf32, #tpu.memory_space<vmem>>, vector<1x128xf32>
      %c0_56 = arith.constant 0 : index
      %c2 = arith.constant 2 : index
      %c0_57 = arith.constant 0 : index
      %69 = vector.load %arg6[%c0_56, %c2, %c0_57] : memref<1x6x128xf32, #tpu.memory_space<vmem>>, vector<1x1x128xf32>
      %70 = vector.shape_cast %69 : vector<1x1x128xf32> to vector<1x128xf32>
      %71 = vector.shape_cast %68 : vector<1x128xf32> to vector<1x1x128xf32>
      tpu.vector_store %arg6[%c0_56, %c2, %c0_57], %71 {strides = array<i32>} : memref<1x6x128xf32, #tpu.memory_space<vmem>>, vector<1x1x128xf32>,
      %c0_58 = arith.constant 0 : index
      %c0_59 = arith.constant 0 : index
      %72 = vector.load %arg10[%c0_58, %c0_59] : memref<1x128xf32, #tpu.memory_space<vmem>>, vector<1x128xf32>
      %c0_60 = arith.constant 0 : index
      %c3 = arith.constant 3 : index
      %c0_61 = arith.constant 0 : index
      %73 = vector.load %arg6[%c0_60, %c3, %c0_61] : memref<1x6x128xf32, #tpu.memory_space<vmem>>, vector<1x1x128xf32>
      %74 = vector.shape_cast %73 : vector<1x1x128xf32> to vector<1x128xf32>
      %75 = vector.shape_cast %72 : vector<1x128xf32> to vector<1x1x128xf32>
      tpu.vector_store %arg6[%c0_60, %c3, %c0_61], %75 {strides = array<i32>} : memref<1x6x128xf32, #tpu.memory_space<vmem>>, vector<1x1x128xf32>,
      %c0_62 = arith.constant 0 : index
      %c0_63 = arith.constant 0 : index
      %76 = vector.load %arg11[%c0_62, %c0_63] : memref<1x128xf32, #tpu.memory_space<vmem>>, vector<1x128xf32>
      %c0_64 = arith.constant 0 : index
      %c4 = arith.constant 4 : index
      %c0_65 = arith.constant 0 : index
      %77 = vector.load %arg6[%c0_64, %c4, %c0_65] : memref<1x6x128xf32, #tpu.memory_space<vmem>>, vector<1x1x128xf32>
      %78 = vector.shape_cast %77 : vector<1x1x128xf32> to vector<1x128xf32>
      %79 = vector.shape_cast %76 : vector<1x128xf32> to vector<1x1x128xf32>
      tpu.vector_store %arg6[%c0_64, %c4, %c0_65], %79 {strides = array<i32>} : memref<1x6x128xf32, #tpu.memory_space<vmem>>, vector<1x1x128xf32>,
      %c0_66 = arith.constant 0 : index
      %c0_67 = arith.constant 0 : index
      %80 = vector.load %arg12[%c0_66, %c0_67] : memref<1x128xf32, #tpu.memory_space<vmem>>, vector<1x128xf32>
      %c0_68 = arith.constant 0 : index
      %c5 = arith.constant 5 : index
      %c0_69 = arith.constant 0 : index
      %81 = vector.load %arg6[%c0_68, %c5, %c0_69] : memref<1x6x128xf32, #tpu.memory_space<vmem>>, vector<1x1x128xf32>
      %82 = vector.shape_cast %81 : vector<1x1x128xf32> to vector<1x128xf32>
      %83 = vector.shape_cast %80 : vector<1x128xf32> to vector<1x1x128xf32>
      tpu.vector_store %arg6[%c0_68, %c5, %c0_69], %83 {strides = array<i32>} : memref<1x6x128xf32, #tpu.memory_space<vmem>>, vector<1x1x128xf32>,
    } else {
    }
    return
  }
  func.func @transform_0(%arg0: i32, %arg1: i32) -> (i32, i32) {
    %c1_i32 = arith.constant 1 : i32
    %0 = arith.muli %arg0, %c1_i32 : i32
    %1 = arith.addi %0, %arg1 : i32
    %c0_i32 = arith.constant 0 : i32
    %c0_i32_0 = arith.constant 0 : i32
    return %1, %c0_i32 : i32, i32
  }
  func.func @transform_1(%arg0: i32, %arg1: i32) -> (i32, i32) {
    %c1_i32 = arith.constant 1 : i32
    %0 = arith.muli %arg0, %c1_i32 : i32
    %1 = arith.addi %0, %arg1 : i32
    %c0_i32 = arith.constant 0 : i32
    %c0_i32_0 = arith.constant 0 : i32
    return %1, %c0_i32 : i32, i32
  }
  func.func @transform_2(%arg0: i32, %arg1: i32) -> (i32, i32) {
    %c1_i32 = arith.constant 1 : i32
    %0 = arith.muli %arg0, %c1_i32 : i32
    %1 = arith.addi %0, %arg1 : i32
    %c0_i32 = arith.constant 0 : i32
    %c0_i32_0 = arith.constant 0 : i32
    return %1, %c0_i32 : i32, i32
  }
  func.func @transform_3(%arg0: i32, %arg1: i32) -> (i32, i32) {
    %c1_i32 = arith.constant 1 : i32
    %0 = arith.muli %arg0, %c1_i32 : i32
    %1 = arith.addi %0, %arg1 : i32
    %c0_i32 = arith.constant 0 : i32
    %c0_i32_0 = arith.constant 0 : i32
    return %1, %c0_i32 : i32, i32
  }
  func.func @transform_4(%arg0: i32, %arg1: i32) -> (i32, i32, i32) {
    %c0_i32 = arith.constant 0 : i32
    %c0_i32_0 = arith.constant 0 : i32
    %c0_i32_1 = arith.constant 0 : i32
    return %arg0, %c0_i32, %c0_i32_0 : i32, i32, i32
  }
}

</mosaic_0001>

<bundles_post_ra>
// kernel: siamese_forward.3
= control target key start
LH: loop header
LB: loop body
LE: loop exit
PB: predicated region body
PF: predicated region fallthrough
CT: control target
= control target key end

     0   :  { %v527_v0 = vmov 0.0   ;;  %s731_s0 = inlined_call_operand.vmem [shape: f32[64,128], index: 0, kind: input, shape index: {}]   ;;  %s732_s1 = inlined_call_operand.vmem [shape: f32[64,128], index: 1, kind: input, shape index: {}]   ;;  %s733_s2 = inlined_call_operand.vmem [shape: f32[64,128], index: 2, kind: input, shape index: {}]   ;;  %s734_s3 = inlined_call_operand.vmem [shape: f32[64,128], index: 3, kind: input, shape index: {}]   ;;  %s735_s4 = inlined_call_operand.vmem [shape: f32[1,6,128], index: 4, kind: output, shape index: {}]  }
   0x1   :  { %109 = vst [vmem:[#allocation2] sm:$0x1] %v527_v0  ;;  %110 = vst [vmem:[#allocation3] sm:$0x1] %v527_v0  ;;  %v115_v1 = vld [vmem:[%s731_s0] sm:$0xff]  ;;  %v116_v2 = vld [vmem:[%s731_s0 + $0x8] sm:$0xff] }
   0x2   :  { %111 = vst [vmem:[#allocation4] sm:$0x1] %v527_v0  ;;  %112 = vst [vmem:[#allocation5] sm:$0x1] %v527_v0  ;;  %v117_v3 = vld [vmem:[%s731_s0 + $0x10] sm:$0xff]  ;;  %v118_v4 = vld [vmem:[%s731_s0 + $0x18] sm:$0xff] }
   0x3   :  { %113 = vst [vmem:[#allocation6] sm:$0x1] %v527_v0  ;;  %114 = vst [vmem:[#allocation7] sm:$0x1] %v527_v0  ;;  %v119_v5 = vld [vmem:[%s731_s0 + $0x20] sm:$0xff]  ;;  %v120_v6 = vld [vmem:[%s731_s0 + $0x28] sm:$0xff] }
   0x4   :  { %v123_v7 = vmul.f32 0.5, %v115_v1  ;;  %v124_v8 = vmul.f32 0.5, %v116_v2  ;;  %v125_v9 = vmul.f32 0.5, %v117_v3  ;;  %v121_v10 = vld [vmem:[%s731_s0 + $0x30] sm:$0xff]  ;;  %v122_v11 = vld [vmem:[%s731_s0 + $0x38] sm:$0xff]  ;;  %v126_v12 = vmul.f32 0.5, %v118_v4 }
   0x5   :  { %v127_v13 = vmul.f32 0.5, %v119_v5  ;;  %v128_v14 = vmul.f32 0.5, %v120_v6  ;;  %v129_v15 = vmul.f32 0.5, %v121_v10  ;;  %v130_v16 = vmul.f32 0.5, %v122_v11  ;;  %v580_v30 = vld [vmem:[%s732_s1] sm:$0xff]  ;;  %v585_v31 = vld [vmem:[%s732_s1 + $0x8] sm:$0xff] }
   0x6   :  { %v430_v17 = vadd.f32 -0.1, %v123_v7  ;;  %v431_v18 = vadd.f32 -0.1, %v124_v8  ;;  %v432_v19 = vadd.f32 -0.1, %v125_v9  ;;  %v300_v33 = vadd.f32 %v585_v31, %v580_v30 }
   0x7   :  { %v433_v20 = vadd.f32 -0.1, %v126_v12  ;;  %v434_v21 = vadd.f32 -0.1, %v127_v13  ;;  %v435_v22 = vadd.f32 -0.1, %v128_v14 }
   0x8   :  { %v436_v23 = vadd.f32 -0.1, %v129_v15  ;;  %v438_v24 = vmul.f32 -1.442695, %v430_v17  ;;  %v439_v25 = vmul.f32 -1.442695, %v431_v18 }
   0x9   :  { %v440_v26 = vmul.f32 -1.442695, %v432_v19  ;;  %v437_v27 = vadd.f32 -0.1, %v130_v16  ;;  %v441_v28 = vmul.f32 -1.442695, %v433_v20 }
   0xa   :  { %463 = vpow2.f32 %v438_v24  ;;  %v442_v29 = vmul.f32 -1.442695, %v434_v21  ;;  %v443_v32 = vmul.f32 -1.442695, %v435_v22  ;;  %v444_v34 = vmul.f32 -1.442695, %v436_v23 }
   0xb   :  { %465 = vpow2.f32 %v439_v25  ;;  %v592_v35 = vld [vmem:[%s732_s1 + $0x10] sm:$0xff]  ;;  %v445_v36 = vmul.f32 -1.442695, %v437_v27  ;;  %v187_v38 = vld [vmem:[%s733_s2] sm:$0xff]  ;;  %v601_v39 = vld [vmem:[%s732_s1 + $0x18] sm:$0xff] }
   0xc   :  { %467 = vpow2.f32 %v440_v26  ;;  %v301_v37 = vadd.f32 %v300_v33, %v592_v35  ;;  %v195_v40 = vmul.f32 0.5, %v187_v38  ;;  %v606_v41 = vld [vmem:[%s732_s1 + $0x20] sm:$0xff]  ;;  %v188_v43 = vld [vmem:[%s733_s2 + $0x8] sm:$0xff]  ;;  %v189_v44 = vld [vmem:[%s733_s2 + $0x10] sm:$0xff] }
   0xd   :  { %469 = vpow2.f32 %v441_v28  ;;  %v190_v45 = vld [vmem:[%s733_s2 + $0x18] sm:$0xff]  ;;  %v191_v46 = vld [vmem:[%s733_s2 + $0x20] sm:$0xff]  ;;  %v192_v48 = vld [vmem:[%s733_s2 + $0x28] sm:$0xff]  ;;  %v196_v53 = vmul.f32 0.5, %v188_v43  ;;  %v197_v59 = vmul.f32 0.5, %v189_v44 }
   0xe   :  { %471 = vpow2.f32 %v442_v29  ;;  %v302_v42 = vadd.f32 %v301_v37, %v601_v39  ;;  %v628_v49 = vld [vmem:[%s734_s3] sm:$0xff]  ;;  %v633_v50 = vld [vmem:[%s734_s3 + $0x8] sm:$0xff]  ;;  %v193_v52 = vld [vmem:[%s733_s2 + $0x30] sm:$0xff]  ;;  %v446_v54 = vadd.f32 -0.1, %v195_v40  ;;  %v198_v61 = vmul.f32 0.5, %v190_v45 }
   0xf   :  { %473 = vpow2.f32 %v443_v32  ;;  %v638_v51 = vld [vmem:[%s732_s1 + $0x28] sm:$0xff]  ;;  %v356_v55 = vadd.f32 %v633_v50, %v628_v49  ;;  %v648_v56 = vld [vmem:[%s732_s1 + $0x30] sm:$0xff]  ;;  %v194_v58 = vld [vmem:[%s733_s2 + $0x38] sm:$0xff]  ;;  %v199_v62 = vmul.f32 0.5, %v191_v46  ;;  %v200_v63 = vmul.f32 0.5, %v192_v48 }
  0x10   :  { %475 = vpow2.f32 %v444_v34  ;;  %v303_v47 = vadd.f32 %v302_v42, %v606_v41  ;;  %v454_v0 = vmul.f32 -1.442695, %v446_v54  ;;  %v657_v1 = vld [vmem:[%s734_s3 + $0x10] sm:$0xff]  ;;  %v201_v5 = vmul.f32 0.5, %v193_v52  ;;  %v664_v9 = vld [vmem:[%s732_s1 + $0x38] sm:$0xff]  ;;  %v676_v29 = vld [vmem:[%s734_s3 + $0x20] sm:$0xff] }
  0x11   :  { %477 = vpow2.f32 %v445_v36  ;;  %v357_v6 = vadd.f32 %v356_v55, %v657_v1  ;;  %v202_v10 = vmul.f32 0.5, %v194_v58  ;;  %v447_v11 = vadd.f32 -0.1, %v196_v53  ;;  %v670_v20 = vld [vmem:[%s734_s3 + $0x18] sm:$0xff]  ;;  %v682_v42 = vld [vmem:[%s734_s3 + $0x28] sm:$0xff]  ;;  %v688_v48 = vld [vmem:[%s734_s3 + $0x30] sm:$0xff] }
  0x12   :  { %v304_v57 = vadd.f32 %v303_v47, %v638_v51  ;;  %479 = vpow2.f32 %v454_v0  ;;  %v448_v15 = vadd.f32 -0.1, %v197_v59  ;;  %v449_v18 = vadd.f32 -0.1, %v198_v61  ;;  %v694_v58 = vld [vmem:[%s734_s3 + $0x38] sm:$0xff] }
  0x13   :  { %v450_v19 = vadd.f32 -0.1, %v199_v62  ;;  %v358_v24 = vadd.f32 %v357_v6, %v670_v20  ;;  %v451_v27 = vadd.f32 -0.1, %v200_v63  ;;  %v455_v28 = vmul.f32 -1.442695, %v447_v11 }
  0x14   :  { %v464_v60 = vpop.eup %463  ;;  %v305_v4 = vadd.f32 %v304_v57, %v648_v56  ;;  %v452_v38 = vadd.f32 -0.1, %v201_v5  ;;  %v456_v40 = vmul.f32 -1.442695, %v448_v15  ;;  %v457_v44 = vmul.f32 -1.442695, %v449_v18 }
  0x15   :  { %v466_v2 = vpop.eup %465  ;;  %v163_v3 = vadd.f32 1.0, %v464_v60  ;;  %v359_v36 = vadd.f32 %v358_v24, %v676_v29  ;;  %v453_v46 = vadd.f32 -0.1, %v202_v10  ;;  %v458_v47 = vmul.f32 -1.442695, %v450_v19 }
  0x16   :  { %v468_v7 = vpop.eup %467  ;;  %v164_v8 = vadd.f32 1.0, %v466_v2  ;;  %v306_v14 = vadd.f32 %v305_v4, %v664_v9  ;;  %v459_v53 = vmul.f32 -1.442695, %v451_v27  ;;  %v460_v57 = vmul.f32 -1.442695, %v452_v38 }
  0x17   :  { %v470_v12 = vpop.eup %469  ;;  %v165_v13 = vadd.f32 1.0, %v468_v7  ;;  %481 = vrcp.f32 %v163_v3  ;;  %v360_v45 = vadd.f32 %v359_v36, %v682_v42  ;;  %v299_v0 = vld [vmem:[#allocation3] sm:$0x1]  ;;  %v461_v2 = vmul.f32 -1.442695, %v453_v46 }
  0x18   :  { %v472_v16 = vpop.eup %471  ;;  %v166_v17 = vadd.f32 1.0, %v470_v12  ;;  %483 = vrcp.f32 %v164_v8  ;;  %v307_v23 = vrot.slane %v306_v14, 4 }
  0x19   :  { %v474_v21 = vpop.eup %473  ;;  %v167_v22 = vadd.f32 1.0, %v472_v16  ;;  %485 = vrcp.f32 %v165_v13  ;;  %v361_v54 = vadd.f32 %v360_v45, %v688_v48 }
  0x1a   :  { %v476_v25 = vpop.eup %475  ;;  %v168_v26 = vadd.f32 1.0, %v474_v21  ;;  %487 = vrcp.f32 %v166_v17  ;;  %v308_v34 = vadd.f32 %v307_v23, %v306_v14 }
  0x1b   :  { %v478_v32 = vpop.eup %477  ;;  %v169_v33 = vadd.f32 1.0, %v476_v25  ;;  %489 = vrcp.f32 %v167_v22  ;;  %v362_v61 = vadd.f32 %v361_v54, %v694_v58 }
  0x1c   :  { %v170_v37 = vadd.f32 1.0, %v478_v32  ;;  %491 = vrcp.f32 %v168_v26  ;;  %v309_v43 = vrot.slane %v308_v34, 2  ;;  %v480_v55 = vpop.eup %479 }
  0x1d   :  { %493 = vrcp.f32 %v169_v33  ;;  %v235_v10 = vadd.f32 1.0, %v480_v55  ;;  %v363_v11 = vrot.slane %v362_v61, 4 }
  0x1e   :  { %495 = vrcp.f32 %v170_v37  ;;  %v310_v52 = vadd.f32 %v309_v43, %v308_v34 }
  0x1f   :  { %497 = vpow2.f32 %v455_v28  ;;  %v364_v17 = vadd.f32 %v363_v11, %v362_v61 }
  0x20   :  { %499 = vpow2.f32 %v456_v40  ;;  %v311_v60 = vrot.slane %v310_v52, 1 }
  0x21   :  { %v482_v59 = vpop.eup %481  ;;  %501 = vpow2.f32 %v457_v44 }
  0x22   :  { %v484_v62 = vpop.eup %483  ;;  %v276_v63 = vmul.f32 %v482_v59, %v580_v30  ;;  %503 = vpow2.f32 %v458_v47  ;;  %v312_v5 = vadd.f32 %v311_v60, %v310_v52  ;;  %v355_v47 = vld [vmem:[#allocation6] sm:$0x1] }
  0x23   :  { %v486_v3 = vpop.eup %485  ;;  %v277_v4 = vmul.f32 %v484_v62, %v585_v31  ;;  %v316_v6 = vadd.f32 %v484_v62, %v482_v59  ;;  %505 = vpow2.f32 %v459_v53 }
  0x24   :  { %v488_v7 = vpop.eup %487  ;;  %v278_v8 = vmul.f32 %v486_v3, %v592_v35  ;;  %507 = vpow2.f32 %v460_v57  ;;  %v313_v30 = vadd.f32 %v312_v5, %v299_v0  ;;  %v365_v35 = vrot.slane %v364_v17, 2 }
  0x25   :  { %v490_v12 = vpop.eup %489  ;;  %v279_v13 = vmul.f32 %v488_v7, %v601_v39  ;;  %v284_v14 = vadd.f32 %v277_v4, %v276_v63  ;;  %v317_v15 = vadd.f32 %v486_v3, %v316_v6  ;;  %509 = vpow2.f32 %v461_v2 }
  0x26   :  { %v492_v16 = vpop.eup %491  ;;  %v280_v31 = vmul.f32 %v490_v12, %v606_v41  ;;  %314 = vst [vmem:[#allocation3] sm:$0x1] %v313_v30  ;;  %511 = vrcp.f32 %v235_v10  ;;  %v366_v28 = vadd.f32 %v365_v35, %v364_v17 }
  0x27   :  { %v494_v18 = vpop.eup %493  ;;  %v285_v19 = vadd.f32 %v284_v14, %v278_v8  ;;  %v318_v21 = vadd.f32 %v488_v7, %v317_v15  ;;  %v281_v24 = vmul.f32 %v492_v16, %v638_v51 }
  0x28   :  { %v496_v22 = vpop.eup %495  ;;  %v282_v33 = vmul.f32 %v494_v18, %v648_v56  ;;  %v367_v43 = vrot.slane %v366_v28, 1 }
  0x29   :  { %v498_v23 = vpop.eup %497  ;;  %v286_v25 = vadd.f32 %v285_v19, %v279_v13  ;;  %v319_v39 = vadd.f32 %v490_v12, %v318_v21  ;;  %v283_v38 = vmul.f32 %v496_v22, %v664_v9 }
  0x2a   :  { %v500_v26 = vpop.eup %499  ;;  %v236_v27 = vadd.f32 1.0, %v498_v23  ;;  %v368_v54 = vadd.f32 %v367_v43, %v366_v28 }
  0x2b   :  { %v502_v32 = vpop.eup %501  ;;  %v287_v34 = vadd.f32 %v286_v25, %v280_v31  ;;  %v320_v36 = vadd.f32 %v492_v16, %v319_v39  ;;  %v237_v41 = vadd.f32 1.0, %v500_v26  ;;  %v275_v25 = vld [vmem:[#allocation2] sm:$0x1] }
  0x2c   :  { %v504_v37 = vpop.eup %503  ;;  %v238_v40 = vadd.f32 1.0, %v502_v32  ;;  %513 = vrcp.f32 %v236_v27  ;;  %v369_v60 = vadd.f32 %v368_v54, %v355_v47 }
  0x2d   :  { %v506_v44 = vpop.eup %505  ;;  %v288_v45 = vadd.f32 %v287_v34, %v281_v24  ;;  %v321_v51 = vadd.f32 %v494_v18, %v320_v36  ;;  %v239_v46 = vadd.f32 1.0, %v504_v37  ;;  %515 = vrcp.f32 %v237_v41  ;;  %v392_v56 = vld [vmem:[#allocation3] sm:$0x1] }
  0x2e   :  { %v508_v52 = vpop.eup %507  ;;  %v240_v53 = vadd.f32 1.0, %v506_v44  ;;  %517 = vrcp.f32 %v238_v40  ;;  %393 = vst [vmem:[%s735_s4 + $0x1] sm:$0x1] %v392_v56  ;;  %370 = vst [vmem:[#allocation6] sm:$0x1] %v369_v60 }
  0x2f   :  { %v289_v55 = vadd.f32 %v288_v45, %v282_v33  ;;  %v322_v57 = vadd.f32 %v496_v22, %v321_v51  ;;  %v241_v59 = vadd.f32 1.0, %v508_v52  ;;  %519 = vrcp.f32 %v239_v46  ;;  %v510_v9 = vpop.eup %509  ;;  %v315_v22 = vld [vmem:[#allocation4] sm:$0x1] }
  0x30   :  { %521 = vrcp.f32 %v240_v53  ;;  %v242_v63 = vadd.f32 1.0, %v510_v9  ;;  %v512_v0 = vpop.eup %511  ;;  %v331_v9 = vld [vmem:[#allocation5] sm:$0x1] }
  0x31   :  { %v290_v61 = vadd.f32 %v289_v55, %v283_v38  ;;  %v323_v62 = vrot.slane %v322_v57, 4  ;;  %523 = vrcp.f32 %v241_v59  ;;  %v332_v6 = vmul.f32 %v512_v0, %v628_v49  ;;  %v371_v59 = vld [vmem:[#allocation7] sm:$0x1] }
  0x32   :  { %525 = vrcp.f32 %v242_v63 }
  0x33   :  { %v291_v2 = vrot.slane %v290_v61, 4  ;;  %v324_v3 = vadd.f32 %v323_v62, %v322_v57 }
  0x35   :  { %v292_v4 = vadd.f32 %v291_v2, %v290_v61  ;;  %v325_v5 = vrot.slane %v324_v3, 2  ;;  %v398_v19 = vld [vmem:[#allocation6] sm:$0x1] }
  0x36   :  { %v514_v7 = vpop.eup %513  ;;  %399 = vst [vmem:[%s735_s4 + $0x4] sm:$0x1] %v398_v19 }
  0x37   :  { %v516_v8 = vpop.eup %515  ;;  %v293_v10 = vrot.slane %v292_v4, 2  ;;  %v326_v11 = vadd.f32 %v325_v5, %v324_v3  ;;  %v333_v12 = vmul.f32 %v514_v7, %v633_v50  ;;  %v372_v13 = vadd.f32 %v514_v7, %v512_v0 }
  0x38   :  { %v518_v14 = vpop.eup %517  ;;  %v334_v30 = vmul.f32 %v516_v8, %v657_v1 }
  0x39   :  { %v520_v15 = vpop.eup %519  ;;  %v294_v16 = vadd.f32 %v293_v10, %v292_v4  ;;  %v327_v17 = vrot.slane %v326_v11, 1  ;;  %v335_v18 = vmul.f32 %v518_v14, %v670_v20  ;;  %v340_v31 = vadd.f32 %v333_v12, %v332_v6 }
  0x3a   :  { %v522_v21 = vpop.eup %521  ;;  %v373_v49 = vadd.f32 %v516_v8, %v372_v13  ;;  %v336_v23 = vmul.f32 %v520_v15, %v676_v29 }
  0x3b   :  { %v295_v35 = vrot.slane %v294_v16, 1  ;;  %v328_v50 = vadd.f32 %v327_v17, %v326_v11  ;;  %v341_v24 = vadd.f32 %v340_v31, %v334_v30  ;;  %v524_v1 = vpop.eup %523  ;;  %v337_v20 = vmul.f32 %v522_v21, %v682_v42 }
  0x3c   :  { %v374_v39 = vadd.f32 %v518_v14, %v373_v49  ;;  %v526_v32 = vpop.eup %525  ;;  %v338_v36 = vmul.f32 %v524_v1, %v688_v48 }
  0x3d   :  { %v296_v26 = vadd.f32 %v295_v35, %v294_v16  ;;  %v329_v27 = vadd.f32 %v328_v50, %v315_v22  ;;  %v342_v28 = vadd.f32 %v341_v24, %v335_v18  ;;  %v339_v29 = vmul.f32 %v526_v32, %v694_v58 }
  0x3e   :  { %v375_v33 = vadd.f32 %v520_v15, %v374_v39 }
  0x3f   :  { %v297_v34 = vadd.f32 %v296_v26, %v275_v25  ;;  %330 = vst [vmem:[#allocation4] sm:$0x1] %v329_v27  ;;  %v343_v41 = vadd.f32 %v342_v28, %v336_v23 }
  0x40   :  { %v376_v37 = vadd.f32 %v522_v21, %v375_v33 }
  0x41   :  { %298 = vst [vmem:[#allocation2] sm:$0x1] %v297_v34  ;;  %v344_v38 = vadd.f32 %v343_v41, %v337_v20 }
  0x42   :  { %v377_v40 = vadd.f32 %v524_v1, %v376_v37 }
  0x43   :  { %v345_v43 = vadd.f32 %v344_v38, %v338_v36 }
  0x44   :  { %v378_v44 = vadd.f32 %v526_v32, %v377_v40 }
  0x45   :  { %v346_v45 = vadd.f32 %v345_v43, %v339_v29 }
  0x46   :  { %v379_v51 = vrot.slane %v378_v44, 4  ;;  %v394_v46 = vld [vmem:[#allocation4] sm:$0x1] }
  0x47   :  { %v347_v42 = vrot.slane %v346_v45, 4  ;;  %395 = vst [vmem:[%s735_s4 + $0x2] sm:$0x1] %v394_v46 }
  0x48   :  { %v380_v47 = vadd.f32 %v379_v51, %v378_v44  ;;  %v390_v52 = vld [vmem:[#allocation2] sm:$0x1] }
  0x49   :  { %v348_v48 = vadd.f32 %v347_v42, %v346_v45  ;;  %391 = vst [vmem:[%s735_s4] sm:$0x1] %v390_v52 }
  0x4a   :  { %v381_v58 = vrot.slane %v380_v47, 2 }
  0x4b   :  { %v349_v53 = vrot.slane %v348_v48, 2 }
  0x4c   :  { %v382_v54 = vadd.f32 %v381_v58, %v380_v47 }
  0x4d   :  { %v350_v56 = vadd.f32 %v349_v53, %v348_v48 }
  0x4e   :  { %v383_v55 = vrot.slane %v382_v54, 1 }
  0x4f   :  { %v351_v57 = vrot.slane %v350_v56, 1 }
  0x50   :  { %v384_v60 = vadd.f32 %v383_v55, %v382_v54 }
  0x51   :  { %v352_v61 = vadd.f32 %v351_v57, %v350_v56 }
  0x52   :  { %v385_v62 = vadd.f32 %v384_v60, %v371_v59 }
  0x53   :  { %v353_v63 = vadd.f32 %v352_v61, %v331_v9 }
  0x54   :  { %386 = vst [vmem:[#allocation7] sm:$0x1] %v385_v62 }
  0x55   :  { %354 = vst [vmem:[#allocation5] sm:$0x1] %v353_v63 }
  0x5b   :  { %v400_v0 = vld [vmem:[#allocation7] sm:$0x1] }
  0x5c   :  { %v396_v2 = vld [vmem:[#allocation5] sm:$0x1]  ;;  %401 = vst [vmem:[%s735_s4 + $0x5] sm:$0x1] %v400_v0 }
  0x5d   :  { %397 = vst [vmem:[%s735_s4 + $0x3] sm:$0x1] %v396_v2 }

// kernel: siamese_forward.2
= control target key start
LH: loop header
LB: loop body
LE: loop exit
PB: predicated region body
PF: predicated region fallthrough
CT: control target
= control target key end

     0   :  { %8 = vsyncpa [#allocation4], 0  ;;  %s6744_s0 = inlined_call_operand.vmem [shape: bf16[4,4096], index: 0, kind: input, shape index: {}]   ;;  %s6745_s1 = inlined_call_operand.hbm [shape: bf16[4096,512], index: 1, kind: input, shape index: {}]   ;;  %s6746_s2 = inlined_call_operand.hbm [shape: f32[1,512], index: 2, kind: input, shape index: {}]   ;;  %s6747_s3 = inlined_call_operand.vmem [shape: f32[2,2,1], index: 3, kind: output, shape index: {}]  }
   0x1   :  { %10 = vsyncpa [#allocation4 + $0x1], 0 }
   0x2   :  { %11 = vsyncpa [#allocation6], 0 }
   0x3   :  { %13 = vsyncpa [#allocation6 + $0x1], 0  ;;  %s5914_s12 = smov 0   ;;  %s5916_s13 = smov 0  }
   0x4   :  { %s5918_s14 = smov 0   ;;  %s5920_s15 = smov 0  }
   0x5   :  { %s5922_s16 = smov 0   ;;  %s5924_s17 = smov 0  }
   0x6 LB: > { %s4342_s18 = sadd.s32 4294967295, %s5886_s17   ;;  %s31_s19 = sadd.s32 1, %s5882_s16  ;;  %s5886_s17 = sphi %s5924_s17, %s19_s17   ;;  %s5882_s16 = sphi %s5922_s16, %s6760_s16   ;;  %s5878_s15 = sphi %s5920_s15, %s6759_s15   ;;  %s5874_s14 = sphi %s5918_s14, %s6758_s14   ;;  %s5870_s13 = sphi %s5916_s13, %s6757_s13   ;;  %s5866_s12 = sphi %s5914_s12, %s6756_s12  }
   0x7   : > { %p33_p0 = scmp.ge.s32.totalorder %s31_s19, 2  ;;  %s66_s20 = sadd.s32 1, %s5874_s14 }
   0x8   : > { %p73_p1 = scmp.ne.s32.totalorder %s5874_s14, %s5870_s13  ;;  %p74_p2 = scmp.eq.s32.totalorder %s5886_s17, 0 }
   0x9   : > { %s6762_s19 = smov (%p33_p0, %s31_s19), 0  ;;  %p79_p4 = scmp.ne.s32.totalorder %s5870_s13, %s5866_s12 }
   0xa   : > { %p5950_p3 = por %p74_p2, %p73_p1  ;;  %s62_s22 = ssub.s32 %s5882_s16, %s6762_s19 }
   0xb   : > { %p80_p5 = scmp.eq.s32.totalorder %s4342_s18, 0  ;;  %p64_p6 = scmp.eq.s32.totalorder %s62_s22, 0 }
   0xc   : > { %p4943_p8 = scmp.lt.s32.totalorder %s5886_s17, 2  ;;  %s5966_s25 = sand.u32 1, %s5874_s14  }
   0xd   : > { %p5957_p7 = por %p80_p5, %p79_p4  ;;  %s4872_s26 = sshll.u32 %s5882_s16, 7 }
   0xe   : > { %s5963_s24 = scalar_select %p64_p6, %s5874_s14, %s66_s20  }
   0xf   : > { %s6750_s23 = scalar_select %p5957_p7, 1, 0 }
  0x10   : > { %s4347_s27 = sshll.u32 %s5966_s25, 12  ;;  %s5973_s30 = scalar_lea.hbm %s6745_s1, %s4872_s26 }
  0x11   : > { %s168_s4 = scalar_lea.vmem [#allocation3], %s4347_s27  ;;  %p5977_p9 = pnand %p4943_p8, %p5950_p3 }
  0x12   : > { %s178_s5 = sshll.u32 %s168_s4, 4  ;;  %s165_s7 = scalar_lea.sflag [#allocation4], %s5966_s25  ;;  %s5981_s5 = int_to_ptr.vmem [resolvable:$true] %s178_s5 }
  0x13   : > { %s5772_s8 = scalar_lea.hbm %s5973_s30, 65536  ;;  %p5774_p12 = pneg %p5977_p9 }
  0x14   : > { %p5773_p11 = scmp.ne.s32.totalorder %s5973_s30, %s5772_s8  ;;  %s5777_s11 = scalar_lea.hbm %s6745_s1, 131072 }
  0x15   : > { %p5778_p1 = scmp.lt.u32.totalorder %s5973_s30, %s6745_s1  ;;  %p5779_p2 = scmp.lt.u32.totalorder %s5777_s11, %s5772_s8 }
  0x16   : > { %p5775_p13 = pnand %p5774_p12, %p5773_p11  ;;  %p5781_p4 = scmp.lt.u32.totalorder %s5772_s8, %s5973_s30 }
  0x17   : > { %p5780_p3 = por %p5779_p2, %p5778_p1 }
  0x18   : > { %p5776_p0 = pneg %p5775_p13 }
  0x19   : > { %p5782_p5 = por %p5781_p4, %p5780_p3 }
  0x1b   : > { %p5783_p6 = pnand %p5782_p5, %p5776_p0 }
  0x1d   : > { %5786 = shalt.err (!%p5783_p6)
}
  0x1e   : > { %s5787_s20 = scalar_lea.vmem %s5981_s5, 65536  ;;  %s5888_s21 = smov [#allocation3]  }
  0x1f   : > { %p5788_p8 = scmp.ne.s32.totalorder %s5981_s5, %s5787_s20  ;;  %s5792_s22 = sshll.u32 %s5888_s21, 4  ;;  %s5793_s22 = int_to_ptr.vmem [resolvable:$false] %s5792_s22 }
  0x20   : > { %s5794_s26 = scalar_lea.vmem %s5793_s22, 131072  ;;  %p5795_p10 = scmp.lt.s32.totalorder %s5981_s5, %s5793_s22 }
  0x21   : > { %p5790_p11 = pnand %p5788_p8, %p5774_p12  ;;  %p5796_p1 = scmp.lt.s32.totalorder %s5794_s26, %s5787_s20 }
  0x23   : > { %p5791_p13 = pneg %p5790_p11  ;;  %p5797_p2 = por %p5796_p1, %p5795_p10 }
  0x25   : > { %p5798_p3 = pnand %p5797_p2, %p5791_p13 }
  0x27   : > { %5801 = shalt.err (!%p5798_p3)
}
  0x28   : > { %s5889_s27 = smov 256   ;;  %s5890_s28 = smov 128  }
  0x29   : > { %s5891_s29 = smov 8   ;;  %p205_p0 = scmp.lt.s32.totalorder %s5886_s17, 3 }
  0x2a   : > { %4939 = dma.hbm_to_vmem [thread:$0]  (!%p5977_p9), %s5973_s30, 65536, %s5981_s5, %s165_s7, %s5889_s27, %s5890_s28, %s5891_s29  }
  0x2b   : > { %s4350_s4 = sshll.u32 %s5966_s25, 1  ;;  %s4873_s8 = sshll.u32 %s5882_s16, 5 }
  0x2c   : > { %p6752_p10 = scmp.ge.s32.totalorder %s5886_s17, 1  ;;  %s6024_s12 = scalar_lea.hbm %s6746_s2, %s4873_s8 }
  0x2d   : > { %s192_s18 = scalar_lea.vmem [#allocation5], %s4350_s4  ;;  %s189_s30 = scalar_lea.sflag [#allocation6], %s5966_s25 }
  0x2e   : > { %p6017_p4 = pnand %p6752_p10, %p205_p0  ;;  %s200_s20 = sshll.u32 %s192_s18, 4  ;;  %s201_s20 = int_to_ptr.vmem [resolvable:$true] %s200_s20 }
  0x2f   : > { %s5802_s5 = scalar_lea.hbm %s6024_s12, 32  ;;  %s5807_s22 = scalar_lea.hbm %s6746_s2, 64 }
  0x30   : > { %s6753_s9 = scalar_select %p6017_p4, 1, 0 }
  0x31   : > { %p5803_p5 = scmp.ne.s32.totalorder %s6024_s12, %s5802_s5  ;;  %p5808_p11 = scmp.lt.u32.totalorder %s6024_s12, %s6746_s2 }
  0x32   : > { %p5809_p13 = scmp.lt.u32.totalorder %s5807_s22, %s5802_s5  ;;  %p5811_p2 = scmp.lt.u32.totalorder %s5802_s5, %s6024_s12 }
  0x33   : > { %p5805_p6 = pnand %p5803_p5, %p5774_p12 }
  0x34   : > { %p5810_p1 = por %p5809_p13, %p5808_p11 }
  0x35   : > { %p5806_p8 = pneg %p5805_p6 }
  0x36   : > { %p5812_p3 = por %p5811_p2, %p5810_p1 }
  0x38   : > { %p5813_p0 = pnand %p5812_p3, %p5806_p8 }
  0x3a   : > { %5816 = shalt.err (!%p5813_p0)
}
  0x3b   : > { %s5817_s25 = scalar_lea.vmem %s201_s20, 32  ;;  %s5892_s28 = smov [#allocation5]  }
  0x3c   : > { %p5818_p10 = scmp.ne.s32.totalorder %s201_s20, %s5817_s25  ;;  %s5822_s29 = sshll.u32 %s5892_s28, 4  ;;  %s5823_s29 = int_to_ptr.vmem [resolvable:$false] %s5822_s29 }
  0x3d   : > { %s5824_s4 = scalar_lea.vmem %s5823_s29, 64  ;;  %p5825_p7 = scmp.lt.s32.totalorder %s201_s20, %s5823_s29 }
  0x3e   : > { %p5820_p5 = pnand %p5818_p10, %p5774_p12  ;;  %p5826_p4 = scmp.lt.s32.totalorder %s5824_s4, %s5817_s25 }
  0x40   : > { %p5821_p6 = pneg %p5820_p5  ;;  %p5827_p11 = por %p5826_p4, %p5825_p7 }
  0x42   : > { %p5828_p13 = pnand %p5827_p11, %p5821_p6 }
  0x44   : > { %5831 = shalt.err (!%p5828_p13)
}
  0x45   : > { %4942 = dma.hbm_to_vmem [thread:$0]  (!%p5977_p9), %s6024_s12, 32, %s201_s20, %s189_s30  }
  0x46   : > { %p6754_p8 = scmp.ne.s32.totalorder %s6753_s9, 0 }
  0x47   : > { %s211_s8 = sand.u32 (!%p6754_p8), 1, %s5870_s13   ;;  %p6755_p12 = scmp.ne.s32.totalorder (!%p6754_p8), %s6750_s23, 0 }
  0x48   : > { %209 = sbr.rel (%p6754_p8) target bundleno = 972 (0x3cc), region = 32  ;;  %s4354_s10 = sshll.u32 (!%p6754_p8), %s211_s8, 12 }
  0x49   : > { %s212_s11 = scalar_lea.sflag (!%p6754_p8), [#allocation4], %s211_s8  ;;  %s6049_s18 = scalar_lea.vmem (!%p6754_p8), [#allocation3], %s4354_s10 }
  0x4f   : > { %5857 = dma.done.wait (%p6755_p12), %s212_s11, 65536  }
  0x50   : > { %5859 = vsyncadd (%p6755_p12), %s212_s11, 4294901760  ;;  %s4355_s5 = sshll.u32 %s211_s8, 1  ;;  %s221_s6 = scalar_lea.sflag [#allocation6], %s211_s8 }
  0x51   : > { %s6055_s7 = scalar_lea.vmem [#allocation5], %s4355_s5 }
  0x52   : > { %5861 = dma.done.wait (%p6755_p12), %s221_s6, 32  }
  0x53   : > { %5863 = vsyncadd (%p6755_p12), %s221_s6, 4294967264  ;;  %v4996_v0 = vld [vmem:[%s6049_s18 + $0x4] ss:$8 sps:$4 sm:$0xff]   ;;  %v5000_v2 = vld [vmem:[%s6049_s18] ss:$8 sps:$4 sm:$0xff]   ;;  %v807_v38 = vlaneseq  ;;  %vm4220_vm0 = vcmask 1041408  }
  0x54   : > { %v4998_v1 = vld [vmem:[%s6049_s18 + $0x804] ss:$8 sps:$4 sm:$0xff]   ;;  %3531 = vmatprep.subr.bf16.mxu1 %v4996_v0  ;;  %v5001_v3 = vld [vmem:[%s6049_s18 + $0x800] ss:$8 sps:$4 sm:$0xff]   ;;  %v5002_v4 = vld [vmem:[%s6049_s18 + $0x14] ss:$8 sps:$4 sm:$0xff]  }
  0x55   : > { %3859 = vmatprep.subr.bf16.mxu0 %v4998_v1  ;;  %3532 = vmatpush1.bf16.msra.mxu1 %v5000_v2  ;;  %v5004_v5 = vld [vmem:[%s6049_s18 + $0x814] ss:$8 sps:$4 sm:$0xff]   ;;  %v5006_v6 = vld [vmem:[%s6049_s18 + $0x10] ss:$8 sps:$4 sm:$0xff]   ;;  %v5008_v8 = vld [vmem:[%s6049_s18 + $0x24] ss:$8 sps:$4 sm:$0xff]  }
  0x56   : > { %3860 = vmatpush1.bf16.msra.mxu0 %v5001_v3  ;;  %3533 = vmatprep.subr.bf16.mxu1 %v5002_v4  ;;  %v5007_v7 = vld [vmem:[%s6049_s18 + $0x810] ss:$8 sps:$4 sm:$0xff]   ;;  %v5010_v9 = vld [vmem:[%s6049_s18 + $0x824] ss:$8 sps:$4 sm:$0xff]   ;;  %v5012_v10 = vld [vmem:[%s6049_s18 + $0x20] ss:$8 sps:$4 sm:$0xff]  }
  0x57   : > { %3861 = vmatprep.subr.bf16.mxu0 %v5004_v5  ;;  %v5013_v11 = vld [vmem:[%s6049_s18 + $0x820] ss:$8 sps:$4 sm:$0xff]   ;;  %v5014_v12 = vld [vmem:[%s6049_s18 + $0x34] ss:$8 sps:$4 sm:$0xff]   ;;  %v5018_v14 = vld [vmem:[%s6049_s18 + $0x30] ss:$8 sps:$4 sm:$0xff]  }
  0x58   : > { %v5016_v13 = vld [vmem:[%s6049_s18 + $0x834] ss:$8 sps:$4 sm:$0xff]   ;;  %v5019_v15 = vld [vmem:[%s6049_s18 + $0x830] ss:$8 sps:$4 sm:$0xff]   ;;  %v5020_v16 = vld [vmem:[%s6049_s18 + $0x44] ss:$8 sps:$4 sm:$0xff]  }
  0x59   : > { %3534 = vmatpush1.bf16.msra.mxu1 %v5006_v6  ;;  %v5022_v17 = vld [vmem:[%s6049_s18 + $0x844] ss:$8 sps:$4 sm:$0xff]   ;;  %v5024_v18 = vld [vmem:[%s6049_s18 + $0x40] ss:$8 sps:$4 sm:$0xff]   ;;  %v5026_v20 = vld [vmem:[%s6049_s18 + $0x54] ss:$8 sps:$4 sm:$0xff]  }
  0x5a   : > { %3862 = vmatpush1.bf16.msra.mxu0 %v5007_v7  ;;  %3535 = vmatprep.subr.bf16.mxu1 %v5008_v8  ;;  %v5025_v19 = vld [vmem:[%s6049_s18 + $0x840] ss:$8 sps:$4 sm:$0xff]   ;;  %v5028_v21 = vld [vmem:[%s6049_s18 + $0x854] ss:$8 sps:$4 sm:$0xff]   ;;  %v5030_v22 = vld [vmem:[%s6049_s18 + $0x50] ss:$8 sps:$4 sm:$0xff]  }
  0x5b   : > { %3863 = vmatprep.subr.bf16.mxu0 %v5010_v9  ;;  %v5031_v23 = vld [vmem:[%s6049_s18 + $0x850] ss:$8 sps:$4 sm:$0xff]   ;;  %v5032_v24 = vld [vmem:[%s6049_s18 + $0x64] ss:$8 sps:$4 sm:$0xff]   ;;  %v5036_v26 = vld [vmem:[%s6049_s18 + $0x60] ss:$8 sps:$4 sm:$0xff]  }
  0x5c   : > { %v5034_v25 = vld [vmem:[%s6049_s18 + $0x864] ss:$8 sps:$4 sm:$0xff]   ;;  %v5037_v27 = vld [vmem:[%s6049_s18 + $0x860] ss:$8 sps:$4 sm:$0xff]   ;;  %v5038_v28 = vld [vmem:[%s6049_s18 + $0x74] ss:$8 sps:$4 sm:$0xff]  }
  0x5d   : > { %3536 = vmatpush1.bf16.msra.mxu1 %v5012_v10  ;;  %v5040_v29 = vld [vmem:[%s6049_s18 + $0x874] ss:$8 sps:$4 sm:$0xff]   ;;  %v5042_v30 = vld [vmem:[%s6049_s18 + $0x70] ss:$8 sps:$4 sm:$0xff]   ;;  %v5044_v32 = vld [vmem:[%s6049_s18 + $0x84] ss:$8 sps:$4 sm:$0xff]  }
  0x5e   : > { %3864 = vmatpush1.bf16.msra.mxu0 %v5013_v11  ;;  %3537 = vmatprep.subr.bf16.mxu1 %v5014_v12  ;;  %v5043_v31 = vld [vmem:[%s6049_s18 + $0x870] ss:$8 sps:$4 sm:$0xff]   ;;  %v5046_v33 = vld [vmem:[%s6049_s18 + $0x884] ss:$8 sps:$4 sm:$0xff]   ;;  %v5048_v34 = vld [vmem:[%s6049_s18 + $0x80] ss:$8 sps:$4 sm:$0xff]  }
  0x5f   : > { %3865 = vmatprep.subr.bf16.mxu0 %v5016_v13  ;;  %v5049_v35 = vld [vmem:[%s6049_s18 + $0x880] ss:$8 sps:$4 sm:$0xff]   ;;  %v5893_v36 = vmov 1983009808   ;;  %v5050_v39 = vld [vmem:[%s6049_s18 + $0x94] ss:$8 sps:$4 sm:$0xff]  }
  0x60   : > { %v805_v37 = vunpack.c.l.s4 %v5893_v36  ;;  %v5052_v40 = vld [vmem:[%s6049_s18 + $0x894] ss:$8 sps:$4 sm:$0xff]   ;;  %v5054_v41 = vld [vmem:[%s6049_s18 + $0x90] ss:$8 sps:$4 sm:$0xff]   ;;  %v6100_v43 = vshrl.u32 %v807_v38, 7  ;;  %v275_v52 = vld [vmem:[%s6744_s0] sm:$0xff] }
  0x61   : > { %3538 = vmatpush1.bf16.msra.mxu1 %v5018_v14  ;;  %v5055_v44 = vld [vmem:[%s6049_s18 + $0x890] ss:$8 sps:$4 sm:$0xff]   ;;  %v5056_v45 = vld [vmem:[%s6049_s18 + $0xa4] ss:$8 sps:$4 sm:$0xff]   ;;  %v5060_v47 = vld [vmem:[%s6049_s18 + $0xa0] ss:$8 sps:$4 sm:$0xff]   ;;  %v803_v10 = vcombine.high %v275_v52, %v275_v52 }
  0x62   : > { %3866 = vmatpush1.bf16.msra.mxu0 %v5019_v15  ;;  %3539 = vmatprep.subr.bf16.mxu1 %v5020_v16  ;;  %v806_v42 = vunpack.c.0.s8 %v805_v37  ;;  %v5058_v46 = vld [vmem:[%s6049_s18 + $0x8a4] ss:$8 sps:$4 sm:$0xff]   ;;  %v5061_v48 = vld [vmem:[%s6049_s18 + $0x8a0] ss:$8 sps:$4 sm:$0xff]   ;;  %v5062_v50 = vld [vmem:[%s6049_s18 + $0xb4] ss:$8 sps:$4 sm:$0xff]  }
  0x63   : > { %3867 = vmatprep.subr.bf16.mxu0 %v5022_v17  ;;  %v5064_v51 = vld [vmem:[%s6049_s18 + $0x8b4] ss:$8 sps:$4 sm:$0xff]   ;;  %v5066_v53 = vld [vmem:[%s6049_s18 + $0xb0] ss:$8 sps:$4 sm:$0xff]   ;;  %v279_v56 = vld [vmem:[%s6744_s0 + $0x20] sm:$0xff]  ;;  %p265_p7 = scmp.lt.s32.totalorder %s5878_s15, 1 }
  0x64   : > { %v6108_v49 = vsub.s32 %v806_v42, %v6100_v43  ;;  %v5067_v55 = vld [vmem:[%s6049_s18 + $0x8b0] ss:$8 sps:$4 sm:$0xff]   ;;  %v5068_v57 = vld [vmem:[%s6049_s18 + $0xc4] ss:$8 sps:$4 sm:$0xff]   ;;  %v5072_v62 = vld [vmem:[%s6049_s18 + $0xc0] ss:$8 sps:$4 sm:$0xff]   ;;  %v871_v11 = vcombine.high %v279_v56, %v279_v56 }
  0x65   : > { %3540 = vmatpush1.bf16.msra.mxu1 %v5024_v18  ;;  %v5070_v58 = vld [vmem:[%s6049_s18 + $0x8c4] ss:$8 sps:$4 sm:$0xff]   ;;  %v5073_v63 = vld [vmem:[%s6049_s18 + $0x8c0] ss:$8 sps:$4 sm:$0xff]   ;;  %v5074_v0 = vld [vmem:[%s6049_s18 + $0xd4] ss:$8 sps:$4 sm:$0xff]  }
  0x66   : > { %3868 = vmatpush1.bf16.msra.mxu0 %v5025_v19  ;;  %3541 = vmatprep.subr.bf16.mxu1 %v5026_v20  ;;  %v810_v54 = vrot.slane %v275_v52, %v6108_v49  ;;  %v878_v60 = vrot.slane %v279_v56, %v6108_v49  ;;  %v5076_v1 = vld [vmem:[%s6049_s18 + $0x8d4] ss:$8 sps:$4 sm:$0xff]   ;;  %v5078_v2 = vld [vmem:[%s6049_s18 + $0xd0] ss:$8 sps:$4 sm:$0xff]   ;;  %v5080_v4 = vld [vmem:[%s6049_s18 + $0xe4] ss:$8 sps:$4 sm:$0xff]   ;;  %v6141_v16 = vrot.slane %v803_v10, %v6108_v49 }
  0x67   : > { %3869 = vmatprep.subr.bf16.mxu0 %v5028_v21  ;;  %v5079_v3 = vld [vmem:[%s6049_s18 + $0x8d0] ss:$8 sps:$4 sm:$0xff]   ;;  %v5082_v5 = vld [vmem:[%s6049_s18 + $0x8e4] ss:$8 sps:$4 sm:$0xff]   ;;  %v5084_v6 = vld [vmem:[%s6049_s18 + $0xe0] ss:$8 sps:$4 sm:$0xff]   ;;  %v6144_v17 = vrot.slane %v871_v11, %v6108_v49 }
  0x68   : > { %v818_v59 = vcombine.high %v810_v54, %v810_v54  ;;  %v886_v61 = vcombine.high %v878_v60, %v878_v60  ;;  %v5085_v7 = vld [vmem:[%s6049_s18 + $0x8e0] ss:$8 sps:$4 sm:$0xff]   ;;  %v5086_v8 = vld [vmem:[%s6049_s18 + $0xf4] ss:$8 sps:$4 sm:$0xff]   ;;  %v5090_v12 = vld [vmem:[%s6049_s18 + $0xf0] ss:$8 sps:$4 sm:$0xff]  }
  0x69   : > { %3542 = vmatpush1.bf16.msra.mxu1 %v5030_v22  ;;  %v5088_v9 = vld [vmem:[%s6049_s18 + $0x8f4] ss:$8 sps:$4 sm:$0xff]   ;;  %v5091_v13 = vld [vmem:[%s6049_s18 + $0x8f0] ss:$8 sps:$4 sm:$0xff]   ;;  %v5095_v14 = vld [vmem:[%s6049_s18 + $0x104] ss:$8 sps:$4 sm:$0xff]   ;;  %v819_v22 = vcombine.high %v6141_v16, %v6141_v16 }
  0x6a   : > { %3870 = vmatpush1.bf16.msra.mxu0 %v5031_v23  ;;  %3543 = vmatprep.subr.bf16.mxu1 %v5032_v24  ;;  %v5099_v15 = vld [vmem:[%s6049_s18 + $0x904] ss:$8 sps:$4 sm:$0xff]   ;;  %v5093_v18 = vld [vmem:[%s6049_s18 + $0x100] ss:$8 sps:$4 sm:$0xff]   ;;  %v5102_v20 = vld [vmem:[%s6049_s18 + $0x114] ss:$8 sps:$4 sm:$0xff]   ;;  %v887_v23 = vcombine.high %v6144_v17, %v6144_v17 }
  0x6b   : > { %3871 = vmatprep.subr.bf16.mxu0 %v5034_v25  ;;  %3563 = vmatprep.mubr.bf16.mxu1 %v818_v59  ;;  %v5097_v19 = vld [vmem:[%s6049_s18 + $0x900] ss:$8 sps:$4 sm:$0xff]   ;;  %v5105_v21 = vld [vmem:[%s6049_s18 + $0x914] ss:$8 sps:$4 sm:$0xff]   ;;  %v5100_v24 = vld [vmem:[%s6049_s18 + $0x110] ss:$8 sps:$4 sm:$0xff]  }
  0x6c   : > { %3891 = vmatprep.mubr.bf16.mxu0 %v886_v61  ;;  %v5103_v25 = vld [vmem:[%s6049_s18 + $0x910] ss:$8 sps:$4 sm:$0xff]   ;;  %v5118_v36 = vld [vmem:[%s6049_s18 + $0x140] ss:$8 sps:$4 sm:$0xff]   ;;  %v5126_v38 = vld [vmem:[%s6049_s18 + $0x154] ss:$8 sps:$4 sm:$0xff]  }
  0x6d   : > { %3544 = vmatpush1.bf16.msra.mxu1 %v5036_v26  ;;  %v5108_v26 = vld [vmem:[%s6049_s18 + $0x124] ss:$8 sps:$4 sm:$0xff]   ;;  %v5121_v37 = vld [vmem:[%s6049_s18 + $0x940] ss:$8 sps:$4 sm:$0xff]   ;;  %v5150_v56 = vld [vmem:[%s6049_s18 + $0x194] ss:$8 sps:$4 sm:$0xff]  }
  0x6e   : > { %3872 = vmatpush1.bf16.msra.mxu0 %v5037_v27  ;;  %3545 = vmatprep.subr.bf16.mxu1 %v5038_v28  ;;  %v5111_v27 = vld [vmem:[%s6049_s18 + $0x924] ss:$8 sps:$4 sm:$0xff]   ;;  %v5106_v28 = vld [vmem:[%s6049_s18 + $0x120] ss:$8 sps:$4 sm:$0xff]   ;;  %v5151_v59 = vld [vmem:[%s6049_s18 + $0x990] ss:$8 sps:$4 sm:$0xff]  }
  0x6f   : > { %3873 = vmatprep.subr.bf16.mxu0 %v5040_v29  ;;  %v5109_v29 = vld [vmem:[%s6049_s18 + $0x920] ss:$8 sps:$4 sm:$0xff]   ;;  %v5132_v42 = vld [vmem:[%s6049_s18 + $0x164] ss:$8 sps:$4 sm:$0xff]   ;;  %v5172_v10 = vld [vmem:[%s6049_s18 + $0x1d0] ss:$8 sps:$4 sm:$0xff]  }
  0x70   : > { %v5144_v52 = vld [vmem:[%s6049_s18 + $0x184] ss:$8 sps:$4 sm:$0xff]   ;;  %v5175_v11 = vld [vmem:[%s6049_s18 + $0x9d0] ss:$8 sps:$4 sm:$0xff]   ;;  %s6764_s15 = smov (!%p265_p7, %s5878_s15), 1  ;;  %vm4226_vm1 = vcmask 1024  }
  0x71   : > { %3546 = vmatpush1.bf16.msra.mxu1 %v5042_v30  ;;  %v5114_v30 = vld [vmem:[%s6049_s18 + $0x134] ss:$8 sps:$4 sm:$0xff]   ;;  %v5159_v61 = vld [vmem:[%s6049_s18 + $0x9a4] ss:$8 sps:$4 sm:$0xff]  }
  0x72   : > { %3874 = vmatpush1.bf16.msra.mxu0 %v5043_v31  ;;  %3547 = vmatprep.subr.bf16.mxu1 %v5044_v32  ;;  %v5117_v31 = vld [vmem:[%s6049_s18 + $0x934] ss:$8 sps:$4 sm:$0xff]   ;;  %v5112_v32 = vld [vmem:[%s6049_s18 + $0x130] ss:$8 sps:$4 sm:$0xff]  }
  0x73   : > { %3875 = vmatprep.subr.bf16.mxu0 %v5046_v33  ;;  %v5115_v33 = vld [vmem:[%s6049_s18 + $0x930] ss:$8 sps:$4 sm:$0xff]  }
  0x75   : > { %3548 = vmatpush1.bf16.msra.mxu1 %v5048_v34  ;;  %v5120_v34 = vld [vmem:[%s6049_s18 + $0x144] ss:$8 sps:$4 sm:$0xff]  }
  0x76   : > { %3876 = vmatpush1.bf16.msra.mxu0 %v5049_v35  ;;  %3549 = vmatprep.subr.bf16.mxu1 %v5050_v39  ;;  %v5123_v35 = vld [vmem:[%s6049_s18 + $0x944] ss:$8 sps:$4 sm:$0xff]   ;;  %v5129_v39 = vld [vmem:[%s6049_s18 + $0x954] ss:$8 sps:$4 sm:$0xff]  }
  0x77   : > { %3877 = vmatprep.subr.bf16.mxu0 %v5052_v40  ;;  %v5124_v40 = vld [vmem:[%s6049_s18 + $0x150] ss:$8 sps:$4 sm:$0xff]  }
  0x79   : > { %3550 = vmatpush1.bf16.msra.mxu1 %v5054_v41  ;;  %v5127_v41 = vld [vmem:[%s6049_s18 + $0x950] ss:$8 sps:$4 sm:$0xff]  }
  0x7a   : > { %3878 = vmatpush1.bf16.msra.mxu0 %v5055_v44  ;;  %3551 = vmatprep.subr.bf16.mxu1 %v5056_v45  ;;  %v5135_v44 = vld [vmem:[%s6049_s18 + $0x964] ss:$8 sps:$4 sm:$0xff]   ;;  %v5130_v45 = vld [vmem:[%s6049_s18 + $0x160] ss:$8 sps:$4 sm:$0xff]  }
  0x7b   : > { %3879 = vmatprep.subr.bf16.mxu0 %v5058_v46  ;;  %v5133_v46 = vld [vmem:[%s6049_s18 + $0x960] ss:$8 sps:$4 sm:$0xff]  }
  0x7d   : > { %3552 = vmatpush1.bf16.msra.mxu1 %v5060_v47  ;;  %v5138_v47 = vld [vmem:[%s6049_s18 + $0x174] ss:$8 sps:$4 sm:$0xff]  }
  0x7e   : > { %3880 = vmatpush1.bf16.msra.mxu0 %v5061_v48  ;;  %3553 = vmatprep.subr.bf16.mxu1 %v5062_v50  ;;  %v5141_v48 = vld [vmem:[%s6049_s18 + $0x974] ss:$8 sps:$4 sm:$0xff]   ;;  %v5136_v50 = vld [vmem:[%s6049_s18 + $0x170] ss:$8 sps:$4 sm:$0xff]  }
  0x7f   : > { %3881 = vmatprep.subr.bf16.mxu0 %v5064_v51  ;;  %v5139_v51 = vld [vmem:[%s6049_s18 + $0x970] ss:$8 sps:$4 sm:$0xff]  }
  0x81   : > { %3554 = vmatpush1.bf16.msra.mxu1 %v5066_v53  ;;  %v5147_v53 = vld [vmem:[%s6049_s18 + $0x984] ss:$8 sps:$4 sm:$0xff]  }
  0x82   : > { %3882 = vmatpush1.bf16.msra.mxu0 %v5067_v55  ;;  %3555 = vmatprep.subr.bf16.mxu1 %v5068_v57  ;;  %v5145_v55 = vld [vmem:[%s6049_s18 + $0x980] ss:$8 sps:$4 sm:$0xff]   ;;  %v5153_v57 = vld [vmem:[%s6049_s18 + $0x994] ss:$8 sps:$4 sm:$0xff]  }
  0x83   : > { %3883 = vmatprep.subr.bf16.mxu0 %v5070_v58  ;;  %v5148_v58 = vld [vmem:[%s6049_s18 + $0x190] ss:$8 sps:$4 sm:$0xff]  }
  0x85   : > { %3556 = vmatpush1.bf16.msra.mxu1 %v5072_v62  ;;  %v5154_v62 = vld [vmem:[%s6049_s18 + $0x1a0] ss:$8 sps:$4 sm:$0xff]  }
  0x86   : > { %3884 = vmatpush1.bf16.msra.mxu0 %v5073_v63  ;;  %3557 = vmatprep.subr.bf16.mxu1 %v5074_v0  ;;  %v5157_v63 = vld [vmem:[%s6049_s18 + $0x9a0] ss:$8 sps:$4 sm:$0xff]   ;;  %v5162_v0 = vld [vmem:[%s6049_s18 + $0x1b4] ss:$8 sps:$4 sm:$0xff]  }
  0x87   : > { %3885 = vmatprep.subr.bf16.mxu0 %v5076_v1  ;;  %v5165_v1 = vld [vmem:[%s6049_s18 + $0x9b4] ss:$8 sps:$4 sm:$0xff]  }
  0x89   : > { %3558 = vmatpush1.bf16.msra.mxu1 %v5078_v2  ;;  %v5160_v2 = vld [vmem:[%s6049_s18 + $0x1b0] ss:$8 sps:$4 sm:$0xff]  }
  0x8a   : > { %3886 = vmatpush1.bf16.msra.mxu0 %v5079_v3  ;;  %3559 = vmatprep.subr.bf16.mxu1 %v5080_v4  ;;  %v5163_v3 = vld [vmem:[%s6049_s18 + $0x9b0] ss:$8 sps:$4 sm:$0xff]   ;;  %v5168_v4 = vld [vmem:[%s6049_s18 + $0x1c4] ss:$8 sps:$4 sm:$0xff]  }
  0x8b   : > { %3887 = vmatprep.subr.bf16.mxu0 %v5082_v5  ;;  %v5171_v5 = vld [vmem:[%s6049_s18 + $0x9c4] ss:$8 sps:$4 sm:$0xff]  }
  0x8d   : > { %3560 = vmatpush1.bf16.msra.mxu1 %v5084_v6  ;;  %v5166_v6 = vld [vmem:[%s6049_s18 + $0x1c0] ss:$8 sps:$4 sm:$0xff]  }
  0x8e   : > { %3888 = vmatpush1.bf16.msra.mxu0 %v5085_v7  ;;  %3561 = vmatprep.subr.bf16.mxu1 %v5086_v8  ;;  %v5169_v7 = vld [vmem:[%s6049_s18 + $0x9c0] ss:$8 sps:$4 sm:$0xff]   ;;  %v5174_v8 = vld [vmem:[%s6049_s18 + $0x1d4] ss:$8 sps:$4 sm:$0xff]  }
  0x8f   : > { %3889 = vmatprep.subr.bf16.mxu0 %v5088_v9  ;;  %v5177_v9 = vld [vmem:[%s6049_s18 + $0x9d4] ss:$8 sps:$4 sm:$0xff]  }
  0x91   : > { %3562 = vmatpush1.bf16.msra.mxu1 %v5090_v12  ;;  %v5180_v12 = vld [vmem:[%s6049_s18 + $0x1e4] ss:$8 sps:$4 sm:$0xff]  }
  0x92   : > { %3890 = vmatpush1.bf16.msra.mxu0 %v5091_v13  ;;  %3572 = vmatprep.subr.bf16.mxu1 %v5095_v14  ;;  %v5183_v13 = vld [vmem:[%s6049_s18 + $0x9e4] ss:$8 sps:$4 sm:$0xff]   ;;  %v5178_v14 = vld [vmem:[%s6049_s18 + $0x1e0] ss:$8 sps:$4 sm:$0xff]  }
  0x93   : > { %3900 = vmatprep.subr.bf16.mxu0 %v5099_v15  ;;  %v5181_v15 = vld [vmem:[%s6049_s18 + $0x9e0] ss:$8 sps:$4 sm:$0xff]  }
  0x94   : > { %3564 = vmatmul.mubr.bf16.vlgmr.msra.gmra.mrb[0].mxu1 %v810_v54  ;;  %v5142_v54 = vld [vmem:[%s6049_s18 + $0x180] ss:$8 sps:$4 sm:$0xff]  }
  0x95   : > { %3892 = vmatmul.mubr.bf16.vlgmr.msra.gmra.mrb[0].mxu0 %v878_v60  ;;  %3573 = vmatpush1.bf16.msra.mxu1 %v5093_v18  ;;  %v5156_v60 = vld [vmem:[%s6049_s18 + $0x1a4] ss:$8 sps:$4 sm:$0xff]   ;;  %v5186_v18 = vld [vmem:[%s6049_s18 + $0x1f4] ss:$8 sps:$4 sm:$0xff]  }
  0x96   : > { %3901 = vmatpush1.bf16.msra.mxu0 %v5097_v19  ;;  %3574 = vmatprep.subr.bf16.mxu1 %v5102_v20  ;;  %v5189_v19 = vld [vmem:[%s6049_s18 + $0x9f4] ss:$8 sps:$4 sm:$0xff]   ;;  %v5184_v20 = vld [vmem:[%s6049_s18 + $0x1f0] ss:$8 sps:$4 sm:$0xff]  }
  0x97   : > { %3902 = vmatprep.subr.bf16.mxu0 %v5105_v21  ;;  %3604 = vmatprep.mubr.bf16.mxu1 %v819_v22  ;;  %v5187_v21 = vld [vmem:[%s6049_s18 + $0x9f0] ss:$8 sps:$4 sm:$0xff]   ;;  %v5192_v22 = vld [vmem:[%s6049_s18 + $0x204] ss:$8 sps:$4 sm:$0xff]  }
  0x98   : > { %3932 = vmatprep.mubr.bf16.mxu0 %v887_v23  ;;  %v5195_v23 = vld [vmem:[%s6049_s18 + $0xa04] ss:$8 sps:$4 sm:$0xff]  }
  0x99   : > { %3575 = vmatpush1.bf16.msra.mxu1 %v5100_v24  ;;  %v5190_v24 = vld [vmem:[%s6049_s18 + $0x200] ss:$8 sps:$4 sm:$0xff]  }
  0x9a   : > { %3903 = vmatpush1.bf16.msra.mxu0 %v5103_v25  ;;  %3576 = vmatprep.subr.bf16.mxu1 %v5108_v26  ;;  %v5193_v25 = vld [vmem:[%s6049_s18 + $0xa00] ss:$8 sps:$4 sm:$0xff]   ;;  %v5198_v26 = vld [vmem:[%s6049_s18 + $0x214] ss:$8 sps:$4 sm:$0xff]  }
  0x9b   : > { %3904 = vmatprep.subr.bf16.mxu0 %v5111_v27  ;;  %v6220_v27 = vld [vmem:[%s6744_s0 + $0x8] sm:$0xff] }
  0x9d   : > { %3577 = vmatpush1.bf16.msra.mxu1 %v5106_v28  ;;  %v5201_v28 = vld [vmem:[%s6049_s18 + $0xa14] ss:$8 sps:$4 sm:$0xff]  }
  0x9e   : > { %3905 = vmatpush1.bf16.msra.mxu0 %v5109_v29  ;;  %3578 = vmatprep.subr.bf16.mxu1 %v5114_v30  ;;  %v6225_v29 = vrot.slane %v6220_v27, %v6108_v49  ;;  %v6230_v30 = vld [vmem:[%s6744_s0 + $0x28] sm:$0xff] }
  0x9f   : > { %3906 = vmatprep.subr.bf16.mxu0 %v5117_v31  ;;  %v5196_v31 = vld [vmem:[%s6049_s18 + $0x210] ss:$8 sps:$4 sm:$0xff]  }
  0xa1   : > { %3579 = vmatpush1.bf16.msra.mxu1 %v5112_v32  ;;  %v5199_v32 = vld [vmem:[%s6049_s18 + $0xa10] ss:$8 sps:$4 sm:$0xff]  }
  0xa2   : > { %3907 = vmatpush1.bf16.msra.mxu0 %v5115_v33  ;;  %3580 = vmatprep.subr.bf16.mxu1 %v5120_v34  ;;  %v835_v33 = vcombine.high %v6225_v29, %v6225_v29  ;;  %v6240_v34 = vrot.slane %v6230_v30, %v6108_v49 }
  0xa3   : > { %3908 = vmatprep.subr.bf16.mxu0 %v5123_v35  ;;  %v5204_v35 = vld [vmem:[%s6049_s18 + $0x224] ss:$8 sps:$4 sm:$0xff]  }
  0xa5   : > { %3581 = vmatpush1.bf16.msra.mxu1 %v5118_v36  ;;  %v5202_v36 = vld [vmem:[%s6049_s18 + $0x220] ss:$8 sps:$4 sm:$0xff]  }
  0xa6   : > { %3909 = vmatpush1.bf16.msra.mxu0 %v5121_v37  ;;  %3582 = vmatprep.subr.bf16.mxu1 %v5126_v38  ;;  %v5205_v37 = vld [vmem:[%s6049_s18 + $0xa20] ss:$8 sps:$4 sm:$0xff]   ;;  %v5210_v38 = vld [vmem:[%s6049_s18 + $0x234] ss:$8 sps:$4 sm:$0xff]  }
  0xa7   : > { %3910 = vmatprep.subr.bf16.mxu0 %v5129_v39  ;;  %v5213_v39 = vld [vmem:[%s6049_s18 + $0xa34] ss:$8 sps:$4 sm:$0xff]  }
  0xa9   : > { %3583 = vmatpush1.bf16.msra.mxu1 %v5124_v40  ;;  %v5208_v40 = vld [vmem:[%s6049_s18 + $0x230] ss:$8 sps:$4 sm:$0xff]  }
  0xaa   : > { %3911 = vmatpush1.bf16.msra.mxu0 %v5127_v41  ;;  %3584 = vmatprep.subr.bf16.mxu1 %v5132_v42  ;;  %v5211_v41 = vld [vmem:[%s6049_s18 + $0xa30] ss:$8 sps:$4 sm:$0xff]   ;;  %v5216_v42 = vld [vmem:[%s6049_s18 + $0x244] ss:$8 sps:$4 sm:$0xff]  }
  0xab   : > { %3912 = vmatprep.subr.bf16.mxu0 %v5135_v44  ;;  %v5219_v44 = vld [vmem:[%s6049_s18 + $0xa44] ss:$8 sps:$4 sm:$0xff]  }
  0xad   : > { %3585 = vmatpush1.bf16.msra.mxu1 %v5130_v45  ;;  %v5214_v45 = vld [vmem:[%s6049_s18 + $0x240] ss:$8 sps:$4 sm:$0xff]  }
  0xae   : > { %3913 = vmatpush1.bf16.msra.mxu0 %v5133_v46  ;;  %3586 = vmatprep.subr.bf16.mxu1 %v5138_v47  ;;  %v5217_v46 = vld [vmem:[%s6049_s18 + $0xa40] ss:$8 sps:$4 sm:$0xff]   ;;  %v5222_v47 = vld [vmem:[%s6049_s18 + $0x254] ss:$8 sps:$4 sm:$0xff]  }
  0xaf   : > { %3914 = vmatprep.subr.bf16.mxu0 %v5141_v48  ;;  %v5225_v48 = vld [vmem:[%s6049_s18 + $0xa54] ss:$8 sps:$4 sm:$0xff]  }
  0xb1   : > { %3587 = vmatpush1.bf16.msra.mxu1 %v5136_v50  ;;  %v5220_v50 = vld [vmem:[%s6049_s18 + $0x250] ss:$8 sps:$4 sm:$0xff]  }
  0xb2   : > { %3915 = vmatpush1.bf16.msra.mxu0 %v5139_v51  ;;  %3588 = vmatprep.subr.bf16.mxu1 %v5144_v52  ;;  %v5223_v51 = vld [vmem:[%s6049_s18 + $0xa50] ss:$8 sps:$4 sm:$0xff]   ;;  %v5228_v52 = vld [vmem:[%s6049_s18 + $0x264] ss:$8 sps:$4 sm:$0xff]  }
  0xb3   : > { %3916 = vmatprep.subr.bf16.mxu0 %v5147_v53  ;;  %v5231_v53 = vld [vmem:[%s6049_s18 + $0xa64] ss:$8 sps:$4 sm:$0xff]  }
  0xb5   : > { %3589 = vmatpush1.bf16.msra.mxu1 %v5142_v54  ;;  %v5226_v54 = vld [vmem:[%s6049_s18 + $0x260] ss:$8 sps:$4 sm:$0xff]  }
  0xb6   : > { %3917 = vmatpush1.bf16.msra.mxu0 %v5145_v55  ;;  %3590 = vmatprep.subr.bf16.mxu1 %v5150_v56  ;;  %v5229_v55 = vld [vmem:[%s6049_s18 + $0xa60] ss:$8 sps:$4 sm:$0xff]   ;;  %v5234_v56 = vld [vmem:[%s6049_s18 + $0x274] ss:$8 sps:$4 sm:$0xff]  }
  0xb7   : > { %3918 = vmatprep.subr.bf16.mxu0 %v5153_v57  ;;  %v5237_v57 = vld [vmem:[%s6049_s18 + $0xa74] ss:$8 sps:$4 sm:$0xff]  }
  0xb9   : > { %3591 = vmatpush1.bf16.msra.mxu1 %v5148_v58  ;;  %v5232_v58 = vld [vmem:[%s6049_s18 + $0x270] ss:$8 sps:$4 sm:$0xff]  }
  0xba   : > { %3919 = vmatpush1.bf16.msra.mxu0 %v5151_v59  ;;  %3592 = vmatprep.subr.bf16.mxu1 %v5156_v60  ;;  %v5235_v59 = vld [vmem:[%s6049_s18 + $0xa70] ss:$8 sps:$4 sm:$0xff]   ;;  %v5240_v60 = vld [vmem:[%s6049_s18 + $0x284] ss:$8 sps:$4 sm:$0xff]  }
  0xbb   : > { %3920 = vmatprep.subr.bf16.mxu0 %v5159_v61  ;;  %v5243_v61 = vld [vmem:[%s6049_s18 + $0xa84] ss:$8 sps:$4 sm:$0xff]  }
  0xbd   : > { %3593 = vmatpush1.bf16.msra.mxu1 %v5154_v62  ;;  %v5238_v62 = vld [vmem:[%s6049_s18 + $0x280] ss:$8 sps:$4 sm:$0xff]  }
  0xbe   : > { %3921 = vmatpush1.bf16.msra.mxu0 %v5157_v63  ;;  %3594 = vmatprep.subr.bf16.mxu1 %v5162_v0  ;;  %v5241_v63 = vld [vmem:[%s6049_s18 + $0xa80] ss:$8 sps:$4 sm:$0xff]   ;;  %v5246_v0 = vld [vmem:[%s6049_s18 + $0x294] ss:$8 sps:$4 sm:$0xff]  }
  0xbf   : > { %3922 = vmatprep.subr.bf16.mxu0 %v5165_v1  ;;  %v5249_v1 = vld [vmem:[%s6049_s18 + $0xa94] ss:$8 sps:$4 sm:$0xff]  }
  0xc1   : > { %3595 = vmatpush1.bf16.msra.mxu1 %v5160_v2  ;;  %v5244_v2 = vld [vmem:[%s6049_s18 + $0x290] ss:$8 sps:$4 sm:$0xff]  }
  0xc2   : > { %3923 = vmatpush1.bf16.msra.mxu0 %v5163_v3  ;;  %3596 = vmatprep.subr.bf16.mxu1 %v5168_v4  ;;  %v5247_v3 = vld [vmem:[%s6049_s18 + $0xa90] ss:$8 sps:$4 sm:$0xff]   ;;  %v5252_v4 = vld [vmem:[%s6049_s18 + $0x2a4] ss:$8 sps:$4 sm:$0xff]  }
  0xc3   : > { %3924 = vmatprep.subr.bf16.mxu0 %v5171_v5  ;;  %v5255_v5 = vld [vmem:[%s6049_s18 + $0xaa4] ss:$8 sps:$4 sm:$0xff]  }
  0xc5   : > { %3597 = vmatpush1.bf16.msra.mxu1 %v5166_v6  ;;  %v5250_v6 = vld [vmem:[%s6049_s18 + $0x2a0] ss:$8 sps:$4 sm:$0xff]  }
  0xc6   : > { %3925 = vmatpush1.bf16.msra.mxu0 %v5169_v7  ;;  %3598 = vmatprep.subr.bf16.mxu1 %v5174_v8  ;;  %v5253_v7 = vld [vmem:[%s6049_s18 + $0xaa0] ss:$8 sps:$4 sm:$0xff]   ;;  %v5258_v8 = vld [vmem:[%s6049_s18 + $0x2b4] ss:$8 sps:$4 sm:$0xff]  }
  0xc7   : > { %3926 = vmatprep.subr.bf16.mxu0 %v5177_v9  ;;  %v5261_v9 = vld [vmem:[%s6049_s18 + $0xab4] ss:$8 sps:$4 sm:$0xff]  }
  0xc9   : > { %3599 = vmatpush1.bf16.msra.mxu1 %v5172_v10  ;;  %v5256_v10 = vld [vmem:[%s6049_s18 + $0x2b0] ss:$8 sps:$4 sm:$0xff]  }
  0xca   : > { %3927 = vmatpush1.bf16.msra.mxu0 %v5175_v11  ;;  %3600 = vmatprep.subr.bf16.mxu1 %v5180_v12  ;;  %v5259_v11 = vld [vmem:[%s6049_s18 + $0xab0] ss:$8 sps:$4 sm:$0xff]   ;;  %v5264_v12 = vld [vmem:[%s6049_s18 + $0x2c4] ss:$8 sps:$4 sm:$0xff]  }
  0xcb   : > { %3928 = vmatprep.subr.bf16.mxu0 %v5183_v13  ;;  %v5267_v13 = vld [vmem:[%s6049_s18 + $0xac4] ss:$8 sps:$4 sm:$0xff]  }
  0xcd   : > { %3601 = vmatpush1.bf16.msra.mxu1 %v5178_v14  ;;  %v5262_v14 = vld [vmem:[%s6049_s18 + $0x2c0] ss:$8 sps:$4 sm:$0xff]  }
  0xce   : > { %3929 = vmatpush1.bf16.msra.mxu0 %v5181_v15  ;;  %3602 = vmatprep.subr.bf16.mxu1 %v5186_v18  ;;  %v5265_v15 = vld [vmem:[%s6049_s18 + $0xac0] ss:$8 sps:$4 sm:$0xff]   ;;  %v5270_v18 = vld [vmem:[%s6049_s18 + $0x2d4] ss:$8 sps:$4 sm:$0xff]  }
  0xcf   : > { %3930 = vmatprep.subr.bf16.mxu0 %v5189_v19  ;;  %v5273_v19 = vld [vmem:[%s6049_s18 + $0xad4] ss:$8 sps:$4 sm:$0xff]  }
  0xd1   : > { %3603 = vmatpush1.bf16.msra.mxu1 %v5184_v20  ;;  %v5268_v20 = vld [vmem:[%s6049_s18 + $0x2d0] ss:$8 sps:$4 sm:$0xff]  }
  0xd2   : > { %3931 = vmatpush1.bf16.msra.mxu0 %v5187_v21  ;;  %3613 = vmatprep.subr.bf16.mxu1 %v5192_v22  ;;  %v5271_v21 = vld [vmem:[%s6049_s18 + $0xad0] ss:$8 sps:$4 sm:$0xff]   ;;  %v5276_v22 = vld [vmem:[%s6049_s18 + $0x2e4] ss:$8 sps:$4 sm:$0xff]  }
  0xd3   : > { %3941 = vmatprep.subr.bf16.mxu0 %v5195_v23  ;;  %v5279_v23 = vld [vmem:[%s6049_s18 + $0xae4] ss:$8 sps:$4 sm:$0xff]  }
  0xd4   : > { %3605 = vmatmul.mubr.bf16.vlgmr.msra.gmra.mrb[0].mxu1 %v6141_v16  ;;  %v5207_v16 = vld [vmem:[%s6049_s18 + $0xa24] ss:$8 sps:$4 sm:$0xff]  }
  0xd5   : > { %3933 = vmatmul.mubr.bf16.vlgmr.msra.gmra.mrb[0].mxu0 %v6144_v17  ;;  %3614 = vmatpush1.bf16.msra.mxu1 %v5190_v24  ;;  %v903_v17 = vcombine.high %v6240_v34, %v6240_v34  ;;  %v5274_v24 = vld [vmem:[%s6049_s18 + $0x2e0] ss:$8 sps:$4 sm:$0xff]  }
  0xd6   : > { %3942 = vmatpush1.bf16.msra.mxu0 %v5193_v25  ;;  %3615 = vmatprep.subr.bf16.mxu1 %v5198_v26  ;;  %v5277_v25 = vld [vmem:[%s6049_s18 + $0xae0] ss:$8 sps:$4 sm:$0xff]   ;;  %v5282_v26 = vld [vmem:[%s6049_s18 + $0x2f4] ss:$8 sps:$4 sm:$0xff]  }
  0xd7   : > { %3943 = vmatprep.subr.bf16.mxu0 %v5201_v28  ;;  %3645 = vmatprep.mubr.bf16.mxu1 %v835_v33  ;;  %v5285_v28 = vld [vmem:[%s6049_s18 + $0xaf4] ss:$8 sps:$4 sm:$0xff]   ;;  %v5280_v33 = vld [vmem:[%s6049_s18 + $0x2f0] ss:$8 sps:$4 sm:$0xff]  }
  0xd8   : > { %3973 = vmatprep.mubr.bf16.mxu0 %v903_v17  ;;  %v5291_v17 = vld [vmem:[%s6049_s18 + $0xb04] ss:$8 sps:$4 sm:$0xff]  }
  0xd9   : > { %3616 = vmatpush1.bf16.msra.mxu1 %v5196_v31  ;;  %v820_v31 = vcombine.high %v6220_v27, %v6220_v27 }
  0xda   : > { %3944 = vmatpush1.bf16.msra.mxu0 %v5199_v32  ;;  %3617 = vmatprep.subr.bf16.mxu1 %v5204_v35  ;;  %v888_v32 = vcombine.high %v6230_v30, %v6230_v30  ;;  %v5283_v35 = vld [vmem:[%s6049_s18 + $0xaf0] ss:$8 sps:$4 sm:$0xff]   ;;  %v5289_v30 = vld [vmem:[%s6049_s18 + $0xb00] ss:$8 sps:$4 sm:$0xff]  }
  0xdb   : > { %3945 = vmatprep.subr.bf16.mxu0 %v5207_v16  ;;  %v5288_v16 = vld [vmem:[%s6049_s18 + $0x304] ss:$8 sps:$4 sm:$0xff]  }
  0xdc   : > { %v6310_v27 = vrot.slane %v888_v32, %v6108_v49  ;;  %v5367_v32 = vld [vmem:[%s6049_s18 + $0xbd0] ss:$8 sps:$4 sm:$0xff]  }
  0xdd   : > { %3618 = vmatpush1.bf16.msra.mxu1 %v5202_v36  ;;  %v6307_v36 = vrot.slane %v820_v31, %v6108_v49  ;;  %v5364_v31 = vld [vmem:[%s6049_s18 + $0x3d0] ss:$8 sps:$4 sm:$0xff]  }
  0xde   : > { %3946 = vmatpush1.bf16.msra.mxu0 %v5205_v37  ;;  %3619 = vmatprep.subr.bf16.mxu1 %v5210_v38  ;;  %v5286_v37 = vld [vmem:[%s6049_s18 + $0x300] ss:$8 sps:$4 sm:$0xff]   ;;  %v5294_v38 = vld [vmem:[%s6049_s18 + $0x314] ss:$8 sps:$4 sm:$0xff]  }
  0xdf   : > { %3947 = vmatprep.subr.bf16.mxu0 %v5213_v39  ;;  %v5297_v39 = vld [vmem:[%s6049_s18 + $0xb14] ss:$8 sps:$4 sm:$0xff]  }
  0xe1   : > { %3620 = vmatpush1.bf16.msra.mxu1 %v5208_v40  ;;  %v836_v40 = vcombine.high %v6307_v36, %v6307_v36 }
  0xe2   : > { %3948 = vmatpush1.bf16.msra.mxu0 %v5211_v41  ;;  %3621 = vmatprep.subr.bf16.mxu1 %v5216_v42  ;;  %v904_v41 = vcombine.high %v6310_v27, %v6310_v27  ;;  %v5292_v42 = vld [vmem:[%s6049_s18 + $0x310] ss:$8 sps:$4 sm:$0xff]  }
  0xe3   : > { %3949 = vmatprep.subr.bf16.mxu0 %v5219_v44  ;;  %v5295_v44 = vld [vmem:[%s6049_s18 + $0xb10] ss:$8 sps:$4 sm:$0xff]  }
  0xe5   : > { %3622 = vmatpush1.bf16.msra.mxu1 %v5214_v45  ;;  %v5300_v45 = vld [vmem:[%s6049_s18 + $0x324] ss:$8 sps:$4 sm:$0xff]  }
  0xe6   : > { %3950 = vmatpush1.bf16.msra.mxu0 %v5217_v46  ;;  %3623 = vmatprep.subr.bf16.mxu1 %v5222_v47  ;;  %v5303_v46 = vld [vmem:[%s6049_s18 + $0xb24] ss:$8 sps:$4 sm:$0xff]   ;;  %v5298_v47 = vld [vmem:[%s6049_s18 + $0x320] ss:$8 sps:$4 sm:$0xff]  }
  0xe7   : > { %3951 = vmatprep.subr.bf16.mxu0 %v5225_v48  ;;  %v5309_v48 = vld [vmem:[%s6049_s18 + $0xb34] ss:$8 sps:$4 sm:$0xff]  }
  0xe9   : > { %3624 = vmatpush1.bf16.msra.mxu1 %v5220_v50  ;;  %v5304_v50 = vld [vmem:[%s6049_s18 + $0x330] ss:$8 sps:$4 sm:$0xff]  }
  0xea   : > { %3952 = vmatpush1.bf16.msra.mxu0 %v5223_v51  ;;  %3625 = vmatprep.subr.bf16.mxu1 %v5228_v52  ;;  %v5307_v51 = vld [vmem:[%s6049_s18 + $0xb30] ss:$8 sps:$4 sm:$0xff]   ;;  %v5312_v52 = vld [vmem:[%s6049_s18 + $0x344] ss:$8 sps:$4 sm:$0xff]  }
  0xeb   : > { %3953 = vmatprep.subr.bf16.mxu0 %v5231_v53  ;;  %v5315_v53 = vld [vmem:[%s6049_s18 + $0xb44] ss:$8 sps:$4 sm:$0xff]  }
  0xed   : > { %3626 = vmatpush1.bf16.msra.mxu1 %v5226_v54  ;;  %v5310_v54 = vld [vmem:[%s6049_s18 + $0x340] ss:$8 sps:$4 sm:$0xff]  }
  0xee   : > { %3954 = vmatpush1.bf16.msra.mxu0 %v5229_v55  ;;  %3627 = vmatprep.subr.bf16.mxu1 %v5234_v56  ;;  %v5313_v55 = vld [vmem:[%s6049_s18 + $0xb40] ss:$8 sps:$4 sm:$0xff]   ;;  %v5318_v56 = vld [vmem:[%s6049_s18 + $0x354] ss:$8 sps:$4 sm:$0xff]  }
  0xef   : > { %3955 = vmatprep.subr.bf16.mxu0 %v5237_v57  ;;  %v5321_v57 = vld [vmem:[%s6049_s18 + $0xb54] ss:$8 sps:$4 sm:$0xff]  }
  0xf1   : > { %3628 = vmatpush1.bf16.msra.mxu1 %v5232_v58  ;;  %v5316_v58 = vld [vmem:[%s6049_s18 + $0x350] ss:$8 sps:$4 sm:$0xff]  }
  0xf2   : > { %3956 = vmatpush1.bf16.msra.mxu0 %v5235_v59  ;;  %3629 = vmatprep.subr.bf16.mxu1 %v5240_v60  ;;  %v5319_v59 = vld [vmem:[%s6049_s18 + $0xb50] ss:$8 sps:$4 sm:$0xff]   ;;  %v5324_v60 = vld [vmem:[%s6049_s18 + $0x364] ss:$8 sps:$4 sm:$0xff]  }
  0xf3   : > { %3957 = vmatprep.subr.bf16.mxu0 %v5243_v61  ;;  %v5327_v61 = vld [vmem:[%s6049_s18 + $0xb64] ss:$8 sps:$4 sm:$0xff]  }
  0xf5   : > { %3630 = vmatpush1.bf16.msra.mxu1 %v5238_v62  ;;  %v5322_v62 = vld [vmem:[%s6049_s18 + $0x360] ss:$8 sps:$4 sm:$0xff]  }
  0xf6   : > { %3958 = vmatpush1.bf16.msra.mxu0 %v5241_v63  ;;  %3631 = vmatprep.subr.bf16.mxu1 %v5246_v0  ;;  %v5325_v63 = vld [vmem:[%s6049_s18 + $0xb60] ss:$8 sps:$4 sm:$0xff]   ;;  %v5330_v0 = vld [vmem:[%s6049_s18 + $0x374] ss:$8 sps:$4 sm:$0xff]  }
  0xf7   : > { %3959 = vmatprep.subr.bf16.mxu0 %v5249_v1  ;;  %v5333_v1 = vld [vmem:[%s6049_s18 + $0xb74] ss:$8 sps:$4 sm:$0xff]  }
  0xf9   : > { %3632 = vmatpush1.bf16.msra.mxu1 %v5244_v2  ;;  %v5328_v2 = vld [vmem:[%s6049_s18 + $0x370] ss:$8 sps:$4 sm:$0xff]  }
  0xfa   : > { %3960 = vmatpush1.bf16.msra.mxu0 %v5247_v3  ;;  %3633 = vmatprep.subr.bf16.mxu1 %v5252_v4  ;;  %v5331_v3 = vld [vmem:[%s6049_s18 + $0xb70] ss:$8 sps:$4 sm:$0xff]   ;;  %v5336_v4 = vld [vmem:[%s6049_s18 + $0x384] ss:$8 sps:$4 sm:$0xff]  }
  0xfb   : > { %3961 = vmatprep.subr.bf16.mxu0 %v5255_v5  ;;  %v5339_v5 = vld [vmem:[%s6049_s18 + $0xb84] ss:$8 sps:$4 sm:$0xff]  }
  0xfd   : > { %3634 = vmatpush1.bf16.msra.mxu1 %v5250_v6  ;;  %v5334_v6 = vld [vmem:[%s6049_s18 + $0x380] ss:$8 sps:$4 sm:$0xff]  }
  0xfe   : > { %3962 = vmatpush1.bf16.msra.mxu0 %v5253_v7  ;;  %3635 = vmatprep.subr.bf16.mxu1 %v5258_v8  ;;  %v5337_v7 = vld [vmem:[%s6049_s18 + $0xb80] ss:$8 sps:$4 sm:$0xff]   ;;  %v5342_v8 = vld [vmem:[%s6049_s18 + $0x394] ss:$8 sps:$4 sm:$0xff]  }
  0xff   : > { %3963 = vmatprep.subr.bf16.mxu0 %v5261_v9  ;;  %v5345_v9 = vld [vmem:[%s6049_s18 + $0xb94] ss:$8 sps:$4 sm:$0xff]  }
 0x101   : > { %3636 = vmatpush1.bf16.msra.mxu1 %v5256_v10  ;;  %v5340_v10 = vld [vmem:[%s6049_s18 + $0x390] ss:$8 sps:$4 sm:$0xff]  }
 0x102   : > { %3964 = vmatpush1.bf16.msra.mxu0 %v5259_v11  ;;  %3637 = vmatprep.subr.bf16.mxu1 %v5264_v12  ;;  %v5343_v11 = vld [vmem:[%s6049_s18 + $0xb90] ss:$8 sps:$4 sm:$0xff]   ;;  %v5348_v12 = vld [vmem:[%s6049_s18 + $0x3a4] ss:$8 sps:$4 sm:$0xff]  }
 0x103   : > { %3965 = vmatprep.subr.bf16.mxu0 %v5267_v13  ;;  %v5351_v13 = vld [vmem:[%s6049_s18 + $0xba4] ss:$8 sps:$4 sm:$0xff]  }
 0x105   : > { %3638 = vmatpush1.bf16.msra.mxu1 %v5262_v14  ;;  %v5346_v14 = vld [vmem:[%s6049_s18 + $0x3a0] ss:$8 sps:$4 sm:$0xff]  }
 0x106   : > { %3966 = vmatpush1.bf16.msra.mxu0 %v5265_v15  ;;  %3639 = vmatprep.subr.bf16.mxu1 %v5270_v18  ;;  %v5349_v15 = vld [vmem:[%s6049_s18 + $0xba0] ss:$8 sps:$4 sm:$0xff]   ;;  %v5354_v18 = vld [vmem:[%s6049_s18 + $0x3b4] ss:$8 sps:$4 sm:$0xff]  }
 0x107   : > { %3967 = vmatprep.subr.bf16.mxu0 %v5273_v19  ;;  %v5357_v19 = vld [vmem:[%s6049_s18 + $0xbb4] ss:$8 sps:$4 sm:$0xff]  }
 0x109   : > { %3640 = vmatpush1.bf16.msra.mxu1 %v5268_v20  ;;  %v5352_v20 = vld [vmem:[%s6049_s18 + $0x3b0] ss:$8 sps:$4 sm:$0xff]  }
 0x10a   : > { %3968 = vmatpush1.bf16.msra.mxu0 %v5271_v21  ;;  %3641 = vmatprep.subr.bf16.mxu1 %v5276_v22  ;;  %v5355_v21 = vld [vmem:[%s6049_s18 + $0xbb0] ss:$8 sps:$4 sm:$0xff]   ;;  %v5360_v22 = vld [vmem:[%s6049_s18 + $0x3c4] ss:$8 sps:$4 sm:$0xff]  }
 0x10b   : > { %3969 = vmatprep.subr.bf16.mxu0 %v5279_v23  ;;  %v5363_v23 = vld [vmem:[%s6049_s18 + $0xbc4] ss:$8 sps:$4 sm:$0xff]  }
 0x10d   : > { %3642 = vmatpush1.bf16.msra.mxu1 %v5274_v24  ;;  %v5358_v24 = vld [vmem:[%s6049_s18 + $0x3c0] ss:$8 sps:$4 sm:$0xff]  }
 0x10e   : > { %3970 = vmatpush1.bf16.msra.mxu0 %v5277_v25  ;;  %3643 = vmatprep.subr.bf16.mxu1 %v5282_v26  ;;  %v5361_v25 = vld [vmem:[%s6049_s18 + $0xbc0] ss:$8 sps:$4 sm:$0xff]   ;;  %v5366_v26 = vld [vmem:[%s6049_s18 + $0x3d4] ss:$8 sps:$4 sm:$0xff]  }
 0x10f   : > { %3971 = vmatprep.subr.bf16.mxu0 %v5285_v28  ;;  %v5369_v28 = vld [vmem:[%s6049_s18 + $0xbd4] ss:$8 sps:$4 sm:$0xff]  }
 0x111   : > { %3644 = vmatpush1.bf16.msra.mxu1 %v5280_v33  ;;  %v5372_v33 = vld [vmem:[%s6049_s18 + $0x3e4] ss:$8 sps:$4 sm:$0xff]  }
 0x112   : > { %3972 = vmatpush1.bf16.msra.mxu0 %v5283_v35  ;;  %3654 = vmatprep.subr.bf16.mxu1 %v5288_v16  ;;  %v5375_v35 = vld [vmem:[%s6049_s18 + $0xbe4] ss:$8 sps:$4 sm:$0xff]   ;;  %v5370_v16 = vld [vmem:[%s6049_s18 + $0x3e0] ss:$8 sps:$4 sm:$0xff]  }
 0x113   : > { %3982 = vmatprep.subr.bf16.mxu0 %v5291_v17  ;;  %v5373_v17 = vld [vmem:[%s6049_s18 + $0xbe0] ss:$8 sps:$4 sm:$0xff]  }
 0x114   : > { %3646 = vmatmul.mubr.bf16.vlgmr.msra.gmra.mrb[0].mxu1 %v6225_v29  ;;  %v5301_v29 = vld [vmem:[%s6049_s18 + $0xb20] ss:$8 sps:$4 sm:$0xff]  }
 0x115   : > { %3974 = vmatmul.mubr.bf16.vlgmr.msra.gmra.mrb[0].mxu0 %v6240_v34  ;;  %3655 = vmatpush1.bf16.msra.mxu1 %v5286_v37  ;;  %v5306_v34 = vld [vmem:[%s6049_s18 + $0x334] ss:$8 sps:$4 sm:$0xff]  }
 0x116   : > { %3983 = vmatpush1.bf16.msra.mxu0 %v5289_v30  ;;  %3656 = vmatprep.subr.bf16.mxu1 %v5294_v38  ;;  %v5378_v37 = vld [vmem:[%s6049_s18 + $0x3f4] ss:$8 sps:$4 sm:$0xff]  }
 0x117   : > { %3984 = vmatprep.subr.bf16.mxu0 %v5297_v39  ;;  %3686 = vmatprep.mubr.bf16.mxu1 %v836_v40  ;;  %v5381_v30 = vld [vmem:[%s6049_s18 + $0xbf4] ss:$8 sps:$4 sm:$0xff]   ;;  %v5376_v40 = vld [vmem:[%s6049_s18 + $0x3f0] ss:$8 sps:$4 sm:$0xff]  }
 0x118   : > { %4014 = vmatprep.mubr.bf16.mxu0 %v904_v41  ;;  %v6381_v38 = vld [vmem:[%s6744_s0 + $0x10] sm:$0xff] }
 0x119   : > { %3657 = vmatpush1.bf16.msra.mxu1 %v5292_v42  ;;  %v6386_v39 = vld [vmem:[%s6744_s0 + $0x30] sm:$0xff]  ;;  %v5385_v42 = vld [vmem:[%s6049_s18 + $0x404] ss:$8 sps:$4 sm:$0xff]  }
 0x11a   : > { %3985 = vmatpush1.bf16.msra.mxu0 %v5295_v44  ;;  %3658 = vmatprep.subr.bf16.mxu1 %v5300_v45  ;;  %v5379_v41 = vld [vmem:[%s6049_s18 + $0xbf0] ss:$8 sps:$4 sm:$0xff]   ;;  %v5389_v44 = vld [vmem:[%s6049_s18 + $0xc04] ss:$8 sps:$4 sm:$0xff]   ;;  %v6394_v45 = vrot.slane %v6381_v38, %v6108_v49 }
 0x11b   : > { %3986 = vmatprep.subr.bf16.mxu0 %v5303_v46  ;;  %v6398_v46 = vrot.slane %v6386_v39, %v6108_v49 }
 0x11d   : > { %3659 = vmatpush1.bf16.msra.mxu1 %v5298_v47  ;;  %v5383_v47 = vld [vmem:[%s6049_s18 + $0x400] ss:$8 sps:$4 sm:$0xff]  }
 0x11e   : > { %3987 = vmatpush1.bf16.msra.mxu0 %v5301_v29  ;;  %3660 = vmatprep.subr.bf16.mxu1 %v5306_v34  ;;  %v5387_v29 = vld [vmem:[%s6049_s18 + $0xc00] ss:$8 sps:$4 sm:$0xff]   ;;  %v5392_v34 = vld [vmem:[%s6049_s18 + $0x414] ss:$8 sps:$4 sm:$0xff]  }
 0x11f   : > { %3988 = vmatprep.subr.bf16.mxu0 %v5309_v48  ;;  %v5395_v48 = vld [vmem:[%s6049_s18 + $0xc14] ss:$8 sps:$4 sm:$0xff]  }
 0x121   : > { %3661 = vmatpush1.bf16.msra.mxu1 %v5304_v50  ;;  %v852_v50 = vcombine.high %v6394_v45, %v6394_v45 }
 0x122   : > { %3989 = vmatpush1.bf16.msra.mxu0 %v5307_v51  ;;  %3662 = vmatprep.subr.bf16.mxu1 %v5312_v52  ;;  %v920_v51 = vcombine.high %v6398_v46, %v6398_v46  ;;  %v5390_v52 = vld [vmem:[%s6049_s18 + $0x410] ss:$8 sps:$4 sm:$0xff]  }
 0x123   : > { %3990 = vmatprep.subr.bf16.mxu0 %v5315_v53  ;;  %v5393_v53 = vld [vmem:[%s6049_s18 + $0xc10] ss:$8 sps:$4 sm:$0xff]  }
 0x125   : > { %3663 = vmatpush1.bf16.msra.mxu1 %v5310_v54  ;;  %v5398_v54 = vld [vmem:[%s6049_s18 + $0x424] ss:$8 sps:$4 sm:$0xff]  }
 0x126   : > { %3991 = vmatpush1.bf16.msra.mxu0 %v5313_v55  ;;  %3664 = vmatprep.subr.bf16.mxu1 %v5318_v56  ;;  %v5401_v55 = vld [vmem:[%s6049_s18 + $0xc24] ss:$8 sps:$4 sm:$0xff]   ;;  %v5404_v56 = vld [vmem:[%s6049_s18 + $0x434] ss:$8 sps:$4 sm:$0xff]  }
 0x127   : > { %3992 = vmatprep.subr.bf16.mxu0 %v5321_v57  ;;  %v5407_v57 = vld [vmem:[%s6049_s18 + $0xc34] ss:$8 sps:$4 sm:$0xff]  }
 0x129   : > { %3665 = vmatpush1.bf16.msra.mxu1 %v5316_v58  ;;  %v5402_v58 = vld [vmem:[%s6049_s18 + $0x430] ss:$8 sps:$4 sm:$0xff]  }
 0x12a   : > { %3993 = vmatpush1.bf16.msra.mxu0 %v5319_v59  ;;  %3666 = vmatprep.subr.bf16.mxu1 %v5324_v60  ;;  %v5405_v59 = vld [vmem:[%s6049_s18 + $0xc30] ss:$8 sps:$4 sm:$0xff]   ;;  %v5410_v60 = vld [vmem:[%s6049_s18 + $0x444] ss:$8 sps:$4 sm:$0xff]  }
 0x12b   : > { %3994 = vmatprep.subr.bf16.mxu0 %v5327_v61  ;;  %v5413_v61 = vld [vmem:[%s6049_s18 + $0xc44] ss:$8 sps:$4 sm:$0xff]  }
 0x12d   : > { %3667 = vmatpush1.bf16.msra.mxu1 %v5322_v62  ;;  %v5408_v62 = vld [vmem:[%s6049_s18 + $0x440] ss:$8 sps:$4 sm:$0xff]  }
 0x12e   : > { %3995 = vmatpush1.bf16.msra.mxu0 %v5325_v63  ;;  %3668 = vmatprep.subr.bf16.mxu1 %v5330_v0  ;;  %v5411_v63 = vld [vmem:[%s6049_s18 + $0xc40] ss:$8 sps:$4 sm:$0xff]   ;;  %v5416_v0 = vld [vmem:[%s6049_s18 + $0x454] ss:$8 sps:$4 sm:$0xff]  }
 0x12f   : > { %3996 = vmatprep.subr.bf16.mxu0 %v5333_v1  ;;  %v5419_v1 = vld [vmem:[%s6049_s18 + $0xc54] ss:$8 sps:$4 sm:$0xff]  }
 0x131   : > { %3669 = vmatpush1.bf16.msra.mxu1 %v5328_v2  ;;  %v5414_v2 = vld [vmem:[%s6049_s18 + $0x450] ss:$8 sps:$4 sm:$0xff]  }
 0x132   : > { %3997 = vmatpush1.bf16.msra.mxu0 %v5331_v3  ;;  %3670 = vmatprep.subr.bf16.mxu1 %v5336_v4  ;;  %v5417_v3 = vld [vmem:[%s6049_s18 + $0xc50] ss:$8 sps:$4 sm:$0xff]   ;;  %v5422_v4 = vld [vmem:[%s6049_s18 + $0x464] ss:$8 sps:$4 sm:$0xff]  }
 0x133   : > { %3998 = vmatprep.subr.bf16.mxu0 %v5339_v5  ;;  %v5425_v5 = vld [vmem:[%s6049_s18 + $0xc64] ss:$8 sps:$4 sm:$0xff]  }
 0x135   : > { %3671 = vmatpush1.bf16.msra.mxu1 %v5334_v6  ;;  %v5420_v6 = vld [vmem:[%s6049_s18 + $0x460] ss:$8 sps:$4 sm:$0xff]  }
 0x136   : > { %3999 = vmatpush1.bf16.msra.mxu0 %v5337_v7  ;;  %3672 = vmatprep.subr.bf16.mxu1 %v5342_v8  ;;  %v5423_v7 = vld [vmem:[%s6049_s18 + $0xc60] ss:$8 sps:$4 sm:$0xff]   ;;  %v5428_v8 = vld [vmem:[%s6049_s18 + $0x474] ss:$8 sps:$4 sm:$0xff]  }
 0x137   : > { %4000 = vmatprep.subr.bf16.mxu0 %v5345_v9  ;;  %v5431_v9 = vld [vmem:[%s6049_s18 + $0xc74] ss:$8 sps:$4 sm:$0xff]  }
 0x139   : > { %3673 = vmatpush1.bf16.msra.mxu1 %v5340_v10  ;;  %v5426_v10 = vld [vmem:[%s6049_s18 + $0x470] ss:$8 sps:$4 sm:$0xff]  }
 0x13a   : > { %4001 = vmatpush1.bf16.msra.mxu0 %v5343_v11  ;;  %3674 = vmatprep.subr.bf16.mxu1 %v5348_v12  ;;  %v5429_v11 = vld [vmem:[%s6049_s18 + $0xc70] ss:$8 sps:$4 sm:$0xff]   ;;  %v5434_v12 = vld [vmem:[%s6049_s18 + $0x484] ss:$8 sps:$4 sm:$0xff]  }
 0x13b   : > { %4002 = vmatprep.subr.bf16.mxu0 %v5351_v13  ;;  %v5437_v13 = vld [vmem:[%s6049_s18 + $0xc84] ss:$8 sps:$4 sm:$0xff]  }
 0x13d   : > { %3675 = vmatpush1.bf16.msra.mxu1 %v5346_v14  ;;  %v5432_v14 = vld [vmem:[%s6049_s18 + $0x480] ss:$8 sps:$4 sm:$0xff]  }
 0x13e   : > { %4003 = vmatpush1.bf16.msra.mxu0 %v5349_v15  ;;  %3676 = vmatprep.subr.bf16.mxu1 %v5354_v18  ;;  %v5435_v15 = vld [vmem:[%s6049_s18 + $0xc80] ss:$8 sps:$4 sm:$0xff]   ;;  %v5440_v18 = vld [vmem:[%s6049_s18 + $0x494] ss:$8 sps:$4 sm:$0xff]  }
 0x13f   : > { %4004 = vmatprep.subr.bf16.mxu0 %v5357_v19  ;;  %v5443_v19 = vld [vmem:[%s6049_s18 + $0xc94] ss:$8 sps:$4 sm:$0xff]  }
 0x141   : > { %3677 = vmatpush1.bf16.msra.mxu1 %v5352_v20  ;;  %v5438_v20 = vld [vmem:[%s6049_s18 + $0x490] ss:$8 sps:$4 sm:$0xff]  }
 0x142   : > { %4005 = vmatpush1.bf16.msra.mxu0 %v5355_v21  ;;  %3678 = vmatprep.subr.bf16.mxu1 %v5360_v22  ;;  %v5441_v21 = vld [vmem:[%s6049_s18 + $0xc90] ss:$8 sps:$4 sm:$0xff]   ;;  %v5446_v22 = vld [vmem:[%s6049_s18 + $0x4a4] ss:$8 sps:$4 sm:$0xff]  }
 0x143   : > { %4006 = vmatprep.subr.bf16.mxu0 %v5363_v23  ;;  %v5449_v23 = vld [vmem:[%s6049_s18 + $0xca4] ss:$8 sps:$4 sm:$0xff]  }
 0x145   : > { %3679 = vmatpush1.bf16.msra.mxu1 %v5358_v24  ;;  %v5444_v24 = vld [vmem:[%s6049_s18 + $0x4a0] ss:$8 sps:$4 sm:$0xff]  }
 0x146   : > { %4007 = vmatpush1.bf16.msra.mxu0 %v5361_v25  ;;  %3680 = vmatprep.subr.bf16.mxu1 %v5366_v26  ;;  %v5447_v25 = vld [vmem:[%s6049_s18 + $0xca0] ss:$8 sps:$4 sm:$0xff]   ;;  %v5452_v26 = vld [vmem:[%s6049_s18 + $0x4b4] ss:$8 sps:$4 sm:$0xff]  }
 0x147   : > { %4008 = vmatprep.subr.bf16.mxu0 %v5369_v28  ;;  %v5455_v28 = vld [vmem:[%s6049_s18 + $0xcb4] ss:$8 sps:$4 sm:$0xff]  }
 0x149   : > { %3681 = vmatpush1.bf16.msra.mxu1 %v5364_v31  ;;  %v5450_v31 = vld [vmem:[%s6049_s18 + $0x4b0] ss:$8 sps:$4 sm:$0xff]  }
 0x14a   : > { %4009 = vmatpush1.bf16.msra.mxu0 %v5367_v32  ;;  %3682 = vmatprep.subr.bf16.mxu1 %v5372_v33  ;;  %v5453_v32 = vld [vmem:[%s6049_s18 + $0xcb0] ss:$8 sps:$4 sm:$0xff]   ;;  %v5458_v33 = vld [vmem:[%s6049_s18 + $0x4c4] ss:$8 sps:$4 sm:$0xff]  }
 0x14b   : > { %4010 = vmatprep.subr.bf16.mxu0 %v5375_v35  ;;  %v5461_v35 = vld [vmem:[%s6049_s18 + $0xcc4] ss:$8 sps:$4 sm:$0xff]  }
 0x14d   : > { %3683 = vmatpush1.bf16.msra.mxu1 %v5370_v16  ;;  %v5456_v16 = vld [vmem:[%s6049_s18 + $0x4c0] ss:$8 sps:$4 sm:$0xff]  }
 0x14e   : > { %4011 = vmatpush1.bf16.msra.mxu0 %v5373_v17  ;;  %3684 = vmatprep.subr.bf16.mxu1 %v5378_v37  ;;  %v5459_v17 = vld [vmem:[%s6049_s18 + $0xcc0] ss:$8 sps:$4 sm:$0xff]   ;;  %v5464_v37 = vld [vmem:[%s6049_s18 + $0x4d4] ss:$8 sps:$4 sm:$0xff]  }
 0x14f   : > { %4012 = vmatprep.subr.bf16.mxu0 %v5381_v30  ;;  %v5467_v30 = vld [vmem:[%s6049_s18 + $0xcd4] ss:$8 sps:$4 sm:$0xff]  }
 0x151   : > { %3685 = vmatpush1.bf16.msra.mxu1 %v5376_v40  ;;  %v5462_v40 = vld [vmem:[%s6049_s18 + $0x4d0] ss:$8 sps:$4 sm:$0xff]  }
 0x152   : > { %4013 = vmatpush1.bf16.msra.mxu0 %v5379_v41  ;;  %3695 = vmatprep.subr.bf16.mxu1 %v5385_v42  ;;  %v5465_v41 = vld [vmem:[%s6049_s18 + $0xcd0] ss:$8 sps:$4 sm:$0xff]   ;;  %v5470_v42 = vld [vmem:[%s6049_s18 + $0x4e4] ss:$8 sps:$4 sm:$0xff]  }
 0x153   : > { %4023 = vmatprep.subr.bf16.mxu0 %v5389_v44  ;;  %v5473_v44 = vld [vmem:[%s6049_s18 + $0xce4] ss:$8 sps:$4 sm:$0xff]  }
 0x154   : > { %3687 = vmatmul.mubr.bf16.vlgmr.msra.gmra.mrb[0].mxu1 %v6307_v36  ;;  %v5396_v36 = vld [vmem:[%s6049_s18 + $0x420] ss:$8 sps:$4 sm:$0xff]  }
 0x155   : > { %4015 = vmatmul.mubr.bf16.vlgmr.msra.gmra.mrb[0].mxu0 %v6310_v27  ;;  %3696 = vmatpush1.bf16.msra.mxu1 %v5383_v47  ;;  %v5399_v27 = vld [vmem:[%s6049_s18 + $0xc20] ss:$8 sps:$4 sm:$0xff]  }
 0x156   : > { %4024 = vmatpush1.bf16.msra.mxu0 %v5387_v29  ;;  %3697 = vmatprep.subr.bf16.mxu1 %v5392_v34  ;;  %v5468_v47 = vld [vmem:[%s6049_s18 + $0x4e0] ss:$8 sps:$4 sm:$0xff]   ;;  %v5476_v34 = vld [vmem:[%s6049_s18 + $0x4f4] ss:$8 sps:$4 sm:$0xff]  }
 0x157   : > { %4025 = vmatprep.subr.bf16.mxu0 %v5395_v48  ;;  %3727 = vmatprep.mubr.bf16.mxu1 %v852_v50  ;;  %v5471_v29 = vld [vmem:[%s6049_s18 + $0xce0] ss:$8 sps:$4 sm:$0xff]   ;;  %v5479_v48 = vld [vmem:[%s6049_s18 + $0xcf4] ss:$8 sps:$4 sm:$0xff]   ;;  %v837_v50 = vcombine.high %v6381_v38, %v6381_v38 }
 0x158   : > { %4055 = vmatprep.mubr.bf16.mxu0 %v920_v51  ;;  %v905_v51 = vcombine.high %v6386_v39, %v6386_v39  ;;  %v5480_v38 = vld [vmem:[%s6049_s18 + $0x500] ss:$8 sps:$4 sm:$0xff]  }
 0x159   : > { %3698 = vmatpush1.bf16.msra.mxu1 %v5390_v52  ;;  %v5474_v52 = vld [vmem:[%s6049_s18 + $0x4f0] ss:$8 sps:$4 sm:$0xff]   ;;  %v5483_v39 = vld [vmem:[%s6049_s18 + $0xd00] ss:$8 sps:$4 sm:$0xff]  }
 0x15a   : > { %4026 = vmatpush1.bf16.msra.mxu0 %v5393_v53  ;;  %3699 = vmatprep.subr.bf16.mxu1 %v5398_v54  ;;  %v5477_v53 = vld [vmem:[%s6049_s18 + $0xcf0] ss:$8 sps:$4 sm:$0xff]   ;;  %v5482_v54 = vld [vmem:[%s6049_s18 + $0x504] ss:$8 sps:$4 sm:$0xff]  }
 0x15b   : > { %4027 = vmatprep.subr.bf16.mxu0 %v5401_v55  ;;  %v5485_v55 = vld [vmem:[%s6049_s18 + $0xd04] ss:$8 sps:$4 sm:$0xff]  }
 0x15d   : > { %3700 = vmatpush1.bf16.msra.mxu1 %v5396_v36  ;;  %v6475_v36 = vrot.slane %v837_v50, %v6108_v49  ;;  %v5558_v50 = vld [vmem:[%s6049_s18 + $0x5d0] ss:$8 sps:$4 sm:$0xff]  }
 0x15e   : > { %4028 = vmatpush1.bf16.msra.mxu0 %v5399_v27  ;;  %3701 = vmatprep.subr.bf16.mxu1 %v5404_v56  ;;  %v6478_v27 = vrot.slane %v905_v51, %v6108_v49  ;;  %v5488_v56 = vld [vmem:[%s6049_s18 + $0x514] ss:$8 sps:$4 sm:$0xff]   ;;  %v5561_v51 = vld [vmem:[%s6049_s18 + $0xdd0] ss:$8 sps:$4 sm:$0xff]  }
 0x15f   : > { %4029 = vmatprep.subr.bf16.mxu0 %v5407_v57  ;;  %v5491_v57 = vld [vmem:[%s6049_s18 + $0xd14] ss:$8 sps:$4 sm:$0xff]  }
 0x161   : > { %3702 = vmatpush1.bf16.msra.mxu1 %v5402_v58  ;;  %v853_v58 = vcombine.high %v6475_v36, %v6475_v36 }
 0x162   : > { %4030 = vmatpush1.bf16.msra.mxu0 %v5405_v59  ;;  %3703 = vmatprep.subr.bf16.mxu1 %v5410_v60  ;;  %v921_v59 = vcombine.high %v6478_v27, %v6478_v27  ;;  %v5486_v60 = vld [vmem:[%s6049_s18 + $0x510] ss:$8 sps:$4 sm:$0xff]  }
 0x163   : > { %4031 = vmatprep.subr.bf16.mxu0 %v5413_v61  ;;  %v5489_v61 = vld [vmem:[%s6049_s18 + $0xd10] ss:$8 sps:$4 sm:$0xff]  }
 0x165   : > { %3704 = vmatpush1.bf16.msra.mxu1 %v5408_v62  ;;  %v5494_v62 = vld [vmem:[%s6049_s18 + $0x524] ss:$8 sps:$4 sm:$0xff]  }
 0x166   : > { %4032 = vmatpush1.bf16.msra.mxu0 %v5411_v63  ;;  %3705 = vmatprep.subr.bf16.mxu1 %v5416_v0  ;;  %v5497_v63 = vld [vmem:[%s6049_s18 + $0xd24] ss:$8 sps:$4 sm:$0xff]   ;;  %v5500_v0 = vld [vmem:[%s6049_s18 + $0x534] ss:$8 sps:$4 sm:$0xff]  }
 0x167   : > { %4033 = vmatprep.subr.bf16.mxu0 %v5419_v1  ;;  %v5503_v1 = vld [vmem:[%s6049_s18 + $0xd34] ss:$8 sps:$4 sm:$0xff]  }
 0x169   : > { %3706 = vmatpush1.bf16.msra.mxu1 %v5414_v2  ;;  %v5498_v2 = vld [vmem:[%s6049_s18 + $0x530] ss:$8 sps:$4 sm:$0xff]  }
 0x16a   : > { %4034 = vmatpush1.bf16.msra.mxu0 %v5417_v3  ;;  %3707 = vmatprep.subr.bf16.mxu1 %v5422_v4  ;;  %v5501_v3 = vld [vmem:[%s6049_s18 + $0xd30] ss:$8 sps:$4 sm:$0xff]   ;;  %v5506_v4 = vld [vmem:[%s6049_s18 + $0x544] ss:$8 sps:$4 sm:$0xff]  }
 0x16b   : > { %4035 = vmatprep.subr.bf16.mxu0 %v5425_v5  ;;  %v5509_v5 = vld [vmem:[%s6049_s18 + $0xd44] ss:$8 sps:$4 sm:$0xff]  }
 0x16d   : > { %3708 = vmatpush1.bf16.msra.mxu1 %v5420_v6  ;;  %v5504_v6 = vld [vmem:[%s6049_s18 + $0x540] ss:$8 sps:$4 sm:$0xff]  }
 0x16e   : > { %4036 = vmatpush1.bf16.msra.mxu0 %v5423_v7  ;;  %3709 = vmatprep.subr.bf16.mxu1 %v5428_v8  ;;  %v5507_v7 = vld [vmem:[%s6049_s18 + $0xd40] ss:$8 sps:$4 sm:$0xff]   ;;  %v5512_v8 = vld [vmem:[%s6049_s18 + $0x554] ss:$8 sps:$4 sm:$0xff]  }
 0x16f   : > { %4037 = vmatprep.subr.bf16.mxu0 %v5431_v9  ;;  %v5515_v9 = vld [vmem:[%s6049_s18 + $0xd54] ss:$8 sps:$4 sm:$0xff]  }
 0x171   : > { %3710 = vmatpush1.bf16.msra.mxu1 %v5426_v10  ;;  %v5510_v10 = vld [vmem:[%s6049_s18 + $0x550] ss:$8 sps:$4 sm:$0xff]  }
 0x172   : > { %4038 = vmatpush1.bf16.msra.mxu0 %v5429_v11  ;;  %3711 = vmatprep.subr.bf16.mxu1 %v5434_v12  ;;  %v5513_v11 = vld [vmem:[%s6049_s18 + $0xd50] ss:$8 sps:$4 sm:$0xff]   ;;  %v5518_v12 = vld [vmem:[%s6049_s18 + $0x564] ss:$8 sps:$4 sm:$0xff]  }
 0x173   : > { %4039 = vmatprep.subr.bf16.mxu0 %v5437_v13  ;;  %v5521_v13 = vld [vmem:[%s6049_s18 + $0xd64] ss:$8 sps:$4 sm:$0xff]  }
 0x175   : > { %3712 = vmatpush1.bf16.msra.mxu1 %v5432_v14  ;;  %v5516_v14 = vld [vmem:[%s6049_s18 + $0x560] ss:$8 sps:$4 sm:$0xff]  }
 0x176   : > { %4040 = vmatpush1.bf16.msra.mxu0 %v5435_v15  ;;  %3713 = vmatprep.subr.bf16.mxu1 %v5440_v18  ;;  %v5519_v15 = vld [vmem:[%s6049_s18 + $0xd60] ss:$8 sps:$4 sm:$0xff]   ;;  %v5524_v18 = vld [vmem:[%s6049_s18 + $0x574] ss:$8 sps:$4 sm:$0xff]  }
 0x177   : > { %4041 = vmatprep.subr.bf16.mxu0 %v5443_v19  ;;  %v5527_v19 = vld [vmem:[%s6049_s18 + $0xd74] ss:$8 sps:$4 sm:$0xff]  }
 0x179   : > { %3714 = vmatpush1.bf16.msra.mxu1 %v5438_v20  ;;  %v5522_v20 = vld [vmem:[%s6049_s18 + $0x570] ss:$8 sps:$4 sm:$0xff]  }
 0x17a   : > { %4042 = vmatpush1.bf16.msra.mxu0 %v5441_v21  ;;  %3715 = vmatprep.subr.bf16.mxu1 %v5446_v22  ;;  %v5525_v21 = vld [vmem:[%s6049_s18 + $0xd70] ss:$8 sps:$4 sm:$0xff]   ;;  %v5530_v22 = vld [vmem:[%s6049_s18 + $0x584] ss:$8 sps:$4 sm:$0xff]  }
 0x17b   : > { %4043 = vmatprep.subr.bf16.mxu0 %v5449_v23  ;;  %v5533_v23 = vld [vmem:[%s6049_s18 + $0xd84] ss:$8 sps:$4 sm:$0xff]  }
 0x17d   : > { %3716 = vmatpush1.bf16.msra.mxu1 %v5444_v24  ;;  %v5528_v24 = vld [vmem:[%s6049_s18 + $0x580] ss:$8 sps:$4 sm:$0xff]  }
 0x17e   : > { %4044 = vmatpush1.bf16.msra.mxu0 %v5447_v25  ;;  %3717 = vmatprep.subr.bf16.mxu1 %v5452_v26  ;;  %v5531_v25 = vld [vmem:[%s6049_s18 + $0xd80] ss:$8 sps:$4 sm:$0xff]   ;;  %v5536_v26 = vld [vmem:[%s6049_s18 + $0x594] ss:$8 sps:$4 sm:$0xff]  }
 0x17f   : > { %4045 = vmatprep.subr.bf16.mxu0 %v5455_v28  ;;  %v5539_v28 = vld [vmem:[%s6049_s18 + $0xd94] ss:$8 sps:$4 sm:$0xff]  }
 0x181   : > { %3718 = vmatpush1.bf16.msra.mxu1 %v5450_v31  ;;  %v5534_v31 = vld [vmem:[%s6049_s18 + $0x590] ss:$8 sps:$4 sm:$0xff]  }
 0x182   : > { %4046 = vmatpush1.bf16.msra.mxu0 %v5453_v32  ;;  %3719 = vmatprep.subr.bf16.mxu1 %v5458_v33  ;;  %v5537_v32 = vld [vmem:[%s6049_s18 + $0xd90] ss:$8 sps:$4 sm:$0xff]   ;;  %v5542_v33 = vld [vmem:[%s6049_s18 + $0x5a4] ss:$8 sps:$4 sm:$0xff]  }
 0x183   : > { %4047 = vmatprep.subr.bf16.mxu0 %v5461_v35  ;;  %v5545_v35 = vld [vmem:[%s6049_s18 + $0xda4] ss:$8 sps:$4 sm:$0xff]  }
 0x185   : > { %3720 = vmatpush1.bf16.msra.mxu1 %v5456_v16  ;;  %v5540_v16 = vld [vmem:[%s6049_s18 + $0x5a0] ss:$8 sps:$4 sm:$0xff]  }
 0x186   : > { %4048 = vmatpush1.bf16.msra.mxu0 %v5459_v17  ;;  %3721 = vmatprep.subr.bf16.mxu1 %v5464_v37  ;;  %v5543_v17 = vld [vmem:[%s6049_s18 + $0xda0] ss:$8 sps:$4 sm:$0xff]   ;;  %v5548_v37 = vld [vmem:[%s6049_s18 + $0x5b4] ss:$8 sps:$4 sm:$0xff]  }
 0x187   : > { %4049 = vmatprep.subr.bf16.mxu0 %v5467_v30  ;;  %v5551_v30 = vld [vmem:[%s6049_s18 + $0xdb4] ss:$8 sps:$4 sm:$0xff]  }
 0x189   : > { %3722 = vmatpush1.bf16.msra.mxu1 %v5462_v40  ;;  %v5546_v40 = vld [vmem:[%s6049_s18 + $0x5b0] ss:$8 sps:$4 sm:$0xff]  }
 0x18a   : > { %4050 = vmatpush1.bf16.msra.mxu0 %v5465_v41  ;;  %3723 = vmatprep.subr.bf16.mxu1 %v5470_v42  ;;  %v5549_v41 = vld [vmem:[%s6049_s18 + $0xdb0] ss:$8 sps:$4 sm:$0xff]   ;;  %v5554_v42 = vld [vmem:[%s6049_s18 + $0x5c4] ss:$8 sps:$4 sm:$0xff]  }
 0x18b   : > { %4051 = vmatprep.subr.bf16.mxu0 %v5473_v44  ;;  %v5557_v44 = vld [vmem:[%s6049_s18 + $0xdc4] ss:$8 sps:$4 sm:$0xff]  }
 0x18d   : > { %3724 = vmatpush1.bf16.msra.mxu1 %v5468_v47  ;;  %v5552_v47 = vld [vmem:[%s6049_s18 + $0x5c0] ss:$8 sps:$4 sm:$0xff]  }
 0x18e   : > { %4052 = vmatpush1.bf16.msra.mxu0 %v5471_v29  ;;  %3725 = vmatprep.subr.bf16.mxu1 %v5476_v34  ;;  %v5555_v29 = vld [vmem:[%s6049_s18 + $0xdc0] ss:$8 sps:$4 sm:$0xff]   ;;  %v5560_v34 = vld [vmem:[%s6049_s18 + $0x5d4] ss:$8 sps:$4 sm:$0xff]  }
 0x18f   : > { %4053 = vmatprep.subr.bf16.mxu0 %v5479_v48  ;;  %v5563_v48 = vld [vmem:[%s6049_s18 + $0xdd4] ss:$8 sps:$4 sm:$0xff]  }
 0x191   : > { %3726 = vmatpush1.bf16.msra.mxu1 %v5474_v52  ;;  %v5566_v52 = vld [vmem:[%s6049_s18 + $0x5e4] ss:$8 sps:$4 sm:$0xff]  }
 0x192   : > { %4054 = vmatpush1.bf16.msra.mxu0 %v5477_v53  ;;  %3736 = vmatprep.subr.bf16.mxu1 %v5482_v54  ;;  %v5569_v53 = vld [vmem:[%s6049_s18 + $0xde4] ss:$8 sps:$4 sm:$0xff]   ;;  %v5564_v54 = vld [vmem:[%s6049_s18 + $0x5e0] ss:$8 sps:$4 sm:$0xff]  }
 0x193   : > { %4064 = vmatprep.subr.bf16.mxu0 %v5485_v55  ;;  %v5567_v55 = vld [vmem:[%s6049_s18 + $0xde0] ss:$8 sps:$4 sm:$0xff]  }
 0x194   : > { %3728 = vmatmul.mubr.bf16.vlgmr.msra.gmra.mrb[0].mxu1 %v6394_v45  ;;  %v5492_v45 = vld [vmem:[%s6049_s18 + $0x520] ss:$8 sps:$4 sm:$0xff]  }
 0x195   : > { %4056 = vmatmul.mubr.bf16.vlgmr.msra.gmra.mrb[0].mxu0 %v6398_v46  ;;  %3737 = vmatpush1.bf16.msra.mxu1 %v5480_v38  ;;  %v5495_v46 = vld [vmem:[%s6049_s18 + $0xd20] ss:$8 sps:$4 sm:$0xff]   ;;  %v5572_v38 = vld [vmem:[%s6049_s18 + $0x5f4] ss:$8 sps:$4 sm:$0xff]  }
 0x196   : > { %4065 = vmatpush1.bf16.msra.mxu0 %v5483_v39  ;;  %3738 = vmatprep.subr.bf16.mxu1 %v5488_v56  ;;  %v5575_v39 = vld [vmem:[%s6049_s18 + $0xdf4] ss:$8 sps:$4 sm:$0xff]  }
 0x197   : > { %4066 = vmatprep.subr.bf16.mxu0 %v5491_v57  ;;  %3768 = vmatprep.mubr.bf16.mxu1 %v853_v58  ;;  %v6549_v56 = vld [vmem:[%s6744_s0 + $0x18] sm:$0xff] }
 0x198   : > { %4096 = vmatprep.mubr.bf16.mxu0 %v921_v59  ;;  %v6554_v57 = vld [vmem:[%s6744_s0 + $0x38] sm:$0xff] }
 0x199   : > { %3739 = vmatpush1.bf16.msra.mxu1 %v5486_v60  ;;  %v5570_v58 = vld [vmem:[%s6049_s18 + $0x5f0] ss:$8 sps:$4 sm:$0xff]   ;;  %v5579_v60 = vld [vmem:[%s6049_s18 + $0x604] ss:$8 sps:$4 sm:$0xff]  }
 0x19a   : > { %4067 = vmatpush1.bf16.msra.mxu0 %v5489_v61  ;;  %3740 = vmatprep.subr.bf16.mxu1 %v5494_v62  ;;  %v5573_v59 = vld [vmem:[%s6049_s18 + $0xdf0] ss:$8 sps:$4 sm:$0xff]   ;;  %v5583_v61 = vld [vmem:[%s6049_s18 + $0xe04] ss:$8 sps:$4 sm:$0xff]   ;;  %v6562_v62 = vrot.slane %v6549_v56, %v6108_v49 }
 0x19b   : > { %4068 = vmatprep.subr.bf16.mxu0 %v5497_v63  ;;  %v6566_v63 = vrot.slane %v6554_v57, %v6108_v49 }
 0x19d   : > { %3741 = vmatpush1.bf16.msra.mxu1 %v5492_v45  ;;  %v5577_v45 = vld [vmem:[%s6049_s18 + $0x600] ss:$8 sps:$4 sm:$0xff]  }
 0x19e   : > { %4069 = vmatpush1.bf16.msra.mxu0 %v5495_v46  ;;  %3742 = vmatprep.subr.bf16.mxu1 %v5500_v0  ;;  %v5581_v46 = vld [vmem:[%s6049_s18 + $0xe00] ss:$8 sps:$4 sm:$0xff]   ;;  %v5586_v0 = vld [vmem:[%s6049_s18 + $0x614] ss:$8 sps:$4 sm:$0xff]  }
 0x19f   : > { %4070 = vmatprep.subr.bf16.mxu0 %v5503_v1  ;;  %v5589_v1 = vld [vmem:[%s6049_s18 + $0xe14] ss:$8 sps:$4 sm:$0xff]  }
 0x1a1   : > { %3743 = vmatpush1.bf16.msra.mxu1 %v5498_v2  ;;  %v869_v2 = vcombine.high %v6562_v62, %v6562_v62 }
 0x1a2   : > { %4071 = vmatpush1.bf16.msra.mxu0 %v5501_v3  ;;  %3744 = vmatprep.subr.bf16.mxu1 %v5506_v4  ;;  %v937_v3 = vcombine.high %v6566_v63, %v6566_v63  ;;  %v5584_v4 = vld [vmem:[%s6049_s18 + $0x610] ss:$8 sps:$4 sm:$0xff]  }
 0x1a3   : > { %4072 = vmatprep.subr.bf16.mxu0 %v5509_v5  ;;  %v5587_v5 = vld [vmem:[%s6049_s18 + $0xe10] ss:$8 sps:$4 sm:$0xff]  }
 0x1a5   : > { %3745 = vmatpush1.bf16.msra.mxu1 %v5504_v6  ;;  %v5592_v6 = vld [vmem:[%s6049_s18 + $0x624] ss:$8 sps:$4 sm:$0xff]  }
 0x1a6   : > { %4073 = vmatpush1.bf16.msra.mxu0 %v5507_v7  ;;  %3746 = vmatprep.subr.bf16.mxu1 %v5512_v8  ;;  %v5595_v7 = vld [vmem:[%s6049_s18 + $0xe24] ss:$8 sps:$4 sm:$0xff]   ;;  %v5598_v8 = vld [vmem:[%s6049_s18 + $0x634] ss:$8 sps:$4 sm:$0xff]  }
 0x1a7   : > { %4074 = vmatprep.subr.bf16.mxu0 %v5515_v9  ;;  %v5601_v9 = vld [vmem:[%s6049_s18 + $0xe34] ss:$8 sps:$4 sm:$0xff]  }
 0x1a9   : > { %3747 = vmatpush1.bf16.msra.mxu1 %v5510_v10  ;;  %v5596_v10 = vld [vmem:[%s6049_s18 + $0x630] ss:$8 sps:$4 sm:$0xff]  }
 0x1aa   : > { %4075 = vmatpush1.bf16.msra.mxu0 %v5513_v11  ;;  %3748 = vmatprep.subr.bf16.mxu1 %v5518_v12  ;;  %v5599_v11 = vld [vmem:[%s6049_s18 + $0xe30] ss:$8 sps:$4 sm:$0xff]   ;;  %v5604_v12 = vld [vmem:[%s6049_s18 + $0x644] ss:$8 sps:$4 sm:$0xff]  }
 0x1ab   : > { %4076 = vmatprep.subr.bf16.mxu0 %v5521_v13  ;;  %v5607_v13 = vld [vmem:[%s6049_s18 + $0xe44] ss:$8 sps:$4 sm:$0xff]  }
 0x1ad   : > { %3749 = vmatpush1.bf16.msra.mxu1 %v5516_v14  ;;  %v5602_v14 = vld [vmem:[%s6049_s18 + $0x640] ss:$8 sps:$4 sm:$0xff]  }
 0x1ae   : > { %4077 = vmatpush1.bf16.msra.mxu0 %v5519_v15  ;;  %3750 = vmatprep.subr.bf16.mxu1 %v5524_v18  ;;  %v5605_v15 = vld [vmem:[%s6049_s18 + $0xe40] ss:$8 sps:$4 sm:$0xff]   ;;  %v5610_v18 = vld [vmem:[%s6049_s18 + $0x654] ss:$8 sps:$4 sm:$0xff]  }
 0x1af   : > { %4078 = vmatprep.subr.bf16.mxu0 %v5527_v19  ;;  %v5613_v19 = vld [vmem:[%s6049_s18 + $0xe54] ss:$8 sps:$4 sm:$0xff]  }
 0x1b1   : > { %3751 = vmatpush1.bf16.msra.mxu1 %v5522_v20  ;;  %v5608_v20 = vld [vmem:[%s6049_s18 + $0x650] ss:$8 sps:$4 sm:$0xff]  }
 0x1b2   : > { %4079 = vmatpush1.bf16.msra.mxu0 %v5525_v21  ;;  %3752 = vmatprep.subr.bf16.mxu1 %v5530_v22  ;;  %v5611_v21 = vld [vmem:[%s6049_s18 + $0xe50] ss:$8 sps:$4 sm:$0xff]   ;;  %v5616_v22 = vld [vmem:[%s6049_s18 + $0x664] ss:$8 sps:$4 sm:$0xff]  }
 0x1b3   : > { %4080 = vmatprep.subr.bf16.mxu0 %v5533_v23  ;;  %v5619_v23 = vld [vmem:[%s6049_s18 + $0xe64] ss:$8 sps:$4 sm:$0xff]  }
 0x1b5   : > { %3753 = vmatpush1.bf16.msra.mxu1 %v5528_v24  ;;  %v5614_v24 = vld [vmem:[%s6049_s18 + $0x660] ss:$8 sps:$4 sm:$0xff]  }
 0x1b6   : > { %4081 = vmatpush1.bf16.msra.mxu0 %v5531_v25  ;;  %3754 = vmatprep.subr.bf16.mxu1 %v5536_v26  ;;  %v5617_v25 = vld [vmem:[%s6049_s18 + $0xe60] ss:$8 sps:$4 sm:$0xff]   ;;  %v5622_v26 = vld [vmem:[%s6049_s18 + $0x674] ss:$8 sps:$4 sm:$0xff]  }
 0x1b7   : > { %4082 = vmatprep.subr.bf16.mxu0 %v5539_v28  ;;  %v5625_v28 = vld [vmem:[%s6049_s18 + $0xe74] ss:$8 sps:$4 sm:$0xff]  }
 0x1b9   : > { %3755 = vmatpush1.bf16.msra.mxu1 %v5534_v31  ;;  %v5620_v31 = vld [vmem:[%s6049_s18 + $0x670] ss:$8 sps:$4 sm:$0xff]  }
 0x1ba   : > { %4083 = vmatpush1.bf16.msra.mxu0 %v5537_v32  ;;  %3756 = vmatprep.subr.bf16.mxu1 %v5542_v33  ;;  %v5623_v32 = vld [vmem:[%s6049_s18 + $0xe70] ss:$8 sps:$4 sm:$0xff]   ;;  %v5628_v33 = vld [vmem:[%s6049_s18 + $0x684] ss:$8 sps:$4 sm:$0xff]  }
 0x1bb   : > { %4084 = vmatprep.subr.bf16.mxu0 %v5545_v35  ;;  %v5631_v35 = vld [vmem:[%s6049_s18 + $0xe84] ss:$8 sps:$4 sm:$0xff]  }
 0x1bd   : > { %3757 = vmatpush1.bf16.msra.mxu1 %v5540_v16  ;;  %v5626_v16 = vld [vmem:[%s6049_s18 + $0x680] ss:$8 sps:$4 sm:$0xff]  }
 0x1be   : > { %4085 = vmatpush1.bf16.msra.mxu0 %v5543_v17  ;;  %3758 = vmatprep.subr.bf16.mxu1 %v5548_v37  ;;  %v5629_v17 = vld [vmem:[%s6049_s18 + $0xe80] ss:$8 sps:$4 sm:$0xff]   ;;  %v5634_v37 = vld [vmem:[%s6049_s18 + $0x694] ss:$8 sps:$4 sm:$0xff]  }
 0x1bf   : > { %4086 = vmatprep.subr.bf16.mxu0 %v5551_v30  ;;  %v5637_v30 = vld [vmem:[%s6049_s18 + $0xe94] ss:$8 sps:$4 sm:$0xff]  }
 0x1c1   : > { %3759 = vmatpush1.bf16.msra.mxu1 %v5546_v40  ;;  %v5632_v40 = vld [vmem:[%s6049_s18 + $0x690] ss:$8 sps:$4 sm:$0xff]  }
 0x1c2   : > { %4087 = vmatpush1.bf16.msra.mxu0 %v5549_v41  ;;  %3760 = vmatprep.subr.bf16.mxu1 %v5554_v42  ;;  %v5635_v41 = vld [vmem:[%s6049_s18 + $0xe90] ss:$8 sps:$4 sm:$0xff]   ;;  %v5640_v42 = vld [vmem:[%s6049_s18 + $0x6a4] ss:$8 sps:$4 sm:$0xff]  }
 0x1c3   : > { %4088 = vmatprep.subr.bf16.mxu0 %v5557_v44  ;;  %v5643_v44 = vld [vmem:[%s6049_s18 + $0xea4] ss:$8 sps:$4 sm:$0xff]  }
 0x1c5   : > { %3761 = vmatpush1.bf16.msra.mxu1 %v5552_v47  ;;  %v5638_v47 = vld [vmem:[%s6049_s18 + $0x6a0] ss:$8 sps:$4 sm:$0xff]  }
 0x1c6   : > { %4089 = vmatpush1.bf16.msra.mxu0 %v5555_v29  ;;  %3762 = vmatprep.subr.bf16.mxu1 %v5560_v34  ;;  %v5641_v29 = vld [vmem:[%s6049_s18 + $0xea0] ss:$8 sps:$4 sm:$0xff]   ;;  %v5646_v34 = vld [vmem:[%s6049_s18 + $0x6b4] ss:$8 sps:$4 sm:$0xff]  }
 0x1c7   : > { %4090 = vmatprep.subr.bf16.mxu0 %v5563_v48  ;;  %v5649_v48 = vld [vmem:[%s6049_s18 + $0xeb4] ss:$8 sps:$4 sm:$0xff]  }
 0x1c9   : > { %3763 = vmatpush1.bf16.msra.mxu1 %v5558_v50  ;;  %v5644_v50 = vld [vmem:[%s6049_s18 + $0x6b0] ss:$8 sps:$4 sm:$0xff]  }
 0x1ca   : > { %4091 = vmatpush1.bf16.msra.mxu0 %v5561_v51  ;;  %3764 = vmatprep.subr.bf16.mxu1 %v5566_v52  ;;  %v5647_v51 = vld [vmem:[%s6049_s18 + $0xeb0] ss:$8 sps:$4 sm:$0xff]   ;;  %v5652_v52 = vld [vmem:[%s6049_s18 + $0x6c4] ss:$8 sps:$4 sm:$0xff]  }
 0x1cb   : > { %4092 = vmatprep.subr.bf16.mxu0 %v5569_v53  ;;  %v5655_v53 = vld [vmem:[%s6049_s18 + $0xec4] ss:$8 sps:$4 sm:$0xff]  }
 0x1cd   : > { %3765 = vmatpush1.bf16.msra.mxu1 %v5564_v54  ;;  %v5650_v54 = vld [vmem:[%s6049_s18 + $0x6c0] ss:$8 sps:$4 sm:$0xff]  }
 0x1ce   : > { %4093 = vmatpush1.bf16.msra.mxu0 %v5567_v55  ;;  %3766 = vmatprep.subr.bf16.mxu1 %v5572_v38  ;;  %v5653_v55 = vld [vmem:[%s6049_s18 + $0xec0] ss:$8 sps:$4 sm:$0xff]   ;;  %v5658_v38 = vld [vmem:[%s6049_s18 + $0x6d4] ss:$8 sps:$4 sm:$0xff]  }
 0x1cf   : > { %4094 = vmatprep.subr.bf16.mxu0 %v5575_v39  ;;  %v5661_v39 = vld [vmem:[%s6049_s18 + $0xed4] ss:$8 sps:$4 sm:$0xff]  }
 0x1d1   : > { %3767 = vmatpush1.bf16.msra.mxu1 %v5570_v58  ;;  %v5656_v58 = vld [vmem:[%s6049_s18 + $0x6d0] ss:$8 sps:$4 sm:$0xff]  }
 0x1d2   : > { %4095 = vmatpush1.bf16.msra.mxu0 %v5573_v59  ;;  %3777 = vmatprep.subr.bf16.mxu1 %v5579_v60  ;;  %v5659_v59 = vld [vmem:[%s6049_s18 + $0xed0] ss:$8 sps:$4 sm:$0xff]   ;;  %v5664_v60 = vld [vmem:[%s6049_s18 + $0x6e4] ss:$8 sps:$4 sm:$0xff]  }
 0x1d3   : > { %4105 = vmatprep.subr.bf16.mxu0 %v5583_v61  ;;  %v5667_v61 = vld [vmem:[%s6049_s18 + $0xee4] ss:$8 sps:$4 sm:$0xff]  }
 0x1d4   : > { %3769 = vmatmul.mubr.bf16.vlgmr.msra.gmra.mrb[0].mxu1 %v6475_v36  ;;  %v5590_v36 = vld [vmem:[%s6049_s18 + $0x620] ss:$8 sps:$4 sm:$0xff]  }
 0x1d5   : > { %4097 = vmatmul.mubr.bf16.vlgmr.msra.gmra.mrb[0].mxu0 %v6478_v27  ;;  %3778 = vmatpush1.bf16.msra.mxu1 %v5577_v45  ;;  %v5593_v27 = vld [vmem:[%s6049_s18 + $0xe20] ss:$8 sps:$4 sm:$0xff]  }
 0x1d6   : > { %4106 = vmatpush1.bf16.msra.mxu0 %v5581_v46  ;;  %3779 = vmatprep.subr.bf16.mxu1 %v5586_v0  ;;  %v5662_v45 = vld [vmem:[%s6049_s18 + $0x6e0] ss:$8 sps:$4 sm:$0xff]   ;;  %v5670_v0 = vld [vmem:[%s6049_s18 + $0x6f4] ss:$8 sps:$4 sm:$0xff]  }
 0x1d7   : > { %4107 = vmatprep.subr.bf16.mxu0 %v5589_v1  ;;  %3809 = vmatprep.mubr.bf16.mxu1 %v869_v2  ;;  %v5665_v46 = vld [vmem:[%s6049_s18 + $0xee0] ss:$8 sps:$4 sm:$0xff]   ;;  %v5673_v1 = vld [vmem:[%s6049_s18 + $0xef4] ss:$8 sps:$4 sm:$0xff]   ;;  %v854_v2 = vcombine.high %v6549_v56, %v6549_v56 }
 0x1d8   : > { %4137 = vmatprep.mubr.bf16.mxu0 %v937_v3  ;;  %v922_v3 = vcombine.high %v6554_v57, %v6554_v57  ;;  %v5674_v56 = vld [vmem:[%s6049_s18 + $0x700] ss:$8 sps:$4 sm:$0xff]  }
 0x1d9   : > { %3780 = vmatpush1.bf16.msra.mxu1 %v5584_v4  ;;  %v5668_v4 = vld [vmem:[%s6049_s18 + $0x6f0] ss:$8 sps:$4 sm:$0xff]   ;;  %v5677_v57 = vld [vmem:[%s6049_s18 + $0xf00] ss:$8 sps:$4 sm:$0xff]  }
 0x1da   : > { %4108 = vmatpush1.bf16.msra.mxu0 %v5587_v5  ;;  %3781 = vmatprep.subr.bf16.mxu1 %v5592_v6  ;;  %v5671_v5 = vld [vmem:[%s6049_s18 + $0xef0] ss:$8 sps:$4 sm:$0xff]   ;;  %v5676_v6 = vld [vmem:[%s6049_s18 + $0x704] ss:$8 sps:$4 sm:$0xff]  }
 0x1db   : > { %4109 = vmatprep.subr.bf16.mxu0 %v5595_v7  ;;  %v5679_v7 = vld [vmem:[%s6049_s18 + $0xf04] ss:$8 sps:$4 sm:$0xff]  }
 0x1dd   : > { %3782 = vmatpush1.bf16.msra.mxu1 %v5590_v36  ;;  %v6643_v36 = vrot.slane %v854_v2, %v6108_v49  ;;  %v5755_v2 = vld [vmem:[%s6049_s18 + $0xfd0] ss:$8 sps:$4 sm:$0xff]  }
 0x1de   : > { %4110 = vmatpush1.bf16.msra.mxu0 %v5593_v27  ;;  %3783 = vmatprep.subr.bf16.mxu1 %v5598_v8  ;;  %v6646_v27 = vrot.slane %v922_v3, %v6108_v49  ;;  %v5682_v8 = vld [vmem:[%s6049_s18 + $0x714] ss:$8 sps:$4 sm:$0xff]   ;;  %v5680_v49 = vld [vmem:[%s6049_s18 + $0x710] ss:$8 sps:$4 sm:$0xff]   ;;  %v5760_v3 = vld [vmem:[%s6049_s18 + $0x7e4] ss:$8 sps:$4 sm:$0xff]  }
 0x1df   : > { %4111 = vmatprep.subr.bf16.mxu0 %v5601_v9  ;;  %v5685_v9 = vld [vmem:[%s6049_s18 + $0xf14] ss:$8 sps:$4 sm:$0xff]  }
 0x1e1   : > { %3784 = vmatpush1.bf16.msra.mxu1 %v5596_v10  ;;  %v870_v10 = vcombine.high %v6643_v36, %v6643_v36 }
 0x1e2   : > { %4112 = vmatpush1.bf16.msra.mxu0 %v5599_v11  ;;  %3785 = vmatprep.subr.bf16.mxu1 %v5604_v12  ;;  %v938_v11 = vcombine.high %v6646_v27, %v6646_v27  ;;  %v5683_v12 = vld [vmem:[%s6049_s18 + $0xf10] ss:$8 sps:$4 sm:$0xff]  }
 0x1e3   : > { %4113 = vmatprep.subr.bf16.mxu0 %v5607_v13  ;;  %v5688_v13 = vld [vmem:[%s6049_s18 + $0x724] ss:$8 sps:$4 sm:$0xff]  }
 0x1e5   : > { %3786 = vmatpush1.bf16.msra.mxu1 %v5602_v14  ;;  %v5691_v14 = vld [vmem:[%s6049_s18 + $0xf24] ss:$8 sps:$4 sm:$0xff]  }
 0x1e6   : > { %4114 = vmatpush1.bf16.msra.mxu0 %v5605_v15  ;;  %3787 = vmatprep.subr.bf16.mxu1 %v5610_v18  ;;  %v5694_v15 = vld [vmem:[%s6049_s18 + $0x734] ss:$8 sps:$4 sm:$0xff]  }
 0x1e7   : > { %4115 = vmatprep.subr.bf16.mxu0 %v5613_v19  ;;  %v5697_v18 = vld [vmem:[%s6049_s18 + $0xf34] ss:$8 sps:$4 sm:$0xff]   ;;  %v5692_v19 = vld [vmem:[%s6049_s18 + $0x730] ss:$8 sps:$4 sm:$0xff]  }
 0x1e9   : > { %3788 = vmatpush1.bf16.msra.mxu1 %v5608_v20  ;;  %v5695_v20 = vld [vmem:[%s6049_s18 + $0xf30] ss:$8 sps:$4 sm:$0xff]  }
 0x1ea   : > { %4116 = vmatpush1.bf16.msra.mxu0 %v5611_v21  ;;  %3789 = vmatprep.subr.bf16.mxu1 %v5616_v22  ;;  %v5700_v21 = vld [vmem:[%s6049_s18 + $0x744] ss:$8 sps:$4 sm:$0xff]  }
 0x1eb   : > { %4117 = vmatprep.subr.bf16.mxu0 %v5619_v23  ;;  %v5703_v22 = vld [vmem:[%s6049_s18 + $0xf44] ss:$8 sps:$4 sm:$0xff]   ;;  %v5698_v23 = vld [vmem:[%s6049_s18 + $0x740] ss:$8 sps:$4 sm:$0xff]  }
 0x1ed   : > { %3790 = vmatpush1.bf16.msra.mxu1 %v5614_v24  ;;  %v5701_v24 = vld [vmem:[%s6049_s18 + $0xf40] ss:$8 sps:$4 sm:$0xff]  }
 0x1ee   : > { %4118 = vmatpush1.bf16.msra.mxu0 %v5617_v25  ;;  %3791 = vmatprep.subr.bf16.mxu1 %v5622_v26  ;;  %v5706_v25 = vld [vmem:[%s6049_s18 + $0x754] ss:$8 sps:$4 sm:$0xff]  }
 0x1ef   : > { %4119 = vmatprep.subr.bf16.mxu0 %v5625_v28  ;;  %v5709_v26 = vld [vmem:[%s6049_s18 + $0xf54] ss:$8 sps:$4 sm:$0xff]   ;;  %v5704_v28 = vld [vmem:[%s6049_s18 + $0x750] ss:$8 sps:$4 sm:$0xff]  }
 0x1f1   : > { %3792 = vmatpush1.bf16.msra.mxu1 %v5620_v31  ;;  %v5707_v31 = vld [vmem:[%s6049_s18 + $0xf50] ss:$8 sps:$4 sm:$0xff]  }
 0x1f2   : > { %4120 = vmatpush1.bf16.msra.mxu0 %v5623_v32  ;;  %3793 = vmatprep.subr.bf16.mxu1 %v5628_v33  ;;  %v5712_v32 = vld [vmem:[%s6049_s18 + $0x764] ss:$8 sps:$4 sm:$0xff]  }
 0x1f3   : > { %4121 = vmatprep.subr.bf16.mxu0 %v5631_v35  ;;  %v5715_v33 = vld [vmem:[%s6049_s18 + $0xf64] ss:$8 sps:$4 sm:$0xff]   ;;  %v5710_v35 = vld [vmem:[%s6049_s18 + $0x760] ss:$8 sps:$4 sm:$0xff]  }
 0x1f5   : > { %3794 = vmatpush1.bf16.msra.mxu1 %v5626_v16  ;;  %v5713_v16 = vld [vmem:[%s6049_s18 + $0xf60] ss:$8 sps:$4 sm:$0xff]  }
 0x1f6   : > { %4122 = vmatpush1.bf16.msra.mxu0 %v5629_v17  ;;  %3795 = vmatprep.subr.bf16.mxu1 %v5634_v37  ;;  %v5718_v17 = vld [vmem:[%s6049_s18 + $0x774] ss:$8 sps:$4 sm:$0xff]  }
 0x1f7   : > { %4123 = vmatprep.subr.bf16.mxu0 %v5637_v30  ;;  %v5721_v37 = vld [vmem:[%s6049_s18 + $0xf74] ss:$8 sps:$4 sm:$0xff]   ;;  %v5716_v30 = vld [vmem:[%s6049_s18 + $0x770] ss:$8 sps:$4 sm:$0xff]  }
 0x1f9   : > { %3796 = vmatpush1.bf16.msra.mxu1 %v5632_v40  ;;  %v5719_v40 = vld [vmem:[%s6049_s18 + $0xf70] ss:$8 sps:$4 sm:$0xff]  }
 0x1fa   : > { %4124 = vmatpush1.bf16.msra.mxu0 %v5635_v41  ;;  %3797 = vmatprep.subr.bf16.mxu1 %v5640_v42  ;;  %v5724_v41 = vld [vmem:[%s6049_s18 + $0x784] ss:$8 sps:$4 sm:$0xff]  }
 0x1fb   : > { %4125 = vmatprep.subr.bf16.mxu0 %v5643_v44  ;;  %v5727_v42 = vld [vmem:[%s6049_s18 + $0xf84] ss:$8 sps:$4 sm:$0xff]   ;;  %v5722_v44 = vld [vmem:[%s6049_s18 + $0x780] ss:$8 sps:$4 sm:$0xff]  }
 0x1fd   : > { %3798 = vmatpush1.bf16.msra.mxu1 %v5638_v47  ;;  %v5725_v47 = vld [vmem:[%s6049_s18 + $0xf80] ss:$8 sps:$4 sm:$0xff]  }
 0x1fe   : > { %4126 = vmatpush1.bf16.msra.mxu0 %v5641_v29  ;;  %3799 = vmatprep.subr.bf16.mxu1 %v5646_v34  ;;  %v5730_v29 = vld [vmem:[%s6049_s18 + $0x794] ss:$8 sps:$4 sm:$0xff]  }
 0x1ff   : > { %4127 = vmatprep.subr.bf16.mxu0 %v5649_v48  ;;  %v5733_v34 = vld [vmem:[%s6049_s18 + $0xf94] ss:$8 sps:$4 sm:$0xff]   ;;  %v5728_v48 = vld [vmem:[%s6049_s18 + $0x790] ss:$8 sps:$4 sm:$0xff]  }
 0x201   : > { %3800 = vmatpush1.bf16.msra.mxu1 %v5644_v50  ;;  %v5731_v50 = vld [vmem:[%s6049_s18 + $0xf90] ss:$8 sps:$4 sm:$0xff]  }
 0x202   : > { %4128 = vmatpush1.bf16.msra.mxu0 %v5647_v51  ;;  %3801 = vmatprep.subr.bf16.mxu1 %v5652_v52  ;;  %v5736_v51 = vld [vmem:[%s6049_s18 + $0x7a4] ss:$8 sps:$4 sm:$0xff]  }
 0x203   : > { %4129 = vmatprep.subr.bf16.mxu0 %v5655_v53  ;;  %v5739_v52 = vld [vmem:[%s6049_s18 + $0xfa4] ss:$8 sps:$4 sm:$0xff]   ;;  %v5734_v53 = vld [vmem:[%s6049_s18 + $0x7a0] ss:$8 sps:$4 sm:$0xff]  }
 0x205   : > { %3802 = vmatpush1.bf16.msra.mxu1 %v5650_v54  ;;  %v5737_v54 = vld [vmem:[%s6049_s18 + $0xfa0] ss:$8 sps:$4 sm:$0xff]  }
 0x206   : > { %4130 = vmatpush1.bf16.msra.mxu0 %v5653_v55  ;;  %3803 = vmatprep.subr.bf16.mxu1 %v5658_v38  ;;  %v5742_v55 = vld [vmem:[%s6049_s18 + $0x7b4] ss:$8 sps:$4 sm:$0xff]  }
 0x207   : > { %4131 = vmatprep.subr.bf16.mxu0 %v5661_v39  ;;  %v5745_v38 = vld [vmem:[%s6049_s18 + $0xfb4] ss:$8 sps:$4 sm:$0xff]   ;;  %v5740_v39 = vld [vmem:[%s6049_s18 + $0x7b0] ss:$8 sps:$4 sm:$0xff]  }
 0x209   : > { %3804 = vmatpush1.bf16.msra.mxu1 %v5656_v58  ;;  %v5743_v58 = vld [vmem:[%s6049_s18 + $0xfb0] ss:$8 sps:$4 sm:$0xff]  }
 0x20a   : > { %4132 = vmatpush1.bf16.msra.mxu0 %v5659_v59  ;;  %3805 = vmatprep.subr.bf16.mxu1 %v5664_v60  ;;  %v5748_v59 = vld [vmem:[%s6049_s18 + $0x7c4] ss:$8 sps:$4 sm:$0xff]  }
 0x20b   : > { %4133 = vmatprep.subr.bf16.mxu0 %v5667_v61  ;;  %v5751_v60 = vld [vmem:[%s6049_s18 + $0xfc4] ss:$8 sps:$4 sm:$0xff]   ;;  %v5746_v61 = vld [vmem:[%s6049_s18 + $0x7c0] ss:$8 sps:$4 sm:$0xff]  }
 0x20d   : > { %3806 = vmatpush1.bf16.msra.mxu1 %v5662_v45  ;;  %v5749_v45 = vld [vmem:[%s6049_s18 + $0xfc0] ss:$8 sps:$4 sm:$0xff]  }
 0x20e   : > { %4134 = vmatpush1.bf16.msra.mxu0 %v5665_v46  ;;  %3807 = vmatprep.subr.bf16.mxu1 %v5670_v0  ;;  %v5754_v46 = vld [vmem:[%s6049_s18 + $0x7d4] ss:$8 sps:$4 sm:$0xff]  }
 0x20f   : > { %4135 = vmatprep.subr.bf16.mxu0 %v5673_v1  ;;  %v5757_v0 = vld [vmem:[%s6049_s18 + $0xfd4] ss:$8 sps:$4 sm:$0xff]   ;;  %v5752_v1 = vld [vmem:[%s6049_s18 + $0x7d0] ss:$8 sps:$4 sm:$0xff]  }
 0x211   : > { %3808 = vmatpush1.bf16.msra.mxu1 %v5668_v4  ;;  %v5763_v4 = vld [vmem:[%s6049_s18 + $0xfe4] ss:$8 sps:$4 sm:$0xff]  }
 0x212   : > { %4136 = vmatpush1.bf16.msra.mxu0 %v5671_v5  ;;  %3818 = vmatprep.subr.bf16.mxu1 %v5676_v6  ;;  %v5758_v5 = vld [vmem:[%s6049_s18 + $0x7e0] ss:$8 sps:$4 sm:$0xff]  }
 0x213   : > { %4146 = vmatprep.subr.bf16.mxu0 %v5679_v7  ;;  %v5761_v6 = vld [vmem:[%s6049_s18 + $0xfe0] ss:$8 sps:$4 sm:$0xff]   ;;  %v5766_v7 = vld [vmem:[%s6049_s18 + $0x7f4] ss:$8 sps:$4 sm:$0xff]  }
 0x214   : > { %3810 = vmatmul.mubr.bf16.vlgmr.msra.gmra.mrb[0].mxu1 %v6562_v62  ;;  %v5686_v62 = vld [vmem:[%s6049_s18 + $0x720] ss:$8 sps:$4 sm:$0xff]  }
 0x215   : > { %4138 = vmatmul.mubr.bf16.vlgmr.msra.gmra.mrb[0].mxu0 %v6566_v63  ;;  %3819 = vmatpush1.bf16.msra.mxu1 %v5674_v56  ;;  %v5689_v63 = vld [vmem:[%s6049_s18 + $0xf20] ss:$8 sps:$4 sm:$0xff]   ;;  %v5769_v56 = vld [vmem:[%s6049_s18 + $0xff4] ss:$8 sps:$4 sm:$0xff]  }
 0x216   : > { %4147 = vmatpush1.bf16.msra.mxu0 %v5677_v57  ;;  %3820 = vmatprep.subr.bf16.mxu1 %v5682_v8  ;;  %v5764_v57 = vld [vmem:[%s6049_s18 + $0x7f0] ss:$8 sps:$4 sm:$0xff]  }
 0x217   : > { %4148 = vmatprep.subr.bf16.mxu0 %v5685_v9  ;;  %3850 = vmatprep.mubr.bf16.mxu1 %v870_v10  ;;  %v5767_v8 = vld [vmem:[%s6049_s18 + $0xff0] ss:$8 sps:$4 sm:$0xff]   ;;  %s4356_s18 = sshll.u32 %s6764_s15, 1 }
 0x218   : > { %4178 = vmatprep.mubr.bf16.mxu0 %v938_v11 }
 0x219   : > { %3821 = vmatpush1.bf16.msra.mxu1 %v5680_v49 }
 0x21a   : > { %4149 = vmatpush1.bf16.msra.mxu0 %v5683_v12  ;;  %3822 = vmatprep.subr.bf16.mxu1 %v5688_v13 }
 0x21b   : > { %4150 = vmatprep.subr.bf16.mxu0 %v5691_v14 }
 0x21d   : > { %3823 = vmatpush1.bf16.msra.mxu1 %v5686_v62 }
 0x21e   : > { %4151 = vmatpush1.bf16.msra.mxu0 %v5689_v63  ;;  %3824 = vmatprep.subr.bf16.mxu1 %v5694_v15  ;;  %v4208_v63 = vsub.s32 0, %v6100_v43  ;;  %v4212_v15 = vsub.s32 1, %v6100_v43 }
 0x21f   : > { %4152 = vmatprep.subr.bf16.mxu0 %v5697_v18 }
 0x221   : > { %3825 = vmatpush1.bf16.msra.mxu1 %v5692_v19 }
 0x222   : > { %4153 = vmatpush1.bf16.msra.mxu0 %v5695_v20  ;;  %3826 = vmatprep.subr.bf16.mxu1 %v5700_v21  ;;  %v4204_v20 = vld [vmem:[%s6055_s7] sm:$0x3]  ;;  %s268_s7 = scalar_lea.vmem %s6747_s3, %s4356_s18 }
 0x223   : > { %4154 = vmatprep.subr.bf16.mxu0 %v5703_v22  ;;  %v4213_v22 = vrot.slane %v4204_v20, %v4212_v15 }
 0x225   : > { %3827 = vmatpush1.bf16.msra.mxu1 %v5698_v23 }
 0x226   : > { %4155 = vmatpush1.bf16.msra.mxu0 %v5701_v24  ;;  %3828 = vmatprep.subr.bf16.mxu1 %v5706_v25 }
 0x227   : > { %4156 = vmatprep.subr.bf16.mxu0 %v5709_v26 }
 0x229   : > { %3829 = vmatpush1.bf16.msra.mxu1 %v5704_v28 }
 0x22a   : > { %4157 = vmatpush1.bf16.msra.mxu0 %v5707_v31  ;;  %3830 = vmatprep.subr.bf16.mxu1 %v5712_v32 }
 0x22b   : > { %4158 = vmatprep.subr.bf16.mxu0 %v5715_v33 }
 0x22d   : > { %3831 = vmatpush1.bf16.msra.mxu1 %v5710_v35 }
 0x22e   : > { %4159 = vmatpush1.bf16.msra.mxu0 %v5713_v16  ;;  %3832 = vmatprep.subr.bf16.mxu1 %v5718_v17 }
 0x22f   : > { %4160 = vmatprep.subr.bf16.mxu0 %v5721_v37 }
 0x231   : > { %3833 = vmatpush1.bf16.msra.mxu1 %v5716_v30 }
 0x232   : > { %4161 = vmatpush1.bf16.msra.mxu0 %v5719_v40  ;;  %3834 = vmatprep.subr.bf16.mxu1 %v5724_v41 }
 0x233   : > { %4162 = vmatprep.subr.bf16.mxu0 %v5727_v42 }
 0x235   : > { %3835 = vmatpush1.bf16.msra.mxu1 %v5722_v44 }
 0x236   : > { %4163 = vmatpush1.bf16.msra.mxu0 %v5725_v47  ;;  %3836 = vmatprep.subr.bf16.mxu1 %v5730_v29 }
 0x237   : > { %4164 = vmatprep.subr.bf16.mxu0 %v5733_v34 }
 0x239   : > { %3837 = vmatpush1.bf16.msra.mxu1 %v5728_v48 }
 0x23a   : > { %4165 = vmatpush1.bf16.msra.mxu0 %v5731_v50  ;;  %3838 = vmatprep.subr.bf16.mxu1 %v5736_v51 }
 0x23b   : > { %4166 = vmatprep.subr.bf16.mxu0 %v5739_v52 }
 0x23d   : > { %3839 = vmatpush1.bf16.msra.mxu1 %v5734_v53 }
 0x23e   : > { %4167 = vmatpush1.bf16.msra.mxu0 %v5737_v54  ;;  %3840 = vmatprep.subr.bf16.mxu1 %v5742_v55 }
 0x23f   : > { %4168 = vmatprep.subr.bf16.mxu0 %v5745_v38 }
 0x241   : > { %3841 = vmatpush1.bf16.msra.mxu1 %v5740_v39 }
 0x242   : > { %4169 = vmatpush1.bf16.msra.mxu0 %v5743_v58  ;;  %3842 = vmatprep.subr.bf16.mxu1 %v5748_v59 }
 0x243   : > { %4170 = vmatprep.subr.bf16.mxu0 %v5751_v60 }
 0x245   : > { %3843 = vmatpush1.bf16.msra.mxu1 %v5746_v61 }
 0x246   : > { %4171 = vmatpush1.bf16.msra.mxu0 %v5749_v45  ;;  %3844 = vmatprep.subr.bf16.mxu1 %v5754_v46 }
 0x247   : > { %4172 = vmatprep.subr.bf16.mxu0 %v5757_v0 }
 0x249   : > { %3845 = vmatpush1.bf16.msra.mxu1 %v5752_v1 }
 0x24a   : > { %4173 = vmatpush1.bf16.msra.mxu0 %v5755_v2  ;;  %3846 = vmatprep.subr.bf16.mxu1 %v5760_v3 }
 0x24b   : > { %4174 = vmatprep.subr.bf16.mxu0 %v5763_v4 }
 0x24d   : > { %3847 = vmatpush1.bf16.msra.mxu1 %v5758_v5 }
 0x24e   : > { %4175 = vmatpush1.bf16.msra.mxu0 %v5761_v6  ;;  %3848 = vmatprep.subr.bf16.mxu1 %v5766_v7 }
 0x24f   : > { %4176 = vmatprep.subr.bf16.mxu0 %v5769_v56 }
 0x251   : > { %3849 = vmatpush1.bf16.msra.mxu1 %v5764_v57 }
 0x252   : > { %4177 = vmatpush1.bf16.msra.mxu0 %v5767_v8 }
 0x254   : > { %3851 = vmatmul.mubr.bf16.vlgmr.msra.gmra.mrb[0].mxu1 %v6643_v36 }
 0x255   : > { %4179 = vmatmul.mubr.bf16.vlgmr.msra.gmra.mrb[0].mxu0 %v6646_v27  ;;  %v4209_v27 = vrot.slane %v4204_v20, %v4208_v63 }
 0x257   : > { %v4214_v25 = vcombine.low %v4209_v27, %v4213_v22 }
 0x327   : > { %v3852_v9 = vpop.f32.mrb[0].mxu1 }
 0x328   : > { %v4180_v10 = vpop.f32.mrb[0].mxu0  ;;  %v3854_v49 = vpop.f32.mrb[1].mxu1 }
 0x329   : > { %v4874_v11 = vadd.f32 %v4180_v10, %v3852_v9  ;;  %v4182_v12 = vpop.f32.mrb[1].mxu0  ;;  %v3856_v14 = vpop.f32.mrb[2].mxu1 }
 0x32a   : > { %v4875_v13 = vadd.f32 %v4182_v12, %v3854_v49  ;;  %v4184_v62 = vpop.f32.mrb[2].mxu0  ;;  %v3857_v18 = vpop.f32.mrb[3].mxu1 }
 0x32b   : > { %v4185_v19 = vpop.f32.mrb[3].mxu0 }
 0x32c   : > { %v4189_v21 = vcombine.low %v4874_v11, %v4875_v13 }
 0x32e   : > { %v4197_v36 = vmax.f32 %v4189_v21, 0.0 }
 0x330   : > { %v4869_v23 = vrot.slane %v4197_v36, 10 }
 0x332   : > { %v4202_v24 = vsub.f32 %v4197_v36, %v4869_v23 }
 0x334   : > { %v4203_v26 = vand.u32 2147483647, %v4202_v24 }
 0x336   : > { %v4216_v28 = vmul.f32 %v4214_v25, %v4203_v26 }
 0x338   : > { %v4218_v31 = vcombine.high %v4216_v28, %v4216_v28  ;;  %v4221_v32 = vsel %vm4220_vm0, %v4216_v28, 0.0 }
 0x33a   : > { %v4222_v33 = vsel %vm4220_vm0, %v4218_v31, 0.0 }
 0x33b   : > { %v4223_v35 = vadd.f32 %v4222_v33, %v4221_v32 }
 0x33d   : > { %4224 = vadd.xlane.f32.xlu0 %v4223_v35 }
 0x3ca   : > { %v4225_v43 = vpop.xlane.xlu0 %4224 }
 0x3cb   : > { %4227 = vst.msk [vmem:[%s268_s7] sm:$0x3] %vm4226_vm1, %v4225_v43 }
 0x3cc PF: > { %s19_s17 = sadd.s32 1, %s5886_s17   ;;  %s6756_s12 = smov %s5870_s13 }
 0x3cd   : > { %p16_p9 = scmp.ge.s32.totalorder %s19_s17, 4   ;;  %s6757_s13 = smov %s5874_s14 }
 0x3ce   : > { %s6758_s14 = smov %s5963_s24  ;;  %s6759_s15 = smov %s5882_s16 }
 0x3cf   : > { %s6760_s16 = smov %s6762_s19  ;;  %18 = sbr.rel (!%p16_p9) target bundleno = 6 (0x6), region = 96 }
 0x3d6   :  { %4247 = vsyncpa [#allocation4], 1 }
 0x3d7   :  { %4249 = vsyncpa [#allocation4 + $0x1], 1 }
 0x3d8   :  { %4250 = vsyncpa [#allocation6], 1 }
 0x3d9   :  { %4252 = vsyncpa [#allocation6 + $0x1], 1 }

</bundles_post_ra>
